<compile_context>
chip_gen: v7x
topology: tpu7x:2x2x1
jax: 0.10.0
libtpu: 0.0.40
codegen_flags: <defaults>
</compile_context>

<pallas_src>
import functools

import jax
import jax.numpy as jnp
from jax.experimental import pallas as pl
from jax.experimental.pallas import tpu as pltpu

VMEM_LIMIT = 48 * 1024 * 1024  # comfortably below v7x's 64 MiB physical VMEM


def _round_up(x, m):
    return (x + m - 1) // m * m


# ----------------------------------------------------------------------------
# Encoder block: Conv2d(3x3, pad=1) + bias + ReLU + MaxPool2d(2), fully fused
# ----------------------------------------------------------------------------
def _enc_block_kernel(x_ref, w_ref, b_ref, o_ref, *, h, wa, wh, cout):
    """One image per grid step.

    x_ref : (1, (h+2)*wa, 4*cin) bf16   column-pair unfolded, zero-padded input:
                                        row m = i*wa + j', lane k = dx*cin + c
                                        holds x_pad[i, 2*j' + dx, c]
    w_ref : (3, 4*cin, 2*cout)   bf16   per-dy folded weights; first cout lanes
                                        produce even output columns, last cout
                                        lanes the odd columns
    b_ref : (1, 2*cout)          f32
    o_ref : (1, h//2, wh, cout)  bf16   pooled output
    """
    mo = h * wa

    # conv3x3 as 3 dy-shifted matmuls, accumulated in registers (f32).
    acc = jnp.dot(x_ref[0, pl.ds(0, mo), :], w_ref[0],
                  preferred_element_type=jnp.float32)
    acc = acc + jnp.dot(x_ref[0, pl.ds(wa, mo), :], w_ref[1],
                        preferred_element_type=jnp.float32)
    acc = acc + jnp.dot(x_ref[0, pl.ds(2 * wa, mo), :], w_ref[2],
                        preferred_element_type=jnp.float32)

    # bias + ReLU in f32, downcast, then pool in bf16 (exact for max).
    y = jnp.maximum(acc + b_ref[...], 0.0).astype(jnp.bfloat16)   # (mo, 2*cout)

    # horizontal pool: even/odd output columns sit in the two lane halves.
    yh = jnp.maximum(y[:, :cout], y[:, cout:])                    # (mo, cout)

    # vertical pool: rows 2i vs 2i+1 (wa is a multiple of the sublane tile, so
    # the reshape is a pure relabel of the leading dim).
    y4 = yh.reshape(h // 2, 2, wa, cout)
    yv = jnp.maximum(y4[:, 0], y4[:, 1])                          # (h//2, wa, cout)

    o_ref[0] = yv[:, :wh, :]


def conv_relu_pool(x, w, b):
    """Fused Conv2d(3x3, pad=1) + ReLU + MaxPool2d(2).

    x : (B, H, W, Cin) NHWC.   w : (Cout, Cin, 3, 3) torch layout.
    Returns (B, H//2, W//2, Cout) bf16.
    """
    B, H, W, Cin = x.shape
    assert H % 2 == 0 and W % 2 == 0
    Cout = w.shape[0]
    Hh, Wh = H // 2, W // 2
    WA = _round_up(Wh, 16)          # sublane-tile aligned row stride for bf16

    # column-pair unfold: xq[b, i, j', dx*Cin + c] = x_pad[b, i, 2*j' + dx, c]
    xp = jnp.pad(x.astype(jnp.bfloat16), ((0, 0), (1, 1), (1, 1), (0, 0)))
    xq = jnp.concatenate([xp[:, :, dx:dx + W:2, :] for dx in range(4)], axis=-1)
    if WA > Wh:
        xq = jnp.pad(xq, ((0, 0), (0, 0), (0, WA - Wh), (0, 0)))
    xq = xq.reshape(B, (H + 2) * WA, 4 * Cin)
    # TODO(synk): for large resolutions, write this unfolded/padded layout
    # directly from the previous layer's kernel to skip one HBM round trip.

    # fold dx taps into K and even/odd output columns into N.
    wk = jnp.transpose(w.astype(jnp.float32), (2, 3, 1, 0))        # (ky, kx, Cin, Cout)
    zpad = jnp.zeros((3, 1, Cin, Cout), jnp.float32)
    w_even = jnp.concatenate([wk, zpad], axis=1).reshape(3, 4 * Cin, Cout)
    w_odd = jnp.concatenate([zpad, wk], axis=1).reshape(3, 4 * Cin, Cout)
    wf = jnp.concatenate([w_even, w_odd], axis=-1).astype(jnp.bfloat16)
    b2 = jnp.concatenate([b, b]).reshape(1, 2 * Cout).astype(jnp.float32)

    # TODO(synk): row-stripe the grid (2-row halo) for large H*W so per-step
    # operands stay small on v7x's 64 MiB VMEM; process several images per
    # step once H <= 8 to amortize the ~0.35 us per-step overhead.
    return pl.pallas_call(
        functools.partial(_enc_block_kernel, h=H, wa=WA, wh=Wh, cout=Cout),
        out_shape=jax.ShapeDtypeStruct((B, Hh, Wh, Cout), jnp.bfloat16),
        grid=(B,),
        in_specs=[
            pl.BlockSpec((1, (H + 2) * WA, 4 * Cin), lambda bi: (bi, 0, 0)),
            pl.BlockSpec((3, 4 * Cin, 2 * Cout), lambda bi: (0, 0, 0)),
            pl.BlockSpec((1, 2 * Cout), lambda bi: (0, 0)),
        ],
        out_specs=pl.BlockSpec((1, Hh, Wh, Cout), lambda bi: (bi, 0, 0, 0)),
        compiler_params=pltpu.CompilerParams(
            dimension_semantics=("parallel",),
            vmem_limit_bytes=VMEM_LIMIT),
    )(xq, wf, b2)


# ----------------------------------------------------------------------------
# Decoder: row-tiled matmul + bias + activation (ConvTranspose2d k=2, s=2)
# ----------------------------------------------------------------------------
def _mm_bias_act_kernel(x_ref, w_ref, b_ref, o_ref, *, act):
    y = jnp.dot(x_ref[...], w_ref[...], preferred_element_type=jnp.float32)
    y = y + b_ref[...]
    if act == "relu":
        y = jnp.maximum(y, 0.0)
    elif act == "sigmoid":
        y = jax.nn.sigmoid(y)
    o_ref[...] = y.astype(o_ref.dtype)


def mm_bias_act(x2d, w2d, b2d, act, out_dtype, tm_max=512):
    # tm_max=512 keeps v7x (64 MiB VMEM) happy; v6e could raise it to 1024+.
    M, K = x2d.shape
    N = w2d.shape[1]
    tm = min(tm_max, M)
    return pl.pallas_call(
        functools.partial(_mm_bias_act_kernel, act=act),
        out_shape=jax.ShapeDtypeStruct((M, N), out_dtype),
        grid=(pl.cdiv(M, tm),),
        in_specs=[
            pl.BlockSpec((tm, K), lambda i: (i, 0)),
            pl.BlockSpec((K, N), lambda i: (0, 0)),
            pl.BlockSpec((1, N), lambda i: (0, 0)),
        ],
        out_specs=pl.BlockSpec((tm, N), lambda i: (i, 0)),
        compiler_params=pltpu.CompilerParams(
            dimension_semantics=("parallel",),
            vmem_limit_bytes=VMEM_LIMIT),
    )(x2d, w2d, b2d)


def tconv2x2(x, w, b, act, out_dtype):
    """ConvTranspose2d(k=2, stride=2).  x: NHWC, w: (Cin, Cout, 2, 2) torch layout."""
    B, H, W, Cin = x.shape
    Cout = w.shape[1]
    x2d = x.reshape(B * H * W, Cin).astype(jnp.bfloat16)
    # wm[ci, (dy*2+dx)*Cout + co] = w[ci, co, dy, dx]
    wm = jnp.transpose(w, (0, 2, 3, 1)).reshape(Cin, 4 * Cout).astype(jnp.bfloat16)
    bm = jnp.tile(b, 4).reshape(1, 4 * Cout).astype(jnp.float32)
    y2d = mm_bias_act(x2d, wm, bm, act, out_dtype)                # (B*H*W, 4*Cout)
    # TODO(synk): fuse depth-to-space into the kernel (per-dy matmul halves,
    # interleaved out index_map) and give the final Cout=3 layer a lane-dense
    # output; at these small shapes the XLA reshape/transpose below is negligible.
    y = (y2d.reshape(B, H, W, 2, 2, Cout)
            .transpose(0, 1, 3, 2, 4, 5)
            .reshape(B, 2 * H, 2 * W, Cout))
    return y


# ----------------------------------------------------------------------------
# Model
# ----------------------------------------------------------------------------
def init_params(key):
    enc_specs = [(3, 32), (32, 64), (64, 128), (128, 256)]
    dec_specs = [(256, 128), (128, 64), (64, 32), (32, 3)]
    params = {"enc": [], "dec": []}
    for cin, cout in enc_specs:
        key, kw = jax.random.split(key)
        w = jax.random.normal(kw, (cout, cin, 3, 3), jnp.float32) / jnp.sqrt(cin * 9.0)
        b = jnp.full((cout,), 0.01, jnp.float32)
        params["enc"].append((w, b))
    for cin, cout in dec_specs:
        key, kw = jax.random.split(key)
        w = jax.random.normal(kw, (cin, cout, 2, 2), jnp.float32) / jnp.sqrt(cin * 4.0)
        b = jnp.full((cout,), 0.01, jnp.float32)
        params["dec"].append((w, b))
    return params


def denoising_autoencoder(params, x_nchw):
    """Forward pass matching the PyTorch module.  x_nchw: (B, 3, H, W)."""
    x = jnp.transpose(x_nchw, (0, 2, 3, 1)).astype(jnp.bfloat16)   # NCHW -> NHWC
    for w, b in params["enc"]:
        x = conv_relu_pool(x, w, b)
    n_dec = len(params["dec"])
    for i, (w, b) in enumerate(params["dec"]):
        last = (i == n_dec - 1)
        x = tconv2x2(x, w, b,
                     act="sigmoid" if last else "relu",
                     out_dtype=jnp.float32 if last else jnp.bfloat16)
    return jnp.transpose(x, (0, 3, 1, 2))                          # NHWC -> NCHW


# ----------------------------------------------------------------------------
# Pure-JAX f32 reference (kernel path is bf16; compared at tolerance)
# ----------------------------------------------------------------------------
def reference_forward(params, x_nchw):
    hi = jax.lax.Precision.HIGHEST
    x = jnp.transpose(x_nchw, (0, 2, 3, 1)).astype(jnp.float32)
    for w, b in params["enc"]:
        y = jax.lax.conv_general_dilated(
            x, jnp.transpose(w, (2, 3, 1, 0)), (1, 1), "SAME",
            dimension_numbers=("NHWC", "HWIO", "NHWC"), precision=hi)
        y = jnp.maximum(y + b.reshape(1, 1, 1, -1), 0.0)
        x = jax.lax.reduce_window(y, -jnp.inf, jax.lax.max,
                                  (1, 2, 2, 1), (1, 2, 2, 1), "VALID")
    n_dec = len(params["dec"])
    for i, (w, b) in enumerate(params["dec"]):
        B, H, W, _ = x.shape
        Cout = w.shape[1]
        t = jnp.einsum("bhwi,iokl->bhkwlo", x, w, precision=hi)
        y = t.reshape(B, 2 * H, 2 * W, Cout) + b.reshape(1, 1, 1, -1)
        x = jax.nn.sigmoid(y) if i == n_dec - 1 else jnp.maximum(y, 0.0)
    return jnp.transpose(x, (0, 3, 1, 2))


if __name__ == "__main__":
    key = jax.random.PRNGKey(0)
    kp, kx = jax.random.split(key)
    params = init_params(kp)
    # small input consistent with the module: B=2, C=3, H=W=16
    x = jax.random.normal(kx, (2, 3, 16, 16), jnp.float32)

    fwd = jax.jit(denoising_autoencoder)
    y = jax.block_until_ready(fwd(params, x))

    assert y.shape == (2, 3, 16, 16), y.shape
    assert bool(jnp.all(jnp.isfinite(y)))
    assert bool(jnp.all((y >= 0.0) & (y <= 1.0)))  # sigmoid output range

    y_ref = jax.jit(reference_forward)(params, x)
    err = float(jnp.max(jnp.abs(y.astype(jnp.float32) - y_ref)))
    assert err < 5e-2, f"max abs err vs f32 reference: {err}"
    print("KERNEL_OK")
</pallas_src>

<mosaic_0001>
module attributes {stable_mosaic.version = 11 : i64} {
  func.func @_enc_block_kernel(%arg0: i32, %arg1: memref<1x288x12xbf16, #tpu.memory_space<vmem>>, %arg2: memref<3x12x64xbf16, #tpu.memory_space<vmem>>, %arg3: memref<1x64xf32, #tpu.memory_space<vmem>>, %arg4: memref<1x8x8x32xbf16, #tpu.memory_space<vmem>>) attributes {dimension_semantics = [#tpu.dimension_semantics<parallel>], iteration_bounds = array<i64: 2>, scalar_prefetch = 0 : i64, scratch_operands = 0 : i64, tpu.core_type = #tpu.core_type<tc>, window_params = [{transform_indices = @transform_0, window_bounds = array<i64: 1, 288, 12>}, {pipeline_mode = #tpu.pipeline_mode<synchronous>, transform_indices = @transform_1, window_bounds = array<i64: 3, 12, 64>}, {pipeline_mode = #tpu.pipeline_mode<synchronous>, transform_indices = @transform_2, window_bounds = array<i64: 1, 64>}, {transform_indices = @transform_3, window_bounds = array<i64: 1, 8, 8, 32>}]} {
    %c0 = arith.constant 0 : index
    %c0_0 = arith.constant 0 : index
    %c0_1 = arith.constant 0 : index
    %0 = vector.load %arg1[%c0, %c0_0, %c0_1] : memref<1x288x12xbf16, #tpu.memory_space<vmem>>, vector<1x256x12xbf16>
    %1 = vector.shape_cast %0 : vector<1x256x12xbf16> to vector<256x12xbf16>
    %c0_2 = arith.constant 0 : index
    %c0_3 = arith.constant 0 : index
    %c0_4 = arith.constant 0 : index
    %2 = vector.load %arg2[%c0_2, %c0_3, %c0_4] : memref<3x12x64xbf16, #tpu.memory_space<vmem>>, vector<1x12x64xbf16>
    %3 = vector.shape_cast %2 : vector<1x12x64xbf16> to vector<12x64xbf16>
    %cst = arith.constant dense<0.000000e+00> : vector<256x64xf32>
    %4 = tpu.matmul %1, %3, %cst {dimension_numbers = #tpu.dot_dimension_numbers<[1], [0], [0], [1], [0, 0, 1, 1], [], []>} : vector<256x12xbf16>, vector<12x64xbf16>, vector<256x64xf32> -> vector<256x64xf32>
    %c0_5 = arith.constant 0 : index
    %c16 = arith.constant 16 : index
    %c0_6 = arith.constant 0 : index
    %5 = vector.load %arg1[%c0_5, %c16, %c0_6] : memref<1x288x12xbf16, #tpu.memory_space<vmem>>, vector<1x256x12xbf16>
    %6 = vector.shape_cast %5 : vector<1x256x12xbf16> to vector<256x12xbf16>
    %c1 = arith.constant 1 : index
    %c0_7 = arith.constant 0 : index
    %c0_8 = arith.constant 0 : index
    %7 = vector.load %arg2[%c1, %c0_7, %c0_8] : memref<3x12x64xbf16, #tpu.memory_space<vmem>>, vector<1x12x64xbf16>
    %8 = vector.shape_cast %7 : vector<1x12x64xbf16> to vector<12x64xbf16>
    %cst_9 = arith.constant dense<0.000000e+00> : vector<256x64xf32>
    %9 = tpu.matmul %6, %8, %cst_9 {dimension_numbers = #tpu.dot_dimension_numbers<[1], [0], [0], [1], [0, 0, 1, 1], [], []>} : vector<256x12xbf16>, vector<12x64xbf16>, vector<256x64xf32> -> vector<256x64xf32>
    %10 = arith.addf %4, %9 : vector<256x64xf32>
    %c0_10 = arith.constant 0 : index
    %c32 = arith.constant 32 : index
    %c0_11 = arith.constant 0 : index
    %11 = vector.load %arg1[%c0_10, %c32, %c0_11] : memref<1x288x12xbf16, #tpu.memory_space<vmem>>, vector<1x256x12xbf16>
    %12 = vector.shape_cast %11 : vector<1x256x12xbf16> to vector<256x12xbf16>
    %c2 = arith.constant 2 : index
    %c0_12 = arith.constant 0 : index
    %c0_13 = arith.constant 0 : index
    %13 = vector.load %arg2[%c2, %c0_12, %c0_13] : memref<3x12x64xbf16, #tpu.memory_space<vmem>>, vector<1x12x64xbf16>
    %14 = vector.shape_cast %13 : vector<1x12x64xbf16> to vector<12x64xbf16>
    %cst_14 = arith.constant dense<0.000000e+00> : vector<256x64xf32>
    %15 = tpu.matmul %12, %14, %cst_14 {dimension_numbers = #tpu.dot_dimension_numbers<[1], [0], [0], [1], [0, 0, 1, 1], [], []>} : vector<256x12xbf16>, vector<12x64xbf16>, vector<256x64xf32> -> vector<256x64xf32>
    %16 = arith.addf %10, %15 : vector<256x64xf32>
    %c0_15 = arith.constant 0 : index
    %c0_16 = arith.constant 0 : index
    %17 = vector.load %arg3[%c0_15, %c0_16] : memref<1x64xf32, #tpu.memory_space<vmem>>, vector<1x64xf32>
    %18 = vector.broadcast %17 : vector<1x64xf32> to vector<256x64xf32>
    %19 = arith.addf %16, %18 : vector<256x64xf32>
    %cst_17 = arith.constant 0.000000e+00 : f32
    %20 = vector.broadcast %cst_17 : f32 to vector<256x64xf32>
    %21 = arith.maximumf %19, %20 : vector<256x64xf32>
    %22 = arith.truncf %21 : vector<256x64xf32> to vector<256x64xbf16>
    %23 = vector.extract_strided_slice %22 {offsets = [0, 0], sizes = [256, 32], strides = [1, 1]} : vector<256x64xbf16> to vector<256x32xbf16>
    %24 = vector.extract_strided_slice %22 {offsets = [0, 32], sizes = [256, 32], strides = [1, 1]} : vector<256x64xbf16> to vector<256x32xbf16>
    %25 = arith.maximumf %23, %24 : vector<256x32xbf16>
    %26 = vector.shape_cast %25 : vector<256x32xbf16> to vector<8x2x16x32xbf16>
    %27 = vector.extract_strided_slice %26 {offsets = [0, 0, 0, 0], sizes = [8, 1, 16, 32], strides = [1, 1, 1, 1]} : vector<8x2x16x32xbf16> to vector<8x1x16x32xbf16>
    %28 = vector.shape_cast %27 : vector<8x1x16x32xbf16> to vector<8x16x32xbf16>
    %29 = vector.extract_strided_slice %26 {offsets = [0, 1, 0, 0], sizes = [8, 1, 16, 32], strides = [1, 1, 1, 1]} : vector<8x2x16x32xbf16> to vector<8x1x16x32xbf16>
    %30 = vector.shape_cast %29 : vector<8x1x16x32xbf16> to vector<8x16x32xbf16>
    %31 = arith.maximumf %28, %30 : vector<8x16x32xbf16>
    %32 = vector.extract_strided_slice %31 {offsets = [0, 0, 0], sizes = [8, 8, 32], strides = [1, 1, 1]} : vector<8x16x32xbf16> to vector<8x8x32xbf16>
    %c0_18 = arith.constant 0 : index
    %c0_19 = arith.constant 0 : index
    %c0_20 = arith.constant 0 : index
    %c0_21 = arith.constant 0 : index
    %33 = vector.load %arg4[%c0_18, %c0_19, %c0_20, %c0_21] : memref<1x8x8x32xbf16, #tpu.memory_space<vmem>>, vector<1x8x8x32xbf16>
    %34 = vector.shape_cast %33 : vector<1x8x8x32xbf16> to vector<8x8x32xbf16>
    %35 = vector.shape_cast %32 : vector<8x8x32xbf16> to vector<1x8x8x32xbf16>
    tpu.vector_store %arg4[%c0_18, %c0_19, %c0_20, %c0_21], %35 {strides = array<i32>} : memref<1x8x8x32xbf16, #tpu.memory_space<vmem>>, vector<1x8x8x32xbf16>,
    return
  }
  func.func @transform_0(%arg0: i32) -> (i32, i32, i32) {
    %c0_i32 = arith.constant 0 : i32
    %c0_i32_0 = arith.constant 0 : i32
    %c0_i32_1 = arith.constant 0 : i32
    return %arg0, %c0_i32, %c0_i32_0 : i32, i32, i32
  }
  func.func @transform_1(%arg0: i32) -> (i32, i32, i32) {
    %c0_i32 = arith.constant 0 : i32
    %c0_i32_0 = arith.constant 0 : i32
    %c0_i32_1 = arith.constant 0 : i32
    %c0_i32_2 = arith.constant 0 : i32
    return %c0_i32, %c0_i32_0, %c0_i32_1 : i32, i32, i32
  }
  func.func @transform_2(%arg0: i32) -> (i32, i32) {
    %c0_i32 = arith.constant 0 : i32
    %c0_i32_0 = arith.constant 0 : i32
    %c0_i32_1 = arith.constant 0 : i32
    return %c0_i32, %c0_i32_0 : i32, i32
  }
  func.func @transform_3(%arg0: i32) -> (i32, i32, i32, i32) {
    %c0_i32 = arith.constant 0 : i32
    %c0_i32_0 = arith.constant 0 : i32
    %c0_i32_1 = arith.constant 0 : i32
    %c0_i32_2 = arith.constant 0 : i32
    return %arg0, %c0_i32, %c0_i32_0, %c0_i32_1 : i32, i32, i32, i32
  }
}

module attributes {stable_mosaic.version = 11 : i64} {
  func.func @_enc_block_kernel(%arg0: i32, %arg1: memref<1x160x128xbf16, #tpu.memory_space<vmem>>, %arg2: memref<3x128x128xbf16, #tpu.memory_space<vmem>>, %arg3: memref<1x128xf32, #tpu.memory_space<vmem>>, %arg4: memref<1x4x4x64xbf16, #tpu.memory_space<vmem>>) attributes {dimension_semantics = [#tpu.dimension_semantics<parallel>], iteration_bounds = array<i64: 2>, scalar_prefetch = 0 : i64, scratch_operands = 0 : i64, tpu.core_type = #tpu.core_type<tc>, window_params = [{transform_indices = @transform_0, window_bounds = array<i64: 1, 160, 128>}, {pipeline_mode = #tpu.pipeline_mode<synchronous>, transform_indices = @transform_1, window_bounds = array<i64: 3, 128, 128>}, {pipeline_mode = #tpu.pipeline_mode<synchronous>, transform_indices = @transform_2, window_bounds = array<i64: 1, 128>}, {transform_indices = @transform_3, window_bounds = array<i64: 1, 4, 4, 64>}]} {
    %c0 = arith.constant 0 : index
    %c0_0 = arith.constant 0 : index
    %c0_1 = arith.constant 0 : index
    %0 = vector.load %arg1[%c0, %c0_0, %c0_1] : memref<1x160x128xbf16, #tpu.memory_space<vmem>>, vector<1x128x128xbf16>
    %1 = vector.shape_cast %0 : vector<1x128x128xbf16> to vector<128x128xbf16>
    %c0_2 = arith.constant 0 : index
    %c0_3 = arith.constant 0 : index
    %c0_4 = arith.constant 0 : index
    %2 = vector.load %arg2[%c0_2, %c0_3, %c0_4] : memref<3x128x128xbf16, #tpu.memory_space<vmem>>, vector<1x128x128xbf16>
    %3 = vector.shape_cast %2 : vector<1x128x128xbf16> to vector<128x128xbf16>
    %cst = arith.constant dense<0.000000e+00> : vector<128x128xf32>
    %4 = tpu.matmul %1, %3, %cst {dimension_numbers = #tpu.dot_dimension_numbers<[1], [0], [0], [1], [0, 0, 1, 1], [], []>} : vector<128x128xbf16>, vector<128x128xbf16>, vector<128x128xf32> -> vector<128x128xf32>
    %c0_5 = arith.constant 0 : index
    %c16 = arith.constant 16 : index
    %c0_6 = arith.constant 0 : index
    %5 = vector.load %arg1[%c0_5, %c16, %c0_6] : memref<1x160x128xbf16, #tpu.memory_space<vmem>>, vector<1x128x128xbf16>
    %6 = vector.shape_cast %5 : vector<1x128x128xbf16> to vector<128x128xbf16>
    %c1 = arith.constant 1 : index
    %c0_7 = arith.constant 0 : index
    %c0_8 = arith.constant 0 : index
    %7 = vector.load %arg2[%c1, %c0_7, %c0_8] : memref<3x128x128xbf16, #tpu.memory_space<vmem>>, vector<1x128x128xbf16>
    %8 = vector.shape_cast %7 : vector<1x128x128xbf16> to vector<128x128xbf16>
    %cst_9 = arith.constant dense<0.000000e+00> : vector<128x128xf32>
    %9 = tpu.matmul %6, %8, %cst_9 {dimension_numbers = #tpu.dot_dimension_numbers<[1], [0], [0], [1], [0, 0, 1, 1], [], []>} : vector<128x128xbf16>, vector<128x128xbf16>, vector<128x128xf32> -> vector<128x128xf32>
    %10 = arith.addf %4, %9 : vector<128x128xf32>
    %c0_10 = arith.constant 0 : index
    %c32 = arith.constant 32 : index
    %c0_11 = arith.constant 0 : index
    %11 = vector.load %arg1[%c0_10, %c32, %c0_11] : memref<1x160x128xbf16, #tpu.memory_space<vmem>>, vector<1x128x128xbf16>
    %12 = vector.shape_cast %11 : vector<1x128x128xbf16> to vector<128x128xbf16>
    %c2 = arith.constant 2 : index
    %c0_12 = arith.constant 0 : index
    %c0_13 = arith.constant 0 : index
    %13 = vector.load %arg2[%c2, %c0_12, %c0_13] : memref<3x128x128xbf16, #tpu.memory_space<vmem>>, vector<1x128x128xbf16>
    %14 = vector.shape_cast %13 : vector<1x128x128xbf16> to vector<128x128xbf16>
    %cst_14 = arith.constant dense<0.000000e+00> : vector<128x128xf32>
    %15 = tpu.matmul %12, %14, %cst_14 {dimension_numbers = #tpu.dot_dimension_numbers<[1], [0], [0], [1], [0, 0, 1, 1], [], []>} : vector<128x128xbf16>, vector<128x128xbf16>, vector<128x128xf32> -> vector<128x128xf32>
    %16 = arith.addf %10, %15 : vector<128x128xf32>
    %c0_15 = arith.constant 0 : index
    %c0_16 = arith.constant 0 : index
    %17 = vector.load %arg3[%c0_15, %c0_16] : memref<1x128xf32, #tpu.memory_space<vmem>>, vector<1x128xf32>
    %18 = vector.broadcast %17 : vector<1x128xf32> to vector<128x128xf32>
    %19 = arith.addf %16, %18 : vector<128x128xf32>
    %cst_17 = arith.constant 0.000000e+00 : f32
    %20 = vector.broadcast %cst_17 : f32 to vector<128x128xf32>
    %21 = arith.maximumf %19, %20 : vector<128x128xf32>
    %22 = arith.truncf %21 : vector<128x128xf32> to vector<128x128xbf16>
    %23 = vector.extract_strided_slice %22 {offsets = [0, 0], sizes = [128, 64], strides = [1, 1]} : vector<128x128xbf16> to vector<128x64xbf16>
    %24 = vector.extract_strided_slice %22 {offsets = [0, 64], sizes = [128, 64], strides = [1, 1]} : vector<128x128xbf16> to vector<128x64xbf16>
    %25 = arith.maximumf %23, %24 : vector<128x64xbf16>
    %26 = vector.shape_cast %25 : vector<128x64xbf16> to vector<4x2x16x64xbf16>
    %27 = vector.extract_strided_slice %26 {offsets = [0, 0, 0, 0], sizes = [4, 1, 16, 64], strides = [1, 1, 1, 1]} : vector<4x2x16x64xbf16> to vector<4x1x16x64xbf16>
    %28 = vector.shape_cast %27 : vector<4x1x16x64xbf16> to vector<4x16x64xbf16>
    %29 = vector.extract_strided_slice %26 {offsets = [0, 1, 0, 0], sizes = [4, 1, 16, 64], strides = [1, 1, 1, 1]} : vector<4x2x16x64xbf16> to vector<4x1x16x64xbf16>
    %30 = vector.shape_cast %29 : vector<4x1x16x64xbf16> to vector<4x16x64xbf16>
    %31 = arith.maximumf %28, %30 : vector<4x16x64xbf16>
    %32 = vector.extract_strided_slice %31 {offsets = [0, 0, 0], sizes = [4, 4, 64], strides = [1, 1, 1]} : vector<4x16x64xbf16> to vector<4x4x64xbf16>
    %c0_18 = arith.constant 0 : index
    %c0_19 = arith.constant 0 : index
    %c0_20 = arith.constant 0 : index
    %c0_21 = arith.constant 0 : index
    %33 = vector.load %arg4[%c0_18, %c0_19, %c0_20, %c0_21] : memref<1x4x4x64xbf16, #tpu.memory_space<vmem>>, vector<1x4x4x64xbf16>
    %34 = vector.shape_cast %33 : vector<1x4x4x64xbf16> to vector<4x4x64xbf16>
    %35 = vector.shape_cast %32 : vector<4x4x64xbf16> to vector<1x4x4x64xbf16>
    tpu.vector_store %arg4[%c0_18, %c0_19, %c0_20, %c0_21], %35 {strides = array<i32>} : memref<1x4x4x64xbf16, #tpu.memory_space<vmem>>, vector<1x4x4x64xbf16>,
    return
  }
  func.func @transform_0(%arg0: i32) -> (i32, i32, i32) {
    %c0_i32 = arith.constant 0 : i32
    %c0_i32_0 = arith.constant 0 : i32
    %c0_i32_1 = arith.constant 0 : i32
    return %arg0, %c0_i32, %c0_i32_0 : i32, i32, i32
  }
  func.func @transform_1(%arg0: i32) -> (i32, i32, i32) {
    %c0_i32 = arith.constant 0 : i32
    %c0_i32_0 = arith.constant 0 : i32
    %c0_i32_1 = arith.constant 0 : i32
    %c0_i32_2 = arith.constant 0 : i32
    return %c0_i32, %c0_i32_0, %c0_i32_1 : i32, i32, i32
  }
  func.func @transform_2(%arg0: i32) -> (i32, i32) {
    %c0_i32 = arith.constant 0 : i32
    %c0_i32_0 = arith.constant 0 : i32
    %c0_i32_1 = arith.constant 0 : i32
    return %c0_i32, %c0_i32_0 : i32, i32
  }
  func.func @transform_3(%arg0: i32) -> (i32, i32, i32, i32) {
    %c0_i32 = arith.constant 0 : i32
    %c0_i32_0 = arith.constant 0 : i32
    %c0_i32_1 = arith.constant 0 : i32
    %c0_i32_2 = arith.constant 0 : i32
    return %arg0, %c0_i32, %c0_i32_0, %c0_i32_1 : i32, i32, i32, i32
  }
}

module attributes {stable_mosaic.version = 11 : i64} {
  func.func @_enc_block_kernel(%arg0: i32, %arg1: memref<1x96x256xbf16, #tpu.memory_space<vmem>>, %arg2: memref<3x256x256xbf16, #tpu.memory_space<vmem>>, %arg3: memref<1x256xf32, #tpu.memory_space<vmem>>, %arg4: memref<1x2x2x128xbf16, #tpu.memory_space<vmem>>) attributes {dimension_semantics = [#tpu.dimension_semantics<parallel>], iteration_bounds = array<i64: 2>, scalar_prefetch = 0 : i64, scratch_operands = 0 : i64, tpu.core_type = #tpu.core_type<tc>, window_params = [{transform_indices = @transform_0, window_bounds = array<i64: 1, 96, 256>}, {pipeline_mode = #tpu.pipeline_mode<synchronous>, transform_indices = @transform_1, window_bounds = array<i64: 3, 256, 256>}, {pipeline_mode = #tpu.pipeline_mode<synchronous>, transform_indices = @transform_2, window_bounds = array<i64: 1, 256>}, {transform_indices = @transform_3, window_bounds = array<i64: 1, 2, 2, 128>}]} {
    %c0 = arith.constant 0 : index
    %c0_0 = arith.constant 0 : index
    %c0_1 = arith.constant 0 : index
    %0 = vector.load %arg1[%c0, %c0_0, %c0_1] : memref<1x96x256xbf16, #tpu.memory_space<vmem>>, vector<1x64x256xbf16>
    %1 = vector.shape_cast %0 : vector<1x64x256xbf16> to vector<64x256xbf16>
    %c0_2 = arith.constant 0 : index
    %c0_3 = arith.constant 0 : index
    %c0_4 = arith.constant 0 : index
    %2 = vector.load %arg2[%c0_2, %c0_3, %c0_4] : memref<3x256x256xbf16, #tpu.memory_space<vmem>>, vector<1x256x256xbf16>
    %3 = vector.shape_cast %2 : vector<1x256x256xbf16> to vector<256x256xbf16>
    %cst = arith.constant dense<0.000000e+00> : vector<64x256xf32>
    %4 = tpu.matmul %1, %3, %cst {dimension_numbers = #tpu.dot_dimension_numbers<[1], [0], [0], [1], [0, 0, 1, 1], [], []>} : vector<64x256xbf16>, vector<256x256xbf16>, vector<64x256xf32> -> vector<64x256xf32>
    %c0_5 = arith.constant 0 : index
    %c16 = arith.constant 16 : index
    %c0_6 = arith.constant 0 : index
    %5 = vector.load %arg1[%c0_5, %c16, %c0_6] : memref<1x96x256xbf16, #tpu.memory_space<vmem>>, vector<1x64x256xbf16>
    %6 = vector.shape_cast %5 : vector<1x64x256xbf16> to vector<64x256xbf16>
    %c1 = arith.constant 1 : index
    %c0_7 = arith.constant 0 : index
    %c0_8 = arith.constant 0 : index
    %7 = vector.load %arg2[%c1, %c0_7, %c0_8] : memref<3x256x256xbf16, #tpu.memory_space<vmem>>, vector<1x256x256xbf16>
    %8 = vector.shape_cast %7 : vector<1x256x256xbf16> to vector<256x256xbf16>
    %cst_9 = arith.constant dense<0.000000e+00> : vector<64x256xf32>
    %9 = tpu.matmul %6, %8, %cst_9 {dimension_numbers = #tpu.dot_dimension_numbers<[1], [0], [0], [1], [0, 0, 1, 1], [], []>} : vector<64x256xbf16>, vector<256x256xbf16>, vector<64x256xf32> -> vector<64x256xf32>
    %10 = arith.addf %4, %9 : vector<64x256xf32>
    %c0_10 = arith.constant 0 : index
    %c32 = arith.constant 32 : index
    %c0_11 = arith.constant 0 : index
    %11 = vector.load %arg1[%c0_10, %c32, %c0_11] : memref<1x96x256xbf16, #tpu.memory_space<vmem>>, vector<1x64x256xbf16>
    %12 = vector.shape_cast %11 : vector<1x64x256xbf16> to vector<64x256xbf16>
    %c2 = arith.constant 2 : index
    %c0_12 = arith.constant 0 : index
    %c0_13 = arith.constant 0 : index
    %13 = vector.load %arg2[%c2, %c0_12, %c0_13] : memref<3x256x256xbf16, #tpu.memory_space<vmem>>, vector<1x256x256xbf16>
    %14 = vector.shape_cast %13 : vector<1x256x256xbf16> to vector<256x256xbf16>
    %cst_14 = arith.constant dense<0.000000e+00> : vector<64x256xf32>
    %15 = tpu.matmul %12, %14, %cst_14 {dimension_numbers = #tpu.dot_dimension_numbers<[1], [0], [0], [1], [0, 0, 1, 1], [], []>} : vector<64x256xbf16>, vector<256x256xbf16>, vector<64x256xf32> -> vector<64x256xf32>
    %16 = arith.addf %10, %15 : vector<64x256xf32>
    %c0_15 = arith.constant 0 : index
    %c0_16 = arith.constant 0 : index
    %17 = vector.load %arg3[%c0_15, %c0_16] : memref<1x256xf32, #tpu.memory_space<vmem>>, vector<1x256xf32>
    %18 = vector.broadcast %17 : vector<1x256xf32> to vector<64x256xf32>
    %19 = arith.addf %16, %18 : vector<64x256xf32>
    %cst_17 = arith.constant 0.000000e+00 : f32
    %20 = vector.broadcast %cst_17 : f32 to vector<64x256xf32>
    %21 = arith.maximumf %19, %20 : vector<64x256xf32>
    %22 = arith.truncf %21 : vector<64x256xf32> to vector<64x256xbf16>
    %23 = vector.extract_strided_slice %22 {offsets = [0, 0], sizes = [64, 128], strides = [1, 1]} : vector<64x256xbf16> to vector<64x128xbf16>
    %24 = vector.extract_strided_slice %22 {offsets = [0, 128], sizes = [64, 128], strides = [1, 1]} : vector<64x256xbf16> to vector<64x128xbf16>
    %25 = arith.maximumf %23, %24 : vector<64x128xbf16>
    %26 = vector.shape_cast %25 : vector<64x128xbf16> to vector<2x2x16x128xbf16>
    %27 = vector.extract_strided_slice %26 {offsets = [0, 0, 0, 0], sizes = [2, 1, 16, 128], strides = [1, 1, 1, 1]} : vector<2x2x16x128xbf16> to vector<2x1x16x128xbf16>
    %28 = vector.shape_cast %27 : vector<2x1x16x128xbf16> to vector<2x16x128xbf16>
    %29 = vector.extract_strided_slice %26 {offsets = [0, 1, 0, 0], sizes = [2, 1, 16, 128], strides = [1, 1, 1, 1]} : vector<2x2x16x128xbf16> to vector<2x1x16x128xbf16>
    %30 = vector.shape_cast %29 : vector<2x1x16x128xbf16> to vector<2x16x128xbf16>
    %31 = arith.maximumf %28, %30 : vector<2x16x128xbf16>
    %32 = vector.extract_strided_slice %31 {offsets = [0, 0, 0], sizes = [2, 2, 128], strides = [1, 1, 1]} : vector<2x16x128xbf16> to vector<2x2x128xbf16>
    %c0_18 = arith.constant 0 : index
    %c0_19 = arith.constant 0 : index
    %c0_20 = arith.constant 0 : index
    %c0_21 = arith.constant 0 : index
    %33 = vector.load %arg4[%c0_18, %c0_19, %c0_20, %c0_21] : memref<1x2x2x128xbf16, #tpu.memory_space<vmem>>, vector<1x2x2x128xbf16>
    %34 = vector.shape_cast %33 : vector<1x2x2x128xbf16> to vector<2x2x128xbf16>
    %35 = vector.shape_cast %32 : vector<2x2x128xbf16> to vector<1x2x2x128xbf16>
    tpu.vector_store %arg4[%c0_18, %c0_19, %c0_20, %c0_21], %35 {strides = array<i32>} : memref<1x2x2x128xbf16, #tpu.memory_space<vmem>>, vector<1x2x2x128xbf16>,
    return
  }
  func.func @transform_0(%arg0: i32) -> (i32, i32, i32) {
    %c0_i32 = arith.constant 0 : i32
    %c0_i32_0 = arith.constant 0 : i32
    %c0_i32_1 = arith.constant 0 : i32
    return %arg0, %c0_i32, %c0_i32_0 : i32, i32, i32
  }
  func.func @transform_1(%arg0: i32) -> (i32, i32, i32) {
    %c0_i32 = arith.constant 0 : i32
    %c0_i32_0 = arith.constant 0 : i32
    %c0_i32_1 = arith.constant 0 : i32
    %c0_i32_2 = arith.constant 0 : i32
    return %c0_i32, %c0_i32_0, %c0_i32_1 : i32, i32, i32
  }
  func.func @transform_2(%arg0: i32) -> (i32, i32) {
    %c0_i32 = arith.constant 0 : i32
    %c0_i32_0 = arith.constant 0 : i32
    %c0_i32_1 = arith.constant 0 : i32
    return %c0_i32, %c0_i32_0 : i32, i32
  }
  func.func @transform_3(%arg0: i32) -> (i32, i32, i32, i32) {
    %c0_i32 = arith.constant 0 : i32
    %c0_i32_0 = arith.constant 0 : i32
    %c0_i32_1 = arith.constant 0 : i32
    %c0_i32_2 = arith.constant 0 : i32
    return %arg0, %c0_i32, %c0_i32_0, %c0_i32_1 : i32, i32, i32, i32
  }
}

module attributes {stable_mosaic.version = 11 : i64} {
  func.func @_enc_block_kernel(%arg0: i32, %arg1: memref<1x64x512xbf16, #tpu.memory_space<vmem>>, %arg2: memref<3x512x512xbf16, #tpu.memory_space<vmem>>, %arg3: memref<1x512xf32, #tpu.memory_space<vmem>>, %arg4: memref<1x1x1x256xbf16, #tpu.memory_space<vmem>>) attributes {dimension_semantics = [#tpu.dimension_semantics<parallel>], iteration_bounds = array<i64: 2>, scalar_prefetch = 0 : i64, scratch_operands = 0 : i64, tpu.core_type = #tpu.core_type<tc>, window_params = [{transform_indices = @transform_0, window_bounds = array<i64: 1, 64, 512>}, {pipeline_mode = #tpu.pipeline_mode<synchronous>, transform_indices = @transform_1, window_bounds = array<i64: 3, 512, 512>}, {pipeline_mode = #tpu.pipeline_mode<synchronous>, transform_indices = @transform_2, window_bounds = array<i64: 1, 512>}, {transform_indices = @transform_3, window_bounds = array<i64: 1, 1, 1, 256>}]} {
    %c0 = arith.constant 0 : index
    %c0_0 = arith.constant 0 : index
    %c0_1 = arith.constant 0 : index
    %0 = vector.load %arg1[%c0, %c0_0, %c0_1] : memref<1x64x512xbf16, #tpu.memory_space<vmem>>, vector<1x32x512xbf16>
    %1 = vector.shape_cast %0 : vector<1x32x512xbf16> to vector<32x512xbf16>
    %c0_2 = arith.constant 0 : index
    %c0_3 = arith.constant 0 : index
    %c0_4 = arith.constant 0 : index
    %2 = vector.load %arg2[%c0_2, %c0_3, %c0_4] : memref<3x512x512xbf16, #tpu.memory_space<vmem>>, vector<1x512x512xbf16>
    %3 = vector.shape_cast %2 : vector<1x512x512xbf16> to vector<512x512xbf16>
    %cst = arith.constant dense<0.000000e+00> : vector<32x512xf32>
    %4 = tpu.matmul %1, %3, %cst {dimension_numbers = #tpu.dot_dimension_numbers<[1], [0], [0], [1], [0, 0, 1, 1], [], []>} : vector<32x512xbf16>, vector<512x512xbf16>, vector<32x512xf32> -> vector<32x512xf32>
    %c0_5 = arith.constant 0 : index
    %c16 = arith.constant 16 : index
    %c0_6 = arith.constant 0 : index
    %5 = vector.load %arg1[%c0_5, %c16, %c0_6] : memref<1x64x512xbf16, #tpu.memory_space<vmem>>, vector<1x32x512xbf16>
    %6 = vector.shape_cast %5 : vector<1x32x512xbf16> to vector<32x512xbf16>
    %c1 = arith.constant 1 : index
    %c0_7 = arith.constant 0 : index
    %c0_8 = arith.constant 0 : index
    %7 = vector.load %arg2[%c1, %c0_7, %c0_8] : memref<3x512x512xbf16, #tpu.memory_space<vmem>>, vector<1x512x512xbf16>
    %8 = vector.shape_cast %7 : vector<1x512x512xbf16> to vector<512x512xbf16>
    %cst_9 = arith.constant dense<0.000000e+00> : vector<32x512xf32>
    %9 = tpu.matmul %6, %8, %cst_9 {dimension_numbers = #tpu.dot_dimension_numbers<[1], [0], [0], [1], [0, 0, 1, 1], [], []>} : vector<32x512xbf16>, vector<512x512xbf16>, vector<32x512xf32> -> vector<32x512xf32>
    %10 = arith.addf %4, %9 : vector<32x512xf32>
    %c0_10 = arith.constant 0 : index
    %c32 = arith.constant 32 : index
    %c0_11 = arith.constant 0 : index
    %11 = vector.load %arg1[%c0_10, %c32, %c0_11] : memref<1x64x512xbf16, #tpu.memory_space<vmem>>, vector<1x32x512xbf16>
    %12 = vector.shape_cast %11 : vector<1x32x512xbf16> to vector<32x512xbf16>
    %c2 = arith.constant 2 : index
    %c0_12 = arith.constant 0 : index
    %c0_13 = arith.constant 0 : index
    %13 = vector.load %arg2[%c2, %c0_12, %c0_13] : memref<3x512x512xbf16, #tpu.memory_space<vmem>>, vector<1x512x512xbf16>
    %14 = vector.shape_cast %13 : vector<1x512x512xbf16> to vector<512x512xbf16>
    %cst_14 = arith.constant dense<0.000000e+00> : vector<32x512xf32>
    %15 = tpu.matmul %12, %14, %cst_14 {dimension_numbers = #tpu.dot_dimension_numbers<[1], [0], [0], [1], [0, 0, 1, 1], [], []>} : vector<32x512xbf16>, vector<512x512xbf16>, vector<32x512xf32> -> vector<32x512xf32>
    %16 = arith.addf %10, %15 : vector<32x512xf32>
    %c0_15 = arith.constant 0 : index
    %c0_16 = arith.constant 0 : index
    %17 = vector.load %arg3[%c0_15, %c0_16] : memref<1x512xf32, #tpu.memory_space<vmem>>, vector<1x512xf32>
    %18 = vector.broadcast %17 : vector<1x512xf32> to vector<32x512xf32>
    %19 = arith.addf %16, %18 : vector<32x512xf32>
    %cst_17 = arith.constant 0.000000e+00 : f32
    %20 = vector.broadcast %cst_17 : f32 to vector<32x512xf32>
    %21 = arith.maximumf %19, %20 : vector<32x512xf32>
    %22 = arith.truncf %21 : vector<32x512xf32> to vector<32x512xbf16>
    %23 = vector.extract_strided_slice %22 {offsets = [0, 0], sizes = [32, 256], strides = [1, 1]} : vector<32x512xbf16> to vector<32x256xbf16>
    %24 = vector.extract_strided_slice %22 {offsets = [0, 256], sizes = [32, 256], strides = [1, 1]} : vector<32x512xbf16> to vector<32x256xbf16>
    %25 = arith.maximumf %23, %24 : vector<32x256xbf16>
    %26 = vector.shape_cast %25 : vector<32x256xbf16> to vector<1x2x16x256xbf16>
    %27 = vector.extract_strided_slice %26 {offsets = [0, 0, 0, 0], sizes = [1, 1, 16, 256], strides = [1, 1, 1, 1]} : vector<1x2x16x256xbf16> to vector<1x1x16x256xbf16>
    %28 = vector.shape_cast %27 : vector<1x1x16x256xbf16> to vector<1x16x256xbf16>
    %29 = vector.extract_strided_slice %26 {offsets = [0, 1, 0, 0], sizes = [1, 1, 16, 256], strides = [1, 1, 1, 1]} : vector<1x2x16x256xbf16> to vector<1x1x16x256xbf16>
    %30 = vector.shape_cast %29 : vector<1x1x16x256xbf16> to vector<1x16x256xbf16>
    %31 = arith.maximumf %28, %30 : vector<1x16x256xbf16>
    %32 = vector.extract_strided_slice %31 {offsets = [0, 0, 0], sizes = [1, 1, 256], strides = [1, 1, 1]} : vector<1x16x256xbf16> to vector<1x1x256xbf16>
    %c0_18 = arith.constant 0 : index
    %c0_19 = arith.constant 0 : index
    %c0_20 = arith.constant 0 : index
    %c0_21 = arith.constant 0 : index
    %33 = vector.load %arg4[%c0_18, %c0_19, %c0_20, %c0_21] : memref<1x1x1x256xbf16, #tpu.memory_space<vmem>>, vector<1x1x1x256xbf16>
    %34 = vector.shape_cast %33 : vector<1x1x1x256xbf16> to vector<1x1x256xbf16>
    %35 = vector.shape_cast %32 : vector<1x1x256xbf16> to vector<1x1x1x256xbf16>
    tpu.vector_store %arg4[%c0_18, %c0_19, %c0_20, %c0_21], %35 {strides = array<i32>} : memref<1x1x1x256xbf16, #tpu.memory_space<vmem>>, vector<1x1x1x256xbf16>,
    return
  }
  func.func @transform_0(%arg0: i32) -> (i32, i32, i32) {
    %c0_i32 = arith.constant 0 : i32
    %c0_i32_0 = arith.constant 0 : i32
    %c0_i32_1 = arith.constant 0 : i32
    return %arg0, %c0_i32, %c0_i32_0 : i32, i32, i32
  }
  func.func @transform_1(%arg0: i32) -> (i32, i32, i32) {
    %c0_i32 = arith.constant 0 : i32
    %c0_i32_0 = arith.constant 0 : i32
    %c0_i32_1 = arith.constant 0 : i32
    %c0_i32_2 = arith.constant 0 : i32
    return %c0_i32, %c0_i32_0, %c0_i32_1 : i32, i32, i32
  }
  func.func @transform_2(%arg0: i32) -> (i32, i32) {
    %c0_i32 = arith.constant 0 : i32
    %c0_i32_0 = arith.constant 0 : i32
    %c0_i32_1 = arith.constant 0 : i32
    return %c0_i32, %c0_i32_0 : i32, i32
  }
  func.func @transform_3(%arg0: i32) -> (i32, i32, i32, i32) {
    %c0_i32 = arith.constant 0 : i32
    %c0_i32_0 = arith.constant 0 : i32
    %c0_i32_1 = arith.constant 0 : i32
    %c0_i32_2 = arith.constant 0 : i32
    return %arg0, %c0_i32, %c0_i32_0, %c0_i32_1 : i32, i32, i32, i32
  }
}

module attributes {stable_mosaic.version = 11 : i64} {
  func.func @_mm_bias_act_kernel(%arg0: i32, %arg1: memref<2x256xbf16, #tpu.memory_space<vmem>>, %arg2: memref<256x512xbf16, #tpu.memory_space<vmem>>, %arg3: memref<1x512xf32, #tpu.memory_space<vmem>>, %arg4: memref<2x512xbf16, #tpu.memory_space<vmem>>) attributes {dimension_semantics = [#tpu.dimension_semantics<parallel>], iteration_bounds = array<i64: 1>, scalar_prefetch = 0 : i64, scratch_operands = 0 : i64, tpu.core_type = #tpu.core_type<tc>, window_params = [{transform_indices = @transform_0, window_bounds = array<i64: 2, 256>}, {pipeline_mode = #tpu.pipeline_mode<synchronous>, transform_indices = @transform_1, window_bounds = array<i64: 256, 512>}, {pipeline_mode = #tpu.pipeline_mode<synchronous>, transform_indices = @transform_2, window_bounds = array<i64: 1, 512>}, {transform_indices = @transform_3, window_bounds = array<i64: 2, 512>}]} {
    %c0 = arith.constant 0 : index
    %c0_0 = arith.constant 0 : index
    %0 = vector.load %arg1[%c0, %c0_0] : memref<2x256xbf16, #tpu.memory_space<vmem>>, vector<2x256xbf16>
    %c0_1 = arith.constant 0 : index
    %c0_2 = arith.constant 0 : index
    %1 = vector.load %arg2[%c0_1, %c0_2] : memref<256x512xbf16, #tpu.memory_space<vmem>>, vector<256x512xbf16>
    %cst = arith.constant dense<0.000000e+00> : vector<2x512xf32>
    %2 = tpu.matmul %0, %1, %cst {dimension_numbers = #tpu.dot_dimension_numbers<[1], [0], [0], [1], [0, 0, 1, 1], [], []>} : vector<2x256xbf16>, vector<256x512xbf16>, vector<2x512xf32> -> vector<2x512xf32>
    %c0_3 = arith.constant 0 : index
    %c0_4 = arith.constant 0 : index
    %3 = vector.load %arg3[%c0_3, %c0_4] : memref<1x512xf32, #tpu.memory_space<vmem>>, vector<1x512xf32>
    %4 = vector.broadcast %3 : vector<1x512xf32> to vector<2x512xf32>
    %5 = arith.addf %2, %4 : vector<2x512xf32>
    %cst_5 = arith.constant 0.000000e+00 : f32
    %6 = vector.broadcast %cst_5 : f32 to vector<2x512xf32>
    %7 = arith.maximumf %5, %6 : vector<2x512xf32>
    %8 = arith.truncf %7 : vector<2x512xf32> to vector<2x512xbf16>
    %c0_6 = arith.constant 0 : index
    %c0_7 = arith.constant 0 : index
    %9 = vector.load %arg4[%c0_6, %c0_7] : memref<2x512xbf16, #tpu.memory_space<vmem>>, vector<2x512xbf16>
    tpu.vector_store %arg4[%c0_6, %c0_7], %8 {strides = array<i32>} : memref<2x512xbf16, #tpu.memory_space<vmem>>, vector<2x512xbf16>,
    return
  }
  func.func @transform_0(%arg0: i32) -> (i32, i32) {
    %c0_i32 = arith.constant 0 : i32
    %c0_i32_0 = arith.constant 0 : i32
    return %arg0, %c0_i32 : i32, i32
  }
  func.func @transform_1(%arg0: i32) -> (i32, i32) {
    %c0_i32 = arith.constant 0 : i32
    %c0_i32_0 = arith.constant 0 : i32
    %c0_i32_1 = arith.constant 0 : i32
    return %c0_i32, %c0_i32_0 : i32, i32
  }
  func.func @transform_2(%arg0: i32) -> (i32, i32) {
    %c0_i32 = arith.constant 0 : i32
    %c0_i32_0 = arith.constant 0 : i32
    %c0_i32_1 = arith.constant 0 : i32
    return %c0_i32, %c0_i32_0 : i32, i32
  }
  func.func @transform_3(%arg0: i32) -> (i32, i32) {
    %c0_i32 = arith.constant 0 : i32
    %c0_i32_0 = arith.constant 0 : i32
    return %arg0, %c0_i32 : i32, i32
  }
}

module attributes {stable_mosaic.version = 11 : i64} {
  func.func @_mm_bias_act_kernel(%arg0: i32, %arg1: memref<8x128xbf16, #tpu.memory_space<vmem>>, %arg2: memref<128x256xbf16, #tpu.memory_space<vmem>>, %arg3: memref<1x256xf32, #tpu.memory_space<vmem>>, %arg4: memref<8x256xbf16, #tpu.memory_space<vmem>>) attributes {dimension_semantics = [#tpu.dimension_semantics<parallel>], iteration_bounds = array<i64: 1>, scalar_prefetch = 0 : i64, scratch_operands = 0 : i64, tpu.core_type = #tpu.core_type<tc>, window_params = [{transform_indices = @transform_0, window_bounds = array<i64: 8, 128>}, {pipeline_mode = #tpu.pipeline_mode<synchronous>, transform_indices = @transform_1, window_bounds = array<i64: 128, 256>}, {pipeline_mode = #tpu.pipeline_mode<synchronous>, transform_indices = @transform_2, window_bounds = array<i64: 1, 256>}, {transform_indices = @transform_3, window_bounds = array<i64: 8, 256>}]} {
    %c0 = arith.constant 0 : index
    %c0_0 = arith.constant 0 : index
    %0 = vector.load %arg1[%c0, %c0_0] : memref<8x128xbf16, #tpu.memory_space<vmem>>, vector<8x128xbf16>
    %c0_1 = arith.constant 0 : index
    %c0_2 = arith.constant 0 : index
    %1 = vector.load %arg2[%c0_1, %c0_2] : memref<128x256xbf16, #tpu.memory_space<vmem>>, vector<128x256xbf16>
    %cst = arith.constant dense<0.000000e+00> : vector<8x256xf32>
    %2 = tpu.matmul %0, %1, %cst {dimension_numbers = #tpu.dot_dimension_numbers<[1], [0], [0], [1], [0, 0, 1, 1], [], []>} : vector<8x128xbf16>, vector<128x256xbf16>, vector<8x256xf32> -> vector<8x256xf32>
    %c0_3 = arith.constant 0 : index
    %c0_4 = arith.constant 0 : index
    %3 = vector.load %arg3[%c0_3, %c0_4] : memref<1x256xf32, #tpu.memory_space<vmem>>, vector<1x256xf32>
    %4 = vector.broadcast %3 : vector<1x256xf32> to vector<8x256xf32>
    %5 = arith.addf %2, %4 : vector<8x256xf32>
    %cst_5 = arith.constant 0.000000e+00 : f32
    %6 = vector.broadcast %cst_5 : f32 to vector<8x256xf32>
    %7 = arith.maximumf %5, %6 : vector<8x256xf32>
    %8 = arith.truncf %7 : vector<8x256xf32> to vector<8x256xbf16>
    %c0_6 = arith.constant 0 : index
    %c0_7 = arith.constant 0 : index
    %9 = vector.load %arg4[%c0_6, %c0_7] : memref<8x256xbf16, #tpu.memory_space<vmem>>, vector<8x256xbf16>
    tpu.vector_store %arg4[%c0_6, %c0_7], %8 {strides = array<i32>} : memref<8x256xbf16, #tpu.memory_space<vmem>>, vector<8x256xbf16>,
    return
  }
  func.func @transform_0(%arg0: i32) -> (i32, i32) {
    %c0_i32 = arith.constant 0 : i32
    %c0_i32_0 = arith.constant 0 : i32
    return %arg0, %c0_i32 : i32, i32
  }
  func.func @transform_1(%arg0: i32) -> (i32, i32) {
    %c0_i32 = arith.constant 0 : i32
    %c0_i32_0 = arith.constant 0 : i32
    %c0_i32_1 = arith.constant 0 : i32
    return %c0_i32, %c0_i32_0 : i32, i32
  }
  func.func @transform_2(%arg0: i32) -> (i32, i32) {
    %c0_i32 = arith.constant 0 : i32
    %c0_i32_0 = arith.constant 0 : i32
    %c0_i32_1 = arith.constant 0 : i32
    return %c0_i32, %c0_i32_0 : i32, i32
  }
  func.func @transform_3(%arg0: i32) -> (i32, i32) {
    %c0_i32 = arith.constant 0 : i32
    %c0_i32_0 = arith.constant 0 : i32
    return %arg0, %c0_i32 : i32, i32
  }
}

module attributes {stable_mosaic.version = 11 : i64} {
  func.func @_mm_bias_act_kernel(%arg0: i32, %arg1: memref<32x64xbf16, #tpu.memory_space<vmem>>, %arg2: memref<64x128xbf16, #tpu.memory_space<vmem>>, %arg3: memref<1x128xf32, #tpu.memory_space<vmem>>, %arg4: memref<32x128xbf16, #tpu.memory_space<vmem>>) attributes {dimension_semantics = [#tpu.dimension_semantics<parallel>], iteration_bounds = array<i64: 1>, scalar_prefetch = 0 : i64, scratch_operands = 0 : i64, tpu.core_type = #tpu.core_type<tc>, window_params = [{transform_indices = @transform_0, window_bounds = array<i64: 32, 64>}, {pipeline_mode = #tpu.pipeline_mode<synchronous>, transform_indices = @transform_1, window_bounds = array<i64: 64, 128>}, {pipeline_mode = #tpu.pipeline_mode<synchronous>, transform_indices = @transform_2, window_bounds = array<i64: 1, 128>}, {transform_indices = @transform_3, window_bounds = array<i64: 32, 128>}]} {
    %c0 = arith.constant 0 : index
    %c0_0 = arith.constant 0 : index
    %0 = vector.load %arg1[%c0, %c0_0] : memref<32x64xbf16, #tpu.memory_space<vmem>>, vector<32x64xbf16>
    %c0_1 = arith.constant 0 : index
    %c0_2 = arith.constant 0 : index
    %1 = vector.load %arg2[%c0_1, %c0_2] : memref<64x128xbf16, #tpu.memory_space<vmem>>, vector<64x128xbf16>
    %cst = arith.constant dense<0.000000e+00> : vector<32x128xf32>
    %2 = tpu.matmul %0, %1, %cst {dimension_numbers = #tpu.dot_dimension_numbers<[1], [0], [0], [1], [0, 0, 1, 1], [], []>} : vector<32x64xbf16>, vector<64x128xbf16>, vector<32x128xf32> -> vector<32x128xf32>
    %c0_3 = arith.constant 0 : index
    %c0_4 = arith.constant 0 : index
    %3 = vector.load %arg3[%c0_3, %c0_4] : memref<1x128xf32, #tpu.memory_space<vmem>>, vector<1x128xf32>
    %4 = vector.broadcast %3 : vector<1x128xf32> to vector<32x128xf32>
    %5 = arith.addf %2, %4 : vector<32x128xf32>
    %cst_5 = arith.constant 0.000000e+00 : f32
    %6 = vector.broadcast %cst_5 : f32 to vector<32x128xf32>
    %7 = arith.maximumf %5, %6 : vector<32x128xf32>
    %8 = arith.truncf %7 : vector<32x128xf32> to vector<32x128xbf16>
    %c0_6 = arith.constant 0 : index
    %c0_7 = arith.constant 0 : index
    %9 = vector.load %arg4[%c0_6, %c0_7] : memref<32x128xbf16, #tpu.memory_space<vmem>>, vector<32x128xbf16>
    tpu.vector_store %arg4[%c0_6, %c0_7], %8 {strides = array<i32>} : memref<32x128xbf16, #tpu.memory_space<vmem>>, vector<32x128xbf16>,
    return
  }
  func.func @transform_0(%arg0: i32) -> (i32, i32) {
    %c0_i32 = arith.constant 0 : i32
    %c0_i32_0 = arith.constant 0 : i32
    return %arg0, %c0_i32 : i32, i32
  }
  func.func @transform_1(%arg0: i32) -> (i32, i32) {
    %c0_i32 = arith.constant 0 : i32
    %c0_i32_0 = arith.constant 0 : i32
    %c0_i32_1 = arith.constant 0 : i32
    return %c0_i32, %c0_i32_0 : i32, i32
  }
  func.func @transform_2(%arg0: i32) -> (i32, i32) {
    %c0_i32 = arith.constant 0 : i32
    %c0_i32_0 = arith.constant 0 : i32
    %c0_i32_1 = arith.constant 0 : i32
    return %c0_i32, %c0_i32_0 : i32, i32
  }
  func.func @transform_3(%arg0: i32) -> (i32, i32) {
    %c0_i32 = arith.constant 0 : i32
    %c0_i32_0 = arith.constant 0 : i32
    return %arg0, %c0_i32 : i32, i32
  }
}

module attributes {stable_mosaic.version = 11 : i64} {
  func.func @_mm_bias_act_kernel(%arg0: i32, %arg1: memref<128x32xbf16, #tpu.memory_space<vmem>>, %arg2: memref<32x12xbf16, #tpu.memory_space<vmem>>, %arg3: memref<1x12xf32, #tpu.memory_space<vmem>>, %arg4: memref<128x12xf32, #tpu.memory_space<vmem>>) attributes {dimension_semantics = [#tpu.dimension_semantics<parallel>], iteration_bounds = array<i64: 1>, scalar_prefetch = 0 : i64, scratch_operands = 0 : i64, tpu.core_type = #tpu.core_type<tc>, window_params = [{transform_indices = @transform_0, window_bounds = array<i64: 128, 32>}, {pipeline_mode = #tpu.pipeline_mode<synchronous>, transform_indices = @transform_1, window_bounds = array<i64: 32, 12>}, {pipeline_mode = #tpu.pipeline_mode<synchronous>, transform_indices = @transform_2, window_bounds = array<i64: 1, 12>}, {transform_indices = @transform_3, window_bounds = array<i64: 128, 12>}]} {
    %c0 = arith.constant 0 : index
    %c0_0 = arith.constant 0 : index
    %0 = vector.load %arg1[%c0, %c0_0] : memref<128x32xbf16, #tpu.memory_space<vmem>>, vector<128x32xbf16>
    %c0_1 = arith.constant 0 : index
    %c0_2 = arith.constant 0 : index
    %1 = vector.load %arg2[%c0_1, %c0_2] : memref<32x12xbf16, #tpu.memory_space<vmem>>, vector<32x12xbf16>
    %cst = arith.constant dense<0.000000e+00> : vector<128x12xf32>
    %2 = tpu.matmul %0, %1, %cst {dimension_numbers = #tpu.dot_dimension_numbers<[1], [0], [0], [1], [0, 0, 1, 1], [], []>} : vector<128x32xbf16>, vector<32x12xbf16>, vector<128x12xf32> -> vector<128x12xf32>
    %c0_3 = arith.constant 0 : index
    %c0_4 = arith.constant 0 : index
    %3 = vector.load %arg3[%c0_3, %c0_4] : memref<1x12xf32, #tpu.memory_space<vmem>>, vector<1x12xf32>
    %4 = vector.broadcast %3 : vector<1x12xf32> to vector<128x12xf32>
    %5 = arith.addf %2, %4 : vector<128x12xf32>
    %6 = arith.negf %5 : vector<128x12xf32>
    %7 = math.exp %6 : vector<128x12xf32>
    %cst_5 = arith.constant 1.000000e+00 : f32
    %8 = vector.broadcast %cst_5 : f32 to vector<128x12xf32>
    %9 = arith.addf %8, %7 : vector<128x12xf32>
    %10 = arith.divf %8, %9 : vector<128x12xf32>
    %c0_6 = arith.constant 0 : index
    %c0_7 = arith.constant 0 : index
    %11 = vector.load %arg4[%c0_6, %c0_7] : memref<128x12xf32, #tpu.memory_space<vmem>>, vector<128x12xf32>
    tpu.vector_store %arg4[%c0_6, %c0_7], %10 {strides = array<i32>} : memref<128x12xf32, #tpu.memory_space<vmem>>, vector<128x12xf32>,
    return
  }
  func.func @transform_0(%arg0: i32) -> (i32, i32) {
    %c0_i32 = arith.constant 0 : i32
    %c0_i32_0 = arith.constant 0 : i32
    return %arg0, %c0_i32 : i32, i32
  }
  func.func @transform_1(%arg0: i32) -> (i32, i32) {
    %c0_i32 = arith.constant 0 : i32
    %c0_i32_0 = arith.constant 0 : i32
    %c0_i32_1 = arith.constant 0 : i32
    return %c0_i32, %c0_i32_0 : i32, i32
  }
  func.func @transform_2(%arg0: i32) -> (i32, i32) {
    %c0_i32 = arith.constant 0 : i32
    %c0_i32_0 = arith.constant 0 : i32
    %c0_i32_1 = arith.constant 0 : i32
    return %c0_i32, %c0_i32_0 : i32, i32
  }
  func.func @transform_3(%arg0: i32) -> (i32, i32) {
    %c0_i32 = arith.constant 0 : i32
    %c0_i32_0 = arith.constant 0 : i32
    return %arg0, %c0_i32 : i32, i32
  }
}

</mosaic_0001>

<bundles_post_ra>
// kernel: denoising_autoencoder.8
= control target key start
LH: loop header
LB: loop body
LE: loop exit
PB: predicated region body
PF: predicated region fallthrough
CT: control target
= control target key end

     0   :  { %s1688_s12 = smov 0   ;;  %s1947_s0 = inlined_call_operand.vmem [shape: bf16[2,288,12], index: 0, kind: input, shape index: {}]   ;;  %s1948_s1 = inlined_call_operand.vmem [shape: bf16[3,12,64], index: 1, kind: input, shape index: {}]   ;;  %s1949_s2 = inlined_call_operand.vmem [shape: f32[1,64], index: 2, kind: input, shape index: {}]   ;;  %s1950_s3 = inlined_call_operand.vmem [shape: bf16[2,8,8,32], index: 3, kind: output, shape index: {}]  }
   0x1 LB: > { %s1290_s13 = sadd.s32 4294967295, %s1665_s12   ;;  %p1294_p0 = scmp.ge.s32.totalorder %s1665_s12, 1  ;;  %s1665_s12 = sphi %s1688_s12, %s13_s12  }
   0x2   : > { %p137_p1 = scmp.lt.s32.totalorder %s1665_s12, 3 }
   0x4   : > { %p138_p2 = pnand %p1294_p0, %p137_p1 }
   0x5   : > { %v1623_v0 = vld [vmem:[%s1948_s1 + $0x8] sm:$0x3f] (!%p138_p2)   ;;  %vm345_vm0 = vcmask (!%p138_p2), 1045504   ;;  %p161_p3 = scmp.lt.s32.totalorder (!%p138_p2), %s1290_s13, 1  ;;  %v1624_v1 = vld [vmem:[%s1948_s1] sm:$0x3f] (!%p138_p2)  }
   0x6   : > { %141 = sbr.rel (%p138_p2) target bundleno = 450 (0x1c2), region = 32  ;;  %1609 = vmatprep.subr.msk.bf16.mxu1 (!%p138_p2), %vm345_vm0, %v1623_v0  ;;  %v347_v2 = vsel (!%p138_p2), %vm345_vm0, %v1623_v0, 0  ;;  %v1627_v3 = vld [vmem:[%s1948_s1 + $0x10] sm:$0x3f] (!%p138_p2)   ;;  %1610 = vmatprep.subr.msk.bf16.mxu0 (!%p138_p2), %vm345_vm0, %v1624_v1  ;;  %v524_v4 = vsel (!%p138_p2), %vm345_vm0, %v1624_v1, 0  ;;  %vm296_vm1 = vcmask (!%p138_p2), 97280  }
   0x7   : > { %1442 = vmatpush3.bf16.msra.mxu1 (!%p138_p2), %v347_v2  ;;  %1476 = vmatpush3.bf16.msra.mxu0 (!%p138_p2), %v524_v4  ;;  %v856_v8 = vsel (!%p138_p2), %vm345_vm0, %v1627_v3, 0  ;;  %v1812_v56 = vld [vmem:[%s1949_s2] ss:$0 sm:$0xff] (!%p138_p2)  ;;  %s1667_s26 = smov (!%p138_p2), 96   ;;  %vm1226_vm2 = vcmask (!%p138_p2), 257024  }
   0x8   : > { %1611 = vmatprep.subr.msk.bf16.mxu1 (!%p138_p2), %vm345_vm0, %v1624_v1  ;;  %1612 = vmatprep.subr.msk.bf16.mxu0 (!%p138_p2), %vm345_vm0, %v1627_v3 }
   0xd   : > { %s1952_s13 = smov (!%p161_p3, %s1290_s13), 1 }
   0xe   : > { %s1613_s20 = smul.u32 144, %s1952_s13  ;;  %s1389_s27 = sshll.u32 %s1952_s13, 5 }
   0xf   : > { %s1914_s30 = scalar_lea.vmem %s1950_s3, %s1389_s27 }
  0x10   : > { %s1717_s23 = scalar_lea.vmem %s1947_s0, %s1613_s20 }
  0x11   : > { %v1625_v5 = vld [vmem:[%s1717_s23 + $0x8] sm:$0xff]   ;;  %v1626_v6 = vld [vmem:[%s1717_s23] sm:$0xff]   ;;  %v1628_v7 = vld [vmem:[%s1717_s23 + $0x10] sm:$0xff]  }
  0x12   : > { %1443 = vmatprep.mubr.msk.bf16.mxu1 %vm296_vm1, %v1625_v5  ;;  %1477 = vmatprep.mubr.msk.bf16.mxu0 %vm296_vm1, %v1626_v6  ;;  %v1629_v9 = vld [vmem:[%s1717_s23 + $0x18] sm:$0xff]   ;;  %v1630_v10 = vld [vmem:[%s1717_s23 + $0x20] sm:$0xff]   ;;  %v1631_v11 = vld [vmem:[%s1717_s23 + $0x28] sm:$0xff]  }
  0x13   : > { %1444 = vmatmul.mubr.msk.bf16.vlgmr.msra.gmra.mrb[0].mxu1 %vm296_vm1, %v1628_v7  ;;  %1478 = vmatmul.mubr.msk.bf16.vlgmr.msra.gmra.mrb[0].mxu0 %vm296_vm1, %v1625_v5  ;;  %v1632_v12 = vld [vmem:[%s1717_s23 + $0x30] sm:$0xff]   ;;  %v1633_v13 = vld [vmem:[%s1717_s23 + $0x38] sm:$0xff]   ;;  %v1634_v14 = vld [vmem:[%s1717_s23 + $0x40] sm:$0xff]  }
  0x14   : > { %1544 = vmatpush3.bf16.msra.mxu1 %v524_v4  ;;  %1510 = vmatpush3.bf16.msra.mxu0 %v856_v8  ;;  %v1635_v15 = vld [vmem:[%s1717_s23 + $0x48] sm:$0xff]   ;;  %v1636_v16 = vld [vmem:[%s1717_s23 + $0x10] sm:$0xff]   ;;  %v1638_v18 = vld [vmem:[%s1717_s23 + $0x18] sm:$0xff]  }
  0x15   : > { %1447 = vmatprep.mubr.msk.bf16.mxu1 %vm296_vm1, %v1629_v9  ;;  %1481 = vmatprep.mubr.msk.bf16.mxu0 %vm296_vm1, %v1628_v7  ;;  %v1637_v17 = vld [vmem:[%s1717_s23 + $0x50] sm:$0xff]   ;;  %v1639_v19 = vld [vmem:[%s1717_s23 + $0x58] sm:$0xff]   ;;  %v1640_v20 = vld [vmem:[%s1717_s23 + $0x20] sm:$0xff]  }
  0x16   : > { %v1641_v21 = vld [vmem:[%s1717_s23 + $0x60] sm:$0xff]   ;;  %v1642_v22 = vld [vmem:[%s1717_s23 + $0x28] sm:$0xff]   ;;  %v1644_v24 = vld [vmem:[%s1717_s23 + $0x30] sm:$0xff]  }
  0x17   : > { %v1643_v23 = vld [vmem:[%s1717_s23 + $0x68] sm:$0xff]   ;;  %v1645_v25 = vld [vmem:[%s1717_s23 + $0x70] sm:$0xff]   ;;  %v1646_v26 = vld [vmem:[%s1717_s23 + $0x38] sm:$0xff]  }
  0x18   : > { %v1647_v27 = vld [vmem:[%s1717_s23 + $0x78] sm:$0xff]   ;;  %v1648_v28 = vld [vmem:[%s1717_s23 + $0x40] sm:$0xff]   ;;  %v1650_v30 = vld [vmem:[%s1717_s23 + $0x48] sm:$0xff]  }
  0x19   : > { %v1649_v29 = vld [vmem:[%s1717_s23 + $0x80] sm:$0xff]   ;;  %v1651_v31 = vld [vmem:[%s1717_s23 + $0x50] sm:$0xff]   ;;  %v1652_v32 = vld [vmem:[%s1717_s23 + $0x58] sm:$0xff]  }
  0x1a   : > { %v1653_v33 = vld [vmem:[%s1717_s23 + $0x60] sm:$0xff]   ;;  %v1654_v34 = vld [vmem:[%s1717_s23 + $0x68] sm:$0xff]   ;;  %v1655_v35 = vld [vmem:[%s1717_s23 + $0x70] sm:$0xff]  }
  0x1b   : > { %1448 = vmatmul.mubr.msk.bf16.gmra.mrb[4].mxu1 %vm296_vm1, %v1630_v10  ;;  %1482 = vmatmul.mubr.msk.bf16.gmra.mrb[4].mxu0 %vm296_vm1, %v1629_v9  ;;  %v1656_v36 = vld [vmem:[%s1717_s23 + $0x78] sm:$0xff]   ;;  %v1657_v37 = vld [vmem:[%s1717_s23 + $0x80] sm:$0xff]   ;;  %v1658_v38 = vld [vmem:[%s1717_s23 + $0x88] sm:$0xff]  }
  0x1c   : > { %1451 = vmatprep.mubr.msk.bf16.mxu1 %vm296_vm1, %v1631_v11  ;;  %1485 = vmatprep.mubr.msk.bf16.mxu0 %vm296_vm1, %v1630_v10 }
  0x23   : > { %1452 = vmatmul.mubr.msk.bf16.gmra.mrb[8].mxu1 %vm296_vm1, %v1632_v12  ;;  %1486 = vmatmul.mubr.msk.bf16.gmra.mrb[8].mxu0 %vm296_vm1, %v1631_v11 }
  0x24   : > { %1455 = vmatprep.mubr.msk.bf16.mxu1 %vm296_vm1, %v1633_v13  ;;  %1489 = vmatprep.mubr.msk.bf16.mxu0 %vm296_vm1, %v1632_v12 }
  0x2b   : > { %1456 = vmatmul.mubr.msk.bf16.gmra.mrb[12].mxu1 %vm296_vm1, %v1634_v14  ;;  %1490 = vmatmul.mubr.msk.bf16.gmra.mrb[12].mxu0 %vm296_vm1, %v1633_v13 }
  0x2c   : > { %1459 = vmatprep.mubr.msk.bf16.mxu1 %vm296_vm1, %v1635_v15  ;;  %1511 = vmatprep.mubr.msk.bf16.mxu0 %vm296_vm1, %v1636_v16 }
  0x33   : > { %1460 = vmatmul.mubr.msk.bf16.gmra.mrb[16].mxu1 %vm296_vm1, %v1637_v17  ;;  %1512 = vmatmul.mubr.msk.bf16.vlgmr.msra.gmra.mrb[0].mxu0 %vm296_vm1, %v1638_v18 }
  0x34   : > { %1463 = vmatprep.mubr.msk.bf16.mxu1 %vm296_vm1, %v1639_v19  ;;  %1515 = vmatprep.mubr.msk.bf16.mxu0 %vm296_vm1, %v1640_v20 }
  0x3b   : > { %1464 = vmatmul.mubr.msk.bf16.gmra.mrb[20].mxu1 %vm296_vm1, %v1641_v21  ;;  %1516 = vmatmul.mubr.msk.bf16.gmra.mrb[4].mxu0 %vm296_vm1, %v1642_v22 }
  0x3c   : > { %1467 = vmatprep.mubr.msk.bf16.mxu1 %vm296_vm1, %v1643_v23  ;;  %1519 = vmatprep.mubr.msk.bf16.mxu0 %vm296_vm1, %v1644_v24 }
  0x43   : > { %1468 = vmatmul.mubr.msk.bf16.gmra.mrb[24].mxu1 %vm296_vm1, %v1645_v25  ;;  %1520 = vmatmul.mubr.msk.bf16.gmra.mrb[8].mxu0 %vm296_vm1, %v1646_v26 }
  0x44   : > { %1471 = vmatprep.mubr.msk.bf16.mxu1 %vm296_vm1, %v1647_v27  ;;  %1523 = vmatprep.mubr.msk.bf16.mxu0 %vm296_vm1, %v1648_v28 }
  0x4b   : > { %1472 = vmatmul.mubr.msk.bf16.gmra.mrb[28].mxu1 %vm296_vm1, %v1649_v29  ;;  %1524 = vmatmul.mubr.msk.bf16.gmra.mrb[12].mxu0 %vm296_vm1, %v1650_v30 }
  0x4c   : > { %1493 = vmatprep.mubr.msk.bf16.mxu1 %vm296_vm1, %v1634_v14  ;;  %1527 = vmatprep.mubr.msk.bf16.mxu0 %vm296_vm1, %v1651_v31 }
  0x53   : > { %1494 = vmatmul.mubr.msk.bf16.vlgmr.msra.gmra.mrb[16].mxu1 %vm296_vm1, %v1635_v15  ;;  %1528 = vmatmul.mubr.msk.bf16.gmra.mrb[16].mxu0 %vm296_vm1, %v1652_v32 }
  0x54   : > { %1497 = vmatprep.mubr.msk.bf16.mxu1 %vm296_vm1, %v1637_v17  ;;  %1531 = vmatprep.mubr.msk.bf16.mxu0 %vm296_vm1, %v1653_v33 }
  0x5b   : > { %1498 = vmatmul.mubr.msk.bf16.gmra.mrb[20].mxu1 %vm296_vm1, %v1639_v19  ;;  %1532 = vmatmul.mubr.msk.bf16.gmra.mrb[20].mxu0 %vm296_vm1, %v1654_v34 }
  0x5c   : > { %1501 = vmatprep.mubr.msk.bf16.mxu1 %vm296_vm1, %v1641_v21  ;;  %1535 = vmatprep.mubr.msk.bf16.mxu0 %vm296_vm1, %v1655_v35 }
  0x63   : > { %1502 = vmatmul.mubr.msk.bf16.gmra.mrb[24].mxu1 %vm296_vm1, %v1643_v23  ;;  %1536 = vmatmul.mubr.msk.bf16.gmra.mrb[24].mxu0 %vm296_vm1, %v1656_v36 }
  0x64   : > { %1505 = vmatprep.mubr.msk.bf16.mxu1 %vm296_vm1, %v1645_v25  ;;  %1539 = vmatprep.mubr.msk.bf16.mxu0 %vm296_vm1, %v1657_v37 }
  0x6b   : > { %1506 = vmatmul.mubr.msk.bf16.gmra.mrb[28].mxu1 %vm296_vm1, %v1647_v27  ;;  %1540 = vmatmul.mubr.msk.bf16.gmra.mrb[28].mxu0 %vm296_vm1, %v1658_v38 }
  0xe6   : > { %v1445_v39 = vpop.f32.mrb[0].mxu1 }
  0xe7   : > { %v383_v40 = vpop.f32.mrb[1].mxu1 }
  0xe8   : > { %v1446_v41 = vpop.f32.mrb[2].mxu1 }
  0xe9   : > { %v386_v42 = vpop.f32.mrb[3].mxu1 }
  0xee   : > { %v1449_v43 = vpop.f32.mrb[4].mxu1 }
  0xef   : > { %v399_v44 = vpop.f32.mrb[5].mxu1 }
  0xf0   : > { %v1450_v45 = vpop.f32.mrb[6].mxu1 }
  0xf1   : > { %v402_v46 = vpop.f32.mrb[7].mxu1 }
  0xf6   : > { %v1453_v47 = vpop.f32.mrb[8].mxu1 }
  0xf7   : > { %v415_v48 = vpop.f32.mrb[9].mxu1 }
  0xf8   : > { %v1454_v49 = vpop.f32.mrb[10].mxu1 }
  0xf9   : > { %v418_v50 = vpop.f32.mrb[11].mxu1 }
  0xfe   : > { %v1801_v51 = vpop.f32.mrb[12].mxu1 }
  0xff   : > { %v1803_v52 = vpop.f32.mrb[13].mxu1 }
 0x100   : > { %v1805_v53 = vpop.f32.mrb[14].mxu1 }
 0x101   : > { %v1807_v54 = vpop.f32.mrb[15].mxu1 }
 0x106   : > { %v1513_v55 = vpop.f32.mrb[0].mxu0 }
 0x107   : > { %v1545_v57 = vadd.f32 %v1513_v55, %v1445_v39  ;;  %v892_v58 = vpop.f32.mrb[1].mxu0 }
 0x108   : > { %v1546_v59 = vadd.f32 %v892_v58, %v383_v40  ;;  %v1514_v60 = vpop.f32.mrb[2].mxu0 }
 0x109   : > { %v1060_v61 = vadd.f32 %v1545_v57, %v1812_v56  ;;  %v1547_v62 = vadd.f32 %v1514_v60, %v1446_v41  ;;  %v895_v63 = vpop.f32.mrb[3].mxu0 }
 0x10a   : > { %v1058_v0 = vadd.f32 %v1546_v59, %v1812_v56  ;;  %v1548_v1 = vadd.f32 %v895_v63, %v386_v42 }
 0x10b   : > { %v1061_v2 = vadd.f32 %v1547_v62, %v1812_v56  ;;  %v1092_v4 = vmax.f32 %v1060_v61, 0.0 }
 0x10c   : > { %v1059_v3 = vadd.f32 %v1548_v1, %v1812_v56  ;;  %v1090_v6 = vmax.f32 %v1058_v0, 0.0 }
 0x10d   : > { %v1093_v5 = vmax.f32 %v1061_v2, 0.0 }
 0x10e   : > { %v1091_v7 = vmax.f32 %v1059_v3, 0.0  ;;  %v1517_v8 = vpop.f32.mrb[4].mxu0 }
 0x10f   : > { %v1549_v9 = vadd.f32 %v1517_v8, %v1449_v43  ;;  %v908_v10 = vpop.f32.mrb[5].mxu0  ;;  %v1818_v11 = vpack.c.bf16 %v1093_v5, %v1092_v4 }
 0x110   : > { %v1550_v12 = vadd.f32 %v908_v10, %v399_v44  ;;  %v1518_v13 = vpop.f32.mrb[6].mxu0  ;;  %v1820_v14 = vpack.c.bf16 %v1091_v7, %v1090_v6 }
 0x111   : > { %v1064_v15 = vadd.f32 %v1549_v9, %v1812_v56  ;;  %v1551_v16 = vadd.f32 %v1518_v13, %v1450_v45  ;;  %1156 = vrot.lane.b32.xlu0 %v1818_v11, %s1667_s26  ;;  %v911_v17 = vpop.f32.mrb[7].mxu0 }
 0x112   : > { %v1062_v18 = vadd.f32 %v1550_v12, %v1812_v56  ;;  %v1552_v19 = vadd.f32 %v911_v17, %v402_v46 }
 0x113   : > { %v1065_v20 = vadd.f32 %v1551_v16, %v1812_v56  ;;  %v1096_v22 = vmax.f32 %v1064_v15, 0.0 }
 0x114   : > { %v1063_v21 = vadd.f32 %v1552_v19, %v1812_v56  ;;  %v1094_v24 = vmax.f32 %v1062_v18, 0.0 }
 0x115   : > { %v1097_v23 = vmax.f32 %v1065_v20, 0.0  ;;  %1154 = vrot.lane.b32.xlu0 %v1820_v14, %s1667_s26 }
 0x116   : > { %v1095_v25 = vmax.f32 %v1063_v21, 0.0  ;;  %v1521_v26 = vpop.f32.mrb[8].mxu0 }
 0x117   : > { %v1553_v27 = vadd.f32 %v1521_v26, %v1453_v47  ;;  %v924_v28 = vpop.f32.mrb[9].mxu0  ;;  %v1830_v29 = vpack.c.bf16 %v1097_v23, %v1096_v22 }
 0x118   : > { %v1554_v30 = vadd.f32 %v924_v28, %v415_v48  ;;  %v1522_v31 = vpop.f32.mrb[10].mxu0  ;;  %v1832_v32 = vpack.c.bf16 %v1095_v25, %v1094_v24 }
 0x119   : > { %v1068_v33 = vadd.f32 %v1553_v27, %v1812_v56  ;;  %v1555_v34 = vadd.f32 %v1522_v31, %v1454_v49  ;;  %1160 = vrot.lane.b32.xlu1 %v1830_v29, %s1667_s26  ;;  %v927_v35 = vpop.f32.mrb[11].mxu0 }
 0x11a   : > { %v1066_v36 = vadd.f32 %v1554_v30, %v1812_v56  ;;  %v1556_v37 = vadd.f32 %v927_v35, %v418_v50 }
 0x11b   : > { %v1069_v38 = vadd.f32 %v1555_v34, %v1812_v56  ;;  %v1100_v40 = vmax.f32 %v1068_v33, 0.0 }
 0x11c   : > { %v1067_v39 = vadd.f32 %v1556_v37, %v1812_v56  ;;  %v1098_v42 = vmax.f32 %v1066_v36, 0.0 }
 0x11d   : > { %v1101_v41 = vmax.f32 %v1069_v38, 0.0  ;;  %1158 = vrot.lane.b32.xlu1 %v1832_v32, %s1667_s26 }
 0x11e   : > { %v1099_v43 = vmax.f32 %v1067_v39, 0.0  ;;  %v1525_v44 = vpop.f32.mrb[12].mxu0 }
 0x11f   : > { %v1557_v45 = vadd.f32 %v1525_v44, %v1801_v51  ;;  %v940_v46 = vpop.f32.mrb[13].mxu0  ;;  %v1843_v47 = vpack.c.bf16 %v1101_v41, %v1100_v40 }
 0x120   : > { %v1558_v48 = vadd.f32 %v940_v46, %v1803_v52  ;;  %v1526_v49 = vpop.f32.mrb[14].mxu0  ;;  %v1846_v50 = vpack.c.bf16 %v1099_v43, %v1098_v42 }
 0x121   : > { %v1072_v55 = vadd.f32 %v1557_v45, %v1812_v56  ;;  %v1559_v57 = vadd.f32 %v1526_v49, %v1805_v53  ;;  %1164 = vrot.lane.b32.xlu1 %v1843_v47, %s1667_s26  ;;  %v943_v58 = vpop.f32.mrb[15].mxu0 }
 0x122   : > { %v1070_v59 = vadd.f32 %v1558_v48, %v1812_v56  ;;  %v1560_v51 = vadd.f32 %v943_v58, %v1807_v54  ;;  %1162 = vrot.lane.b32.xlu0 %v1846_v50, %s1667_s26 }
 0x123   : > { %v1073_v52 = vadd.f32 %v1559_v57, %v1812_v56  ;;  %v1104_v61 = vmax.f32 %v1072_v55, 0.0 }
 0x124   : > { %v1071_v60 = vadd.f32 %v1560_v51, %v1812_v56  ;;  %v1102_v63 = vmax.f32 %v1070_v59, 0.0 }
 0x125   : > { %v1105_v62 = vmax.f32 %v1073_v52, 0.0 }
 0x126   : > { %v1103_v0 = vmax.f32 %v1071_v60, 0.0  ;;  %v1495_v53 = vpop.f32.mrb[16].mxu1  ;;  %v1529_v1 = vpop.f32.mrb[16].mxu0 }
 0x127   : > { %v1561_v2 = vadd.f32 %v1529_v1, %v1495_v53  ;;  %v624_v3 = vpop.f32.mrb[17].mxu1  ;;  %v956_v4 = vpop.f32.mrb[17].mxu0  ;;  %v1858_v5 = vpack.c.bf16 %v1105_v62, %v1104_v61 }
 0x128   : > { %v1562_v6 = vadd.f32 %v956_v4, %v624_v3  ;;  %v1496_v54 = vpop.f32.mrb[18].mxu1  ;;  %v1530_v7 = vpop.f32.mrb[18].mxu0  ;;  %v1860_v8 = vpack.c.bf16 %v1103_v0, %v1102_v63 }
 0x129   : > { %v1076_v9 = vadd.f32 %v1561_v2, %v1812_v56  ;;  %v1563_v10 = vadd.f32 %v1530_v7, %v1496_v54  ;;  %v627_v12 = vpop.f32.mrb[19].mxu1  ;;  %1168 = vrot.lane.b32.xlu1 %v1858_v5, %s1667_s26  ;;  %v959_v13 = vpop.f32.mrb[19].mxu0 }
 0x12a   : > { %v1074_v15 = vadd.f32 %v1562_v6, %v1812_v56  ;;  %v1564_v16 = vadd.f32 %v959_v13, %v627_v12  ;;  %1166 = vrot.lane.b32.xlu0 %v1860_v8, %s1667_s26 }
 0x12b   : > { %v1077_v17 = vadd.f32 %v1563_v10, %v1812_v56  ;;  %v1108_v19 = vmax.f32 %v1076_v9, 0.0 }
 0x12c   : > { %v1075_v18 = vadd.f32 %v1564_v16, %v1812_v56  ;;  %v1106_v21 = vmax.f32 %v1074_v15, 0.0 }
 0x12d   : > { %v1109_v20 = vmax.f32 %v1077_v17, 0.0 }
 0x12e   : > { %v1107_v22 = vmax.f32 %v1075_v18, 0.0  ;;  %v1499_v23 = vpop.f32.mrb[20].mxu1  ;;  %v1533_v24 = vpop.f32.mrb[20].mxu0 }
 0x12f   : > { %v1565_v25 = vadd.f32 %v1533_v24, %v1499_v23  ;;  %v640_v26 = vpop.f32.mrb[21].mxu1  ;;  %v972_v27 = vpop.f32.mrb[21].mxu0  ;;  %v1870_v28 = vpack.c.bf16 %v1109_v20, %v1108_v19 }
 0x130   : > { %v1566_v30 = vadd.f32 %v972_v27, %v640_v26  ;;  %v1500_v31 = vpop.f32.mrb[22].mxu1  ;;  %v1534_v33 = vpop.f32.mrb[22].mxu0  ;;  %v1872_v34 = vpack.c.bf16 %v1107_v22, %v1106_v21 }
 0x131   : > { %v1080_v35 = vadd.f32 %v1565_v25, %v1812_v56  ;;  %v1567_v36 = vadd.f32 %v1534_v33, %v1500_v31  ;;  %v643_v37 = vpop.f32.mrb[23].mxu1  ;;  %1172 = vrot.lane.b32.xlu1 %v1870_v28, %s1667_s26  ;;  %v975_v38 = vpop.f32.mrb[23].mxu0 }
 0x132   : > { %v1078_v39 = vadd.f32 %v1566_v30, %v1812_v56  ;;  %v1568_v40 = vadd.f32 %v975_v38, %v643_v37  ;;  %1170 = vrot.lane.b32.xlu0 %v1872_v34, %s1667_s26 }
 0x133   : > { %v1081_v41 = vadd.f32 %v1567_v36, %v1812_v56  ;;  %v1112_v43 = vmax.f32 %v1080_v35, 0.0 }
 0x134   : > { %v1079_v42 = vadd.f32 %v1568_v40, %v1812_v56  ;;  %v1110_v45 = vmax.f32 %v1078_v39, 0.0 }
 0x135   : > { %v1113_v44 = vmax.f32 %v1081_v41, 0.0 }
 0x136   : > { %v1111_v46 = vmax.f32 %v1079_v42, 0.0  ;;  %v1503_v48 = vpop.f32.mrb[24].mxu1  ;;  %v1537_v49 = vpop.f32.mrb[24].mxu0 }
 0x137   : > { %v1569_v55 = vadd.f32 %v1537_v49, %v1503_v48  ;;  %v656_v57 = vpop.f32.mrb[25].mxu1  ;;  %v988_v58 = vpop.f32.mrb[25].mxu0  ;;  %v1882_v59 = vpack.c.bf16 %v1113_v44, %v1112_v43 }
 0x138   : > { %v1570_v51 = vadd.f32 %v988_v58, %v656_v57  ;;  %v1504_v52 = vpop.f32.mrb[26].mxu1  ;;  %v1538_v60 = vpop.f32.mrb[26].mxu0  ;;  %v1884_v61 = vpack.c.bf16 %v1111_v46, %v1110_v45 }
 0x139   : > { %v1084_v62 = vadd.f32 %v1569_v55, %v1812_v56  ;;  %v1571_v63 = vadd.f32 %v1538_v60, %v1504_v52  ;;  %v659_v0 = vpop.f32.mrb[27].mxu1  ;;  %1176 = vrot.lane.b32.xlu1 %v1882_v59, %s1667_s26  ;;  %v991_v53 = vpop.f32.mrb[27].mxu0 }
 0x13a   : > { %v1082_v1 = vadd.f32 %v1570_v51, %v1812_v56  ;;  %v1572_v2 = vadd.f32 %v991_v53, %v659_v0  ;;  %1174 = vrot.lane.b32.xlu0 %v1884_v61, %s1667_s26 }
 0x13b   : > { %v1085_v3 = vadd.f32 %v1571_v63, %v1812_v56  ;;  %v1116_v6 = vmax.f32 %v1084_v62, 0.0 }
 0x13c   : > { %v1083_v4 = vadd.f32 %v1572_v2, %v1812_v56  ;;  %v1114_v7 = vmax.f32 %v1082_v1, 0.0 }
 0x13d   : > { %v1117_v54 = vmax.f32 %v1085_v3, 0.0 }
 0x13e   : > { %v1115_v9 = vmax.f32 %v1083_v4, 0.0  ;;  %v1507_v10 = vpop.f32.mrb[28].mxu1  ;;  %v1541_v12 = vpop.f32.mrb[28].mxu0 }
 0x13f   : > { %v1573_v13 = vadd.f32 %v1541_v12, %v1507_v10  ;;  %v672_v15 = vpop.f32.mrb[29].mxu1  ;;  %v1004_v16 = vpop.f32.mrb[29].mxu0  ;;  %v1894_v17 = vpack.c.bf16 %v1117_v54, %v1116_v6 }
 0x140   : > { %v1574_v18 = vadd.f32 %v1004_v16, %v672_v15  ;;  %v1508_v19 = vpop.f32.mrb[30].mxu1  ;;  %v1542_v20 = vpop.f32.mrb[30].mxu0  ;;  %v1896_v21 = vpack.c.bf16 %v1115_v9, %v1114_v7 }
 0x141   : > { %v1088_v22 = vadd.f32 %v1573_v13, %v1812_v56  ;;  %v1575_v23 = vadd.f32 %v1542_v20, %v1508_v19  ;;  %v675_v24 = vpop.f32.mrb[31].mxu1  ;;  %1180 = vrot.lane.b32.xlu1 %v1894_v17, %s1667_s26  ;;  %v1007_v25 = vpop.f32.mrb[31].mxu0 }
 0x142   : > { %v1086_v26 = vadd.f32 %v1574_v18, %v1812_v56  ;;  %v1576_v27 = vadd.f32 %v1007_v25, %v675_v24  ;;  %1178 = vrot.lane.b32.xlu0 %v1896_v21, %s1667_s26 }
 0x143   : > { %v1089_v30 = vadd.f32 %v1575_v23, %v1812_v56  ;;  %v1120_v33 = vmax.f32 %v1088_v22, 0.0 }
 0x144   : > { %v1087_v31 = vadd.f32 %v1576_v27, %v1812_v56  ;;  %v1118_v36 = vmax.f32 %v1086_v26, 0.0 }
 0x145   : > { %v1121_v35 = vmax.f32 %v1089_v30, 0.0 }
 0x146   : > { %v1119_v37 = vmax.f32 %v1087_v31, 0.0 }
 0x147   : > { %v1137_v38 = vpack.c.bf16 %v1121_v35, %v1120_v33 }
 0x148   : > { %v1136_v39 = vpack.c.bf16 %v1119_v37, %v1118_v36 }
 0x149   : > { %1184 = vrot.lane.b32.xlu1 %v1137_v38, %s1667_s26 }
 0x14a   : > { %1182 = vrot.lane.b32.xlu0 %v1136_v39, %s1667_s26 }
 0x183   : > { %v1157_v40 = vpop.permute.xlu0 %1156 }
 0x184   : > { %v1203_v42 = vmax.bf16 %v1157_v40, %v1818_v11 }
 0x187   : > { %v1155_v41 = vpop.permute.xlu0 %1154 }
 0x188   : > { %v1202_v43 = vmax.bf16 %v1155_v41, %v1820_v14 }
 0x18a   : > { %v1218_v56 = vmax.bf16 %v1203_v42, %v1202_v43 }
 0x18b   : > { %v1161_v44 = vpop.permute.xlu1 %1160 }
 0x18c   : > { %1227 = vst.msk [vmem:[%s1914_s30] sm:$0xf] %vm1226_vm2, %v1218_v56  ;;  %v1205_v46 = vmax.bf16 %v1161_v44, %v1830_v29 }
 0x18f   : > { %v1159_v45 = vpop.permute.xlu1 %1158 }
 0x190   : > { %v1204_v11 = vmax.bf16 %v1159_v45, %v1832_v32 }
 0x192   : > { %v1219_v14 = vmax.bf16 %v1205_v46, %v1204_v11 }
 0x193   : > { %v1165_v48 = vpop.permute.xlu1 %1164 }
 0x194   : > { %1228 = vst.msk [vmem:[%s1914_s30 + $0x4] sm:$0xf] %vm1226_vm2, %v1219_v14  ;;  %v1207_v49 = vmax.bf16 %v1165_v48, %v1843_v47  ;;  %v1163_v55 = vpop.permute.xlu0 %1162 }
 0x195   : > { %v1206_v57 = vmax.bf16 %v1163_v55, %v1846_v50 }
 0x197   : > { %v1220_v58 = vmax.bf16 %v1207_v49, %v1206_v57 }
 0x199   : > { %1229 = vst.msk [vmem:[%s1914_s30 + $0x8] sm:$0xf] %vm1226_vm2, %v1220_v58 }
 0x19b   : > { %v1169_v51 = vpop.permute.xlu1 %1168 }
 0x19c   : > { %v1209_v52 = vmax.bf16 %v1169_v51, %v1858_v5  ;;  %v1167_v29 = vpop.permute.xlu0 %1166 }
 0x19d   : > { %v1208_v32 = vmax.bf16 %v1167_v29, %v1860_v8 }
 0x19f   : > { %v1221_v60 = vmax.bf16 %v1209_v52, %v1208_v32 }
 0x1a1   : > { %1230 = vst.msk [vmem:[%s1914_s30 + $0xc] sm:$0xf] %vm1226_vm2, %v1221_v60 }
 0x1a3   : > { %v1173_v62 = vpop.permute.xlu1 %1172 }
 0x1a4   : > { %v1211_v47 = vmax.bf16 %v1173_v62, %v1870_v28  ;;  %v1171_v63 = vpop.permute.xlu0 %1170 }
 0x1a5   : > { %v1210_v50 = vmax.bf16 %v1171_v63, %v1872_v34 }
 0x1a7   : > { %v1222_v0 = vmax.bf16 %v1211_v47, %v1210_v50 }
 0x1a9   : > { %1231 = vst.msk [vmem:[%s1914_s30 + $0x10] sm:$0xf] %vm1226_vm2, %v1222_v0 }
 0x1ab   : > { %v1177_v53 = vpop.permute.xlu1 %1176 }
 0x1ac   : > { %v1213_v5 = vmax.bf16 %v1177_v53, %v1882_v59  ;;  %v1175_v1 = vpop.permute.xlu0 %1174 }
 0x1ad   : > { %v1212_v8 = vmax.bf16 %v1175_v1, %v1884_v61 }
 0x1af   : > { %v1223_v2 = vmax.bf16 %v1213_v5, %v1212_v8 }
 0x1b1   : > { %1232 = vst.msk [vmem:[%s1914_s30 + $0x14] sm:$0xf] %vm1226_vm2, %v1223_v2 }
 0x1b3   : > { %v1181_v3 = vpop.permute.xlu1 %1180 }
 0x1b4   : > { %v1215_v28 = vmax.bf16 %v1181_v3, %v1894_v17  ;;  %v1179_v4 = vpop.permute.xlu0 %1178 }
 0x1b5   : > { %v1214_v6 = vmax.bf16 %v1179_v4, %v1896_v21 }
 0x1b7   : > { %v1224_v34 = vmax.bf16 %v1215_v28, %v1214_v6 }
 0x1b9   : > { %1233 = vst.msk [vmem:[%s1914_s30 + $0x18] sm:$0xf] %vm1226_vm2, %v1224_v34 }
 0x1bb   : > { %v1185_v54 = vpop.permute.xlu1 %1184 }
 0x1bc   : > { %v1217_v7 = vmax.bf16 %v1185_v54, %v1137_v38  ;;  %v1183_v9 = vpop.permute.xlu0 %1182 }
 0x1bd   : > { %v1216_v59 = vmax.bf16 %v1183_v9, %v1136_v39 }
 0x1bf   : > { %v1225_v10 = vmax.bf16 %v1217_v7, %v1216_v59 }
 0x1c1   : > { %1234 = vst.msk [vmem:[%s1914_s30 + $0x1c] sm:$0xf] %vm1226_vm2, %v1225_v10 }
 0x1c2 PF: > { %s13_s12 = sadd.s32 1, %s1665_s12  }
 0x1c3   : > { %p10_p4 = scmp.ge.s32.totalorder %s13_s12, 4  }
 0x1c5   :  { %12 = sbr.rel (!%p10_p4) target bundleno = 1 (0x1), region = 64 }

// kernel: denoising_autoencoder.9
= control target key start
LH: loop header
LB: loop body
LE: loop exit
PB: predicated region body
PF: predicated region fallthrough
CT: control target
= control target key end

     0   :  { %s1317_s12 = smov 0   ;;  %s1474_s0 = inlined_call_operand.vmem [shape: bf16[2,160,128], index: 0, kind: input, shape index: {}]   ;;  %s1475_s1 = inlined_call_operand.vmem [shape: bf16[3,128,128], index: 1, kind: input, shape index: {}]   ;;  %s1476_s2 = inlined_call_operand.vmem [shape: f32[1,128], index: 2, kind: input, shape index: {}]   ;;  %s1477_s3 = inlined_call_operand.vmem [shape: bf16[2,4,4,64], index: 3, kind: output, shape index: {}]  }
   0x1 LB: > { %s960_s13 = sadd.s32 4294967295, %s1294_s12   ;;  %p964_p0 = scmp.ge.s32.totalorder %s1294_s12, 1  ;;  %s1294_s12 = sphi %s1317_s12, %s13_s12  }
   0x2   : > { %p137_p1 = scmp.lt.s32.totalorder %s1294_s12, 3 }
   0x4   : > { %p138_p2 = pnand %p964_p0, %p137_p1 }
   0x5   : > { %v1247_v0 = vld [vmem:[%s1475_s1 + $0x40] sm:$0xff] (!%p138_p2)   ;;  %p161_p3 = scmp.lt.s32.totalorder (!%p138_p2), %s960_s13, 1  ;;  %v1249_v2 = vld [vmem:[%s1475_s1 + $0x48] sm:$0xff] (!%p138_p2)   ;;  %v1251_v4 = vld [vmem:[%s1475_s1 + $0x50] sm:$0xff] (!%p138_p2)   ;;  %s1296_s18 = smov (!%p138_p2), 64   ;;  %vm900_vm0 = vcmask (!%p138_p2), 517120  }
   0x6   : > { %141 = sbr.rel (%p138_p2) target bundleno = 429 (0x1ad), region = 32  ;;  %v1248_v1 = vld [vmem:[%s1475_s1] sm:$0xff] (!%p138_p2)   ;;  %1093 = vmatprep.subr.bf16.mxu1 (!%p138_p2), %v1247_v0  ;;  %v1250_v3 = vld [vmem:[%s1475_s1 + $0x8] sm:$0xff] (!%p138_p2)   ;;  %v1252_v5 = vld [vmem:[%s1475_s1 + $0x10] sm:$0xff] (!%p138_p2)  }
   0x7   : > { %1125 = vmatprep.subr.bf16.mxu0 (!%p138_p2), %v1248_v1  ;;  %1094 = vmatpush3.bf16.msra.mxu1 (!%p138_p2), %v1247_v0  ;;  %v1253_v6 = vld [vmem:[%s1475_s1 + $0x58] sm:$0xff] (!%p138_p2)   ;;  %v1255_v8 = vld [vmem:[%s1475_s1 + $0x60] sm:$0xff] (!%p138_p2)   ;;  %v1257_v10 = vld [vmem:[%s1475_s1 + $0x68] sm:$0xff] (!%p138_p2)  }
   0x8   : > { %1126 = vmatpush3.bf16.msra.mxu0 (!%p138_p2), %v1248_v1  ;;  %1095 = vmatprep.subr.bf16.mxu1 (!%p138_p2), %v1249_v2  ;;  %v1254_v7 = vld [vmem:[%s1475_s1 + $0x18] sm:$0xff] (!%p138_p2)   ;;  %v1256_v9 = vld [vmem:[%s1475_s1 + $0x20] sm:$0xff] (!%p138_p2)   ;;  %v1258_v11 = vld [vmem:[%s1475_s1 + $0x28] sm:$0xff] (!%p138_p2)  }
   0x9   : > { %1127 = vmatprep.subr.bf16.mxu0 (!%p138_p2), %v1250_v3  ;;  %v1259_v14 = vld [vmem:[%s1475_s1 + $0x70] sm:$0xff] (!%p138_p2)   ;;  %v1261_v16 = vld [vmem:[%s1475_s1 + $0x78] sm:$0xff] (!%p138_p2)   ;;  %v1266_v18 = vld [vmem:[%s1475_s1 + $0x80] sm:$0xff] (!%p138_p2)  }
   0xa   : > { %v1260_v15 = vld [vmem:[%s1475_s1 + $0x30] sm:$0xff] (!%p138_p2)   ;;  %v1262_v17 = vld [vmem:[%s1475_s1 + $0x38] sm:$0xff] (!%p138_p2)   ;;  %v1267_v20 = vld [vmem:[%s1475_s1 + $0x88] sm:$0xff] (!%p138_p2)  }
   0xb   : > { %1096 = vmatpush3.bf16.msra.mxu1 (!%p138_p2), %v1249_v2  ;;  %v1270_v22 = vld [vmem:[%s1475_s1 + $0x90] sm:$0xff] (!%p138_p2)   ;;  %v1271_v24 = vld [vmem:[%s1475_s1 + $0x98] sm:$0xff] (!%p138_p2)   ;;  %v1274_v26 = vld [vmem:[%s1475_s1 + $0xa0] sm:$0xff] (!%p138_p2)  }
   0xc   : > { %1128 = vmatpush3.bf16.msra.mxu0 (!%p138_p2), %v1250_v3  ;;  %1097 = vmatprep.subr.bf16.mxu1 (!%p138_p2), %v1251_v4  ;;  %v1275_v28 = vld [vmem:[%s1475_s1 + $0xa8] sm:$0xff] (!%p138_p2)   ;;  %v1278_v30 = vld [vmem:[%s1475_s1 + $0xb0] sm:$0xff] (!%p138_p2)   ;;  %v1279_v32 = vld [vmem:[%s1475_s1 + $0xb8] sm:$0xff] (!%p138_p2)  }
   0xd   : > { %s1479_s13 = smov (!%p161_p3, %s960_s13), 1  ;;  %1129 = vmatprep.subr.bf16.mxu0 %v1252_v5 }
   0xe   : > { %s1237_s30 = smul.u32 80, %s1479_s13  ;;  %s1044_s19 = sshll.u32 %s1479_s13, 3 }
   0xf   : > { %1098 = vmatpush3.bf16.msra.mxu1 %v1251_v4  ;;  %s170_s22 = scalar_lea.vmem %s1477_s3, %s1044_s19 }
  0x10   : > { %1130 = vmatpush3.bf16.msra.mxu0 %v1252_v5  ;;  %1099 = vmatprep.subr.bf16.mxu1 %v1253_v6  ;;  %s1361_s10 = scalar_lea.vmem %s1474_s0, %s1237_s30 }
  0x11   : > { %1131 = vmatprep.subr.bf16.mxu0 %v1254_v7  ;;  %v1263_v12 = vld [vmem:[%s1361_s10 + $0x8] sm:$0xff]   ;;  %v1264_v13 = vld [vmem:[%s1361_s10] sm:$0xff]   ;;  %v1265_v19 = vld [vmem:[%s1361_s10 + $0x10] sm:$0xff]  }
  0x12   : > { %1109 = vmatprep.mubr.bf16.mxu1 %v1263_v12  ;;  %1141 = vmatprep.mubr.bf16.mxu0 %v1264_v13  ;;  %v1268_v21 = vld [vmem:[%s1361_s10 + $0x18] sm:$0xff]   ;;  %v1269_v23 = vld [vmem:[%s1361_s10 + $0x20] sm:$0xff]   ;;  %v1272_v25 = vld [vmem:[%s1361_s10 + $0x28] sm:$0xff]  }
  0x13   : > { %1100 = vmatpush3.bf16.msra.mxu1 %v1253_v6  ;;  %v1273_v27 = vld [vmem:[%s1361_s10 + $0x30] sm:$0xff]   ;;  %v1276_v29 = vld [vmem:[%s1361_s10 + $0x38] sm:$0xff]   ;;  %v1277_v31 = vld [vmem:[%s1361_s10 + $0x40] sm:$0xff]  }
  0x14   : > { %1132 = vmatpush3.bf16.msra.mxu0 %v1254_v7  ;;  %1101 = vmatprep.subr.bf16.mxu1 %v1255_v8  ;;  %v1280_v33 = vld [vmem:[%s1361_s10 + $0x10] sm:$0xff]   ;;  %v1283_v35 = vld [vmem:[%s1361_s10 + $0x38] sm:$0xff]   ;;  %v1285_v37 = vld [vmem:[%s1361_s10 + $0x40] sm:$0xff]  }
  0x15   : > { %1133 = vmatprep.subr.bf16.mxu0 %v1256_v9  ;;  %v1281_v34 = vld [vmem:[%s1361_s10 + $0x30] sm:$0xff]   ;;  %v1282_v36 = vld [vmem:[%s1361_s10 + $0x18] sm:$0xff]   ;;  %v1284_v38 = vld [vmem:[%s1361_s10 + $0x20] sm:$0xff]  }
  0x16   : > { %v1287_v39 = vld [vmem:[%s1361_s10 + $0x48] sm:$0xff]  }
  0x17   : > { %1102 = vmatpush3.bf16.msra.mxu1 %v1255_v8  ;;  %v1286_v40 = vld [vmem:[%s1361_s10 + $0x28] sm:$0xff]  }
  0x18   : > { %1134 = vmatpush3.bf16.msra.mxu0 %v1256_v9  ;;  %1103 = vmatprep.subr.bf16.mxu1 %v1257_v10  ;;  %v1433_v9 = vld [vmem:[%s1476_s2] ss:$0 sm:$0xff] }
  0x19   : > { %1135 = vmatprep.subr.bf16.mxu0 %v1258_v11 }
  0x1b   : > { %1104 = vmatpush3.bf16.msra.mxu1 %v1257_v10 }
  0x1c   : > { %1136 = vmatpush3.bf16.msra.mxu0 %v1258_v11  ;;  %1105 = vmatprep.subr.bf16.mxu1 %v1259_v14 }
  0x1d   : > { %1137 = vmatprep.subr.bf16.mxu0 %v1260_v15 }
  0x1f   : > { %1106 = vmatpush3.bf16.msra.mxu1 %v1259_v14 }
  0x20   : > { %1138 = vmatpush3.bf16.msra.mxu0 %v1260_v15  ;;  %1107 = vmatprep.subr.bf16.mxu1 %v1261_v16 }
  0x21   : > { %1139 = vmatprep.subr.bf16.mxu0 %v1262_v17 }
  0x23   : > { %1108 = vmatpush3.bf16.msra.mxu1 %v1261_v16 }
  0x24   : > { %1140 = vmatpush3.bf16.msra.mxu0 %v1262_v17  ;;  %1189 = vmatprep.subr.bf16.mxu1 %v1266_v18 }
  0x25   : > { %1157 = vmatprep.subr.bf16.mxu0 %v1266_v18 }
  0x26   : > { %1110 = vmatmul.mubr.bf16.vlgmr.msra.gmra.mrb[0].mxu1 %v1265_v19 }
  0x27   : > { %1142 = vmatmul.mubr.bf16.vlgmr.msra.gmra.mrb[0].mxu0 %v1263_v12  ;;  %1197 = vmatpush3.bf16.msra.mxu1 %v1266_v18 }
  0x28   : > { %1158 = vmatpush3.bf16.msra.mxu0 %v1266_v18  ;;  %1190 = vmatprep.subr.bf16.mxu1 %v1267_v20 }
  0x29   : > { %1159 = vmatprep.subr.bf16.mxu0 %v1267_v20  ;;  %1113 = vmatprep.mubr.bf16.mxu1 %v1268_v21 }
  0x2a   : > { %1145 = vmatprep.mubr.bf16.mxu0 %v1265_v19 }
  0x2b   : > { %1198 = vmatpush3.bf16.msra.mxu1 %v1267_v20 }
  0x2c   : > { %1160 = vmatpush3.bf16.msra.mxu0 %v1267_v20  ;;  %1191 = vmatprep.subr.bf16.mxu1 %v1270_v22 }
  0x2d   : > { %1161 = vmatprep.subr.bf16.mxu0 %v1270_v22 }
  0x2e   : > { %1114 = vmatmul.mubr.bf16.gmra.mrb[4].mxu1 %v1269_v23 }
  0x2f   : > { %1146 = vmatmul.mubr.bf16.gmra.mrb[4].mxu0 %v1268_v21  ;;  %1199 = vmatpush3.bf16.msra.mxu1 %v1270_v22 }
  0x30   : > { %1162 = vmatpush3.bf16.msra.mxu0 %v1270_v22  ;;  %1192 = vmatprep.subr.bf16.mxu1 %v1271_v24 }
  0x31   : > { %1163 = vmatprep.subr.bf16.mxu0 %v1271_v24  ;;  %1117 = vmatprep.mubr.bf16.mxu1 %v1272_v25 }
  0x32   : > { %1149 = vmatprep.mubr.bf16.mxu0 %v1269_v23 }
  0x33   : > { %1200 = vmatpush3.bf16.msra.mxu1 %v1271_v24 }
  0x34   : > { %1164 = vmatpush3.bf16.msra.mxu0 %v1271_v24  ;;  %1193 = vmatprep.subr.bf16.mxu1 %v1274_v26 }
  0x35   : > { %1165 = vmatprep.subr.bf16.mxu0 %v1274_v26 }
  0x36   : > { %1118 = vmatmul.mubr.bf16.gmra.mrb[8].mxu1 %v1273_v27 }
  0x37   : > { %1150 = vmatmul.mubr.bf16.gmra.mrb[8].mxu0 %v1272_v25  ;;  %1201 = vmatpush3.bf16.msra.mxu1 %v1274_v26 }
  0x38   : > { %1166 = vmatpush3.bf16.msra.mxu0 %v1274_v26  ;;  %1194 = vmatprep.subr.bf16.mxu1 %v1275_v28 }
  0x39   : > { %1167 = vmatprep.subr.bf16.mxu0 %v1275_v28  ;;  %1121 = vmatprep.mubr.bf16.mxu1 %v1276_v29 }
  0x3a   : > { %1153 = vmatprep.mubr.bf16.mxu0 %v1273_v27 }
  0x3b   : > { %1202 = vmatpush3.bf16.msra.mxu1 %v1275_v28 }
  0x3c   : > { %1168 = vmatpush3.bf16.msra.mxu0 %v1275_v28  ;;  %1195 = vmatprep.subr.bf16.mxu1 %v1278_v30 }
  0x3d   : > { %1169 = vmatprep.subr.bf16.mxu0 %v1278_v30 }
  0x3e   : > { %1122 = vmatmul.mubr.bf16.gmra.mrb[12].mxu1 %v1277_v31 }
  0x3f   : > { %1154 = vmatmul.mubr.bf16.gmra.mrb[12].mxu0 %v1276_v29  ;;  %1203 = vmatpush3.bf16.msra.mxu1 %v1278_v30 }
  0x40   : > { %1170 = vmatpush3.bf16.msra.mxu0 %v1278_v30  ;;  %1196 = vmatprep.subr.bf16.mxu1 %v1279_v32 }
  0x41   : > { %1171 = vmatprep.subr.bf16.mxu0 %v1279_v32  ;;  %1173 = vmatprep.mubr.bf16.mxu0 %v1280_v33 }
  0x42   : > { %1181 = vmatprep.mubr.bf16.mxu1 %v1281_v34 }
  0x43   : > { %1204 = vmatpush3.bf16.msra.mxu1 %v1279_v32 }
  0x44   : > { %1172 = vmatpush3.bf16.msra.mxu0 %v1279_v32 }
  0x46   : > { %1182 = vmatmul.mubr.bf16.vlgmr.msra.gmra.mrb[16].mxu1 %v1283_v35 }
  0x47   : > { %1174 = vmatmul.mubr.bf16.vlgmr.msra.gmra.mrb[0].mxu0 %v1282_v36  ;;  %1185 = vmatprep.mubr.bf16.mxu1 %v1285_v37 }
  0x48   : > { %1177 = vmatprep.mubr.bf16.mxu0 %v1284_v38 }
  0x4e   : > { %1186 = vmatmul.mubr.bf16.gmra.mrb[20].mxu1 %v1287_v39 }
  0x4f   : > { %1178 = vmatmul.mubr.bf16.gmra.mrb[4].mxu0 %v1286_v40 }
  0xf9   : > { %v1111_v41 = vpop.f32.mrb[0].mxu1 }
  0xfa   : > { %v353_v42 = vpop.f32.mrb[1].mxu1 }
  0xfb   : > { %v1112_v43 = vpop.f32.mrb[2].mxu1 }
  0xfc   : > { %v356_v44 = vpop.f32.mrb[3].mxu1 }
 0x101   : > { %v1422_v45 = vpop.f32.mrb[4].mxu1 }
 0x102   : > { %v1424_v46 = vpop.f32.mrb[5].mxu1 }
 0x103   : > { %v1426_v47 = vpop.f32.mrb[6].mxu1 }
 0x104   : > { %v1428_v48 = vpop.f32.mrb[7].mxu1 }
 0x109   : > { %v1119_v49 = vpop.f32.mrb[8].mxu1 }
 0x10a   : > { %v1151_v50 = vpop.f32.mrb[8].mxu0  ;;  %v385_v51 = vpop.f32.mrb[9].mxu1 }
 0x10b   : > { %v545_v52 = vadd.f32 %v1151_v50, %v1119_v49  ;;  %v536_v53 = vpop.f32.mrb[9].mxu0  ;;  %v1120_v54 = vpop.f32.mrb[10].mxu1 }
 0x10c   : > { %v537_v55 = vadd.f32 %v536_v53, %v385_v51  ;;  %v1152_v56 = vpop.f32.mrb[10].mxu0  ;;  %v388_v57 = vpop.f32.mrb[11].mxu1 }
 0x10d   : > { %v548_v58 = vadd.f32 %v1152_v56, %v1120_v54  ;;  %v539_v59 = vpop.f32.mrb[11].mxu0 }
 0x10e   : > { %v540_v60 = vadd.f32 %v539_v59, %v388_v57 }
 0x111   : > { %v1123_v61 = vpop.f32.mrb[12].mxu1 }
 0x112   : > { %v1155_v62 = vpop.f32.mrb[12].mxu0  ;;  %v401_v63 = vpop.f32.mrb[13].mxu1 }
 0x113   : > { %v561_v0 = vadd.f32 %v1155_v62, %v1123_v61  ;;  %v552_v1 = vpop.f32.mrb[13].mxu0  ;;  %v1124_v2 = vpop.f32.mrb[14].mxu1 }
 0x114   : > { %v553_v3 = vadd.f32 %v552_v1, %v401_v63  ;;  %v1156_v4 = vpop.f32.mrb[14].mxu0  ;;  %v404_v5 = vpop.f32.mrb[15].mxu1 }
 0x115   : > { %v564_v6 = vadd.f32 %v1156_v4, %v1124_v2  ;;  %v555_v7 = vpop.f32.mrb[15].mxu0 }
 0x116   : > { %v556_v8 = vadd.f32 %v555_v7, %v404_v5 }
 0x119   : > { %v1183_v10 = vpop.f32.mrb[16].mxu1 }
 0x11a   : > { %v1175_v11 = vpop.f32.mrb[0].mxu0  ;;  %v803_v12 = vadd.f32 %v1183_v10, %v545_v52  ;;  %v762_v13 = vpop.f32.mrb[17].mxu1 }
 0x11b   : > { %v1205_v14 = vadd.f32 %v1175_v11, %v1111_v41  ;;  %v730_v15 = vpop.f32.mrb[1].mxu0  ;;  %v801_v16 = vadd.f32 %v762_v13, %v537_v55  ;;  %v1184_v17 = vpop.f32.mrb[18].mxu1 }
 0x11c   : > { %v826_v18 = vadd.f32 %v1433_v9, %v803_v12  ;;  %v1206_v19 = vadd.f32 %v730_v15, %v353_v42  ;;  %v1176_v20 = vpop.f32.mrb[2].mxu0  ;;  %v804_v21 = vadd.f32 %v1184_v17, %v548_v58  ;;  %v765_v22 = vpop.f32.mrb[19].mxu1 }
 0x11d   : > { %v818_v23 = vadd.f32 %v1205_v14, %v1433_v9  ;;  %v824_v24 = vadd.f32 %v1433_v9, %v801_v16  ;;  %v1207_v25 = vadd.f32 %v1176_v20, %v1112_v43  ;;  %v733_v26 = vpop.f32.mrb[3].mxu0  ;;  %v802_v27 = vadd.f32 %v765_v22, %v540_v60 }
 0x11e   : > { %v816_v28 = vadd.f32 %v1206_v19, %v1433_v9  ;;  %v827_v29 = vadd.f32 %v1433_v9, %v804_v21  ;;  %v1208_v30 = vadd.f32 %v733_v26, %v356_v44  ;;  %v842_v33 = vmax.f32 %v826_v18, 0.0 }
 0x11f   : > { %v819_v31 = vadd.f32 %v1207_v25, %v1433_v9  ;;  %v825_v32 = vadd.f32 %v1433_v9, %v802_v27  ;;  %v834_v36 = vmax.f32 %v818_v23, 0.0  ;;  %v840_v37 = vmax.f32 %v824_v24, 0.0 }
 0x120   : > { %v843_v34 = vmax.f32 %v827_v29, 0.0  ;;  %v817_v35 = vadd.f32 %v1208_v30, %v1433_v9  ;;  %v832_v41 = vmax.f32 %v816_v28, 0.0 }
 0x121   : > { %v835_v38 = vmax.f32 %v819_v31, 0.0  ;;  %v841_v39 = vmax.f32 %v825_v32, 0.0  ;;  %v1187_v40 = vpop.f32.mrb[20].mxu1 }
 0x122   : > { %v833_v42 = vmax.f32 %v817_v35, 0.0  ;;  %v1179_v43 = vpop.f32.mrb[4].mxu0  ;;  %v807_v49 = vadd.f32 %v1187_v40, %v561_v0  ;;  %v778_v50 = vpop.f32.mrb[21].mxu1  ;;  %v853_v51 = vpack.c.bf16 %v843_v34, %v842_v33 }
 0x123   : > { %v1209_v44 = vadd.f32 %v1179_v43, %v1422_v45  ;;  %v746_v52 = vpop.f32.mrb[5].mxu0  ;;  %v805_v53 = vadd.f32 %v778_v50, %v553_v3  ;;  %v1188_v54 = vpop.f32.mrb[22].mxu1  ;;  %v849_v55 = vpack.c.bf16 %v835_v38, %v834_v36  ;;  %v852_v56 = vpack.c.bf16 %v841_v39, %v840_v37 }
 0x124   : > { %v830_v57 = vadd.f32 %v1433_v9, %v807_v49  ;;  %v1210_v58 = vadd.f32 %v746_v52, %v1424_v46  ;;  %v1180_v59 = vpop.f32.mrb[6].mxu0  ;;  %v808_v60 = vadd.f32 %v1188_v54, %v564_v6  ;;  %v781_v61 = vpop.f32.mrb[23].mxu1  ;;  %874 = vrot.lane.b32.xlu1 %v853_v51, %s1296_s18  ;;  %v848_v62 = vpack.c.bf16 %v833_v42, %v832_v41 }
 0x125   : > { %v822_v63 = vadd.f32 %v1209_v44, %v1433_v9  ;;  %v828_v45 = vadd.f32 %v1433_v9, %v805_v53  ;;  %v1211_v0 = vadd.f32 %v1180_v59, %v1426_v47  ;;  %v806_v1 = vadd.f32 %v781_v61, %v556_v8  ;;  %866 = vrot.lane.b32.xlu0 %v849_v55, %s1296_s18  ;;  %v749_v2 = vpop.f32.mrb[7].mxu0 }
 0x126   : > { %v820_v3 = vadd.f32 %v1210_v58, %v1433_v9  ;;  %v831_v46 = vadd.f32 %v1433_v9, %v808_v60  ;;  %v1212_v4 = vadd.f32 %v749_v2, %v1428_v48  ;;  %v846_v7 = vmax.f32 %v830_v57, 0.0 }
 0x127   : > { %v823_v5 = vadd.f32 %v1211_v0, %v1433_v9  ;;  %v829_v6 = vadd.f32 %v1433_v9, %v806_v1  ;;  %v838_v12 = vmax.f32 %v822_v63, 0.0  ;;  %v844_v47 = vmax.f32 %v828_v45, 0.0 }
 0x128   : > { %v847_v10 = vmax.f32 %v831_v46, 0.0  ;;  %v821_v11 = vadd.f32 %v1212_v4, %v1433_v9  ;;  %v836_v14 = vmax.f32 %v820_v3, 0.0 }
 0x129   : > { %v839_v8 = vmax.f32 %v823_v5, 0.0  ;;  %v845_v13 = vmax.f32 %v829_v6, 0.0  ;;  %864 = vrot.lane.b32.xlu0 %v848_v62, %s1296_s18 }
 0x12a   : > { %v837_v15 = vmax.f32 %v821_v11, 0.0  ;;  %v855_v16 = vpack.c.bf16 %v847_v10, %v846_v7 }
 0x12b   : > { %v851_v17 = vpack.c.bf16 %v839_v8, %v838_v12  ;;  %v854_v48 = vpack.c.bf16 %v845_v13, %v844_v47 }
 0x12c   : > { %v850_v18 = vpack.c.bf16 %v837_v15, %v836_v14 }
 0x12d   : > { %870 = vrot.lane.b32.xlu1 %v851_v17, %s1296_s18  ;;  %872 = vrot.lane.b32.xlu0 %v852_v56, %s1296_s18 }
 0x131   : > { %868 = vrot.lane.b32.xlu1 %v850_v18, %s1296_s18  ;;  %876 = vrot.lane.b32.xlu0 %v854_v48, %s1296_s18 }
 0x135   : > { %878 = vrot.lane.b32.xlu1 %v855_v16, %s1296_s18 }
 0x196   : > { %v875_v19 = vpop.permute.xlu1 %874 }
 0x197   : > { %v867_v9 = vpop.permute.xlu0 %866  ;;  %v893_v26 = vmax.bf16 %v875_v19, %v853_v51 }
 0x198   : > { %v889_v21 = vmax.bf16 %v867_v9, %v849_v55 }
 0x19b   : > { %v865_v20 = vpop.permute.xlu0 %864 }
 0x19c   : > { %v888_v22 = vmax.bf16 %v865_v20, %v848_v62 }
 0x19e   : > { %v896_v23 = vmax.bf16 %v889_v21, %v888_v22 }
 0x19f   : > { %v871_v24 = vpop.permute.xlu1 %870  ;;  %v873_v25 = vpop.permute.xlu0 %872 }
 0x1a0   : > { %901 = vst.msk [vmem:[%s170_s22] sm:$0x3] %vm900_vm0, %v896_v23  ;;  %v892_v27 = vmax.bf16 %v873_v25, %v852_v56  ;;  %v891_v30 = vmax.bf16 %v871_v24, %v851_v17 }
 0x1a2   : > { %v898_v28 = vmax.bf16 %v893_v26, %v892_v27 }
 0x1a3   : > { %v869_v29 = vpop.permute.xlu1 %868  ;;  %v877_v32 = vpop.permute.xlu0 %876 }
 0x1a4   : > { %903 = vst.msk [vmem:[%s170_s22 + $0x4] sm:$0x3] %vm900_vm0, %v898_v28  ;;  %v890_v31 = vmax.bf16 %v869_v29, %v850_v18  ;;  %v894_v35 = vmax.bf16 %v877_v32, %v854_v48 }
 0x1a6   : > { %v897_v33 = vmax.bf16 %v891_v30, %v890_v31 }
 0x1a7   : > { %v879_v34 = vpop.permute.xlu1 %878 }
 0x1a8   : > { %902 = vst.msk [vmem:[%s170_s22 + $0x2] sm:$0x3] %vm900_vm0, %v897_v33  ;;  %v895_v36 = vmax.bf16 %v879_v34, %v855_v16 }
 0x1aa   : > { %v899_v37 = vmax.bf16 %v895_v36, %v894_v35 }
 0x1ac   : > { %904 = vst.msk [vmem:[%s170_s22 + $0x6] sm:$0x3] %vm900_vm0, %v899_v37 }
 0x1ad PF: > { %s13_s12 = sadd.s32 1, %s1294_s12  }
 0x1ae   : > { %p10_p4 = scmp.ge.s32.totalorder %s13_s12, 4  }
 0x1b0   :  { %12 = sbr.rel (!%p10_p4) target bundleno = 1 (0x1), region = 64 }

// kernel: denoising_autoencoder.10
= control target key start
LH: loop header
LB: loop body
LE: loop exit
PB: predicated region body
PF: predicated region fallthrough
CT: control target
= control target key end

     0   :  { %s1653_s12 = smov 0   ;;  %s2027_s0 = inlined_call_operand.vmem [shape: bf16[2,96,256], index: 0, kind: input, shape index: {}]   ;;  %s2028_s1 = inlined_call_operand.vmem [shape: bf16[3,256,256], index: 1, kind: input, shape index: {}]   ;;  %s2029_s2 = inlined_call_operand.vmem [shape: f32[1,256], index: 2, kind: input, shape index: {}]   ;;  %s2030_s3 = inlined_call_operand.vmem [shape: bf16[2,2,2,128], index: 3, kind: output, shape index: {}]  }
   0x1 LB: > { %s1203_s13 = sadd.s32 4294967295, %s1631_s12   ;;  %p1207_p0 = scmp.ge.s32.totalorder %s1631_s12, 1  ;;  %s1631_s12 = sphi %s1653_s12, %s13_s12  }
   0x2   : > { %p137_p1 = scmp.lt.s32.totalorder %s1631_s12, 3 }
   0x4   : > { %p138_p2 = pnand %p1207_p0, %p137_p1 }
   0x5   : > { %v1463_v0 = vld [vmem:[%s2028_s1 + $0x104] ss:$8 sps:$4 sm:$0xff] (!%p138_p2)   ;;  %v1467_v2 = vld [vmem:[%s2028_s1 + $0x100] ss:$8 sps:$4 sm:$0xff] (!%p138_p2)   ;;  %v1469_v4 = vld [vmem:[%s2028_s1 + $0x114] ss:$8 sps:$4 sm:$0xff] (!%p138_p2)  }
   0x6   : > { %141 = sbr.rel (%p138_p2) target bundleno = 372 (0x174), region = 32  ;;  %v1465_v1 = vld [vmem:[%s2028_s1 + $0x4] ss:$8 sps:$4 sm:$0xff] (!%p138_p2)   ;;  %444 = vmatprep.subr.bf16.mxu1 (!%p138_p2), %v1463_v0  ;;  %v1468_v3 = vld [vmem:[%s2028_s1] ss:$8 sps:$4 sm:$0xff] (!%p138_p2)   ;;  %p160_p3 = scmp.lt.s32.totalorder (!%p138_p2), %s1203_s13, 1 }
   0x7   : > { %687 = vmatprep.subr.bf16.mxu0 (!%p138_p2), %v1465_v1  ;;  %445 = vmatpush1.bf16.msra.mxu1 (!%p138_p2), %v1467_v2  ;;  %v1471_v5 = vld [vmem:[%s2028_s1 + $0x14] ss:$8 sps:$4 sm:$0xff] (!%p138_p2)   ;;  %v1473_v6 = vld [vmem:[%s2028_s1 + $0x110] ss:$8 sps:$4 sm:$0xff] (!%p138_p2)   ;;  %v1475_v8 = vld [vmem:[%s2028_s1 + $0x124] ss:$8 sps:$4 sm:$0xff] (!%p138_p2)  }
   0x8   : > { %688 = vmatpush1.bf16.msra.mxu0 (!%p138_p2), %v1468_v3  ;;  %446 = vmatprep.subr.bf16.mxu1 (!%p138_p2), %v1469_v4  ;;  %v1474_v7 = vld [vmem:[%s2028_s1 + $0x10] ss:$8 sps:$4 sm:$0xff] (!%p138_p2)   ;;  %v1477_v9 = vld [vmem:[%s2028_s1 + $0x24] ss:$8 sps:$4 sm:$0xff] (!%p138_p2)   ;;  %v1479_v10 = vld [vmem:[%s2028_s1 + $0x120] ss:$8 sps:$4 sm:$0xff] (!%p138_p2)  }
   0x9   : > { %689 = vmatprep.subr.bf16.mxu0 (!%p138_p2), %v1471_v5  ;;  %v1480_v11 = vld [vmem:[%s2028_s1 + $0x20] ss:$8 sps:$4 sm:$0xff] (!%p138_p2)   ;;  %v1481_v12 = vld [vmem:[%s2028_s1 + $0x134] ss:$8 sps:$4 sm:$0xff] (!%p138_p2)   ;;  %v1485_v14 = vld [vmem:[%s2028_s1 + $0x130] ss:$8 sps:$4 sm:$0xff] (!%p138_p2)  }
   0xa   : > { %v1483_v13 = vld [vmem:[%s2028_s1 + $0x34] ss:$8 sps:$4 sm:$0xff] (!%p138_p2)   ;;  %v1486_v15 = vld [vmem:[%s2028_s1 + $0x30] ss:$8 sps:$4 sm:$0xff] (!%p138_p2)   ;;  %v1487_v16 = vld [vmem:[%s2028_s1 + $0x144] ss:$8 sps:$4 sm:$0xff] (!%p138_p2)  }
   0xb   : > { %447 = vmatpush1.bf16.msra.mxu1 (!%p138_p2), %v1473_v6  ;;  %v1489_v17 = vld [vmem:[%s2028_s1 + $0x44] ss:$8 sps:$4 sm:$0xff] (!%p138_p2)   ;;  %v1491_v18 = vld [vmem:[%s2028_s1 + $0x140] ss:$8 sps:$4 sm:$0xff] (!%p138_p2)   ;;  %v1493_v20 = vld [vmem:[%s2028_s1 + $0x154] ss:$8 sps:$4 sm:$0xff] (!%p138_p2)  }
   0xc   : > { %690 = vmatpush1.bf16.msra.mxu0 (!%p138_p2), %v1474_v7  ;;  %448 = vmatprep.subr.bf16.mxu1 (!%p138_p2), %v1475_v8  ;;  %v1492_v19 = vld [vmem:[%s2028_s1 + $0x40] ss:$8 sps:$4 sm:$0xff] (!%p138_p2)   ;;  %v1495_v21 = vld [vmem:[%s2028_s1 + $0x54] ss:$8 sps:$4 sm:$0xff] (!%p138_p2)   ;;  %v1497_v22 = vld [vmem:[%s2028_s1 + $0x150] ss:$8 sps:$4 sm:$0xff] (!%p138_p2)  }
   0xd   : > { %691 = vmatprep.subr.bf16.mxu0 %v1477_v9  ;;  %v1498_v23 = vld [vmem:[%s2028_s1 + $0x50] ss:$8 sps:$4 sm:$0xff]   ;;  %v1499_v24 = vld [vmem:[%s2028_s1 + $0x164] ss:$8 sps:$4 sm:$0xff]   ;;  %v1503_v26 = vld [vmem:[%s2028_s1 + $0x160] ss:$8 sps:$4 sm:$0xff]  }
   0xe   : > { %v1501_v25 = vld [vmem:[%s2028_s1 + $0x64] ss:$8 sps:$4 sm:$0xff]   ;;  %v1504_v27 = vld [vmem:[%s2028_s1 + $0x60] ss:$8 sps:$4 sm:$0xff]   ;;  %v1505_v28 = vld [vmem:[%s2028_s1 + $0x174] ss:$8 sps:$4 sm:$0xff]  }
   0xf   : > { %449 = vmatpush1.bf16.msra.mxu1 %v1479_v10  ;;  %v1507_v29 = vld [vmem:[%s2028_s1 + $0x74] ss:$8 sps:$4 sm:$0xff]   ;;  %v1509_v30 = vld [vmem:[%s2028_s1 + $0x170] ss:$8 sps:$4 sm:$0xff]   ;;  %v1511_v32 = vld [vmem:[%s2028_s1 + $0x184] ss:$8 sps:$4 sm:$0xff]  }
  0x10   : > { %692 = vmatpush1.bf16.msra.mxu0 %v1480_v11  ;;  %450 = vmatprep.subr.bf16.mxu1 %v1481_v12  ;;  %v1510_v31 = vld [vmem:[%s2028_s1 + $0x70] ss:$8 sps:$4 sm:$0xff]   ;;  %v1513_v33 = vld [vmem:[%s2028_s1 + $0x84] ss:$8 sps:$4 sm:$0xff]   ;;  %v1515_v34 = vld [vmem:[%s2028_s1 + $0x180] ss:$8 sps:$4 sm:$0xff]  }
  0x11   : > { %693 = vmatprep.subr.bf16.mxu0 %v1483_v13  ;;  %v1516_v35 = vld [vmem:[%s2028_s1 + $0x80] ss:$8 sps:$4 sm:$0xff]   ;;  %v1517_v36 = vld [vmem:[%s2028_s1 + $0x194] ss:$8 sps:$4 sm:$0xff]   ;;  %s2032_s13 = smov (!%p160_p3, %s1203_s13), 1 }
  0x12   : > { %v1519_v37 = vld [vmem:[%s2028_s1 + $0x94] ss:$8 sps:$4 sm:$0xff]   ;;  %v1521_v38 = vld [vmem:[%s2028_s1 + $0x190] ss:$8 sps:$4 sm:$0xff]   ;;  %v1523_v40 = vld [vmem:[%s2028_s1 + $0x1a4] ss:$8 sps:$4 sm:$0xff]  }
  0x13   : > { %451 = vmatpush1.bf16.msra.mxu1 %v1485_v14  ;;  %v1522_v39 = vld [vmem:[%s2028_s1 + $0x90] ss:$8 sps:$4 sm:$0xff]   ;;  %s1454_s21 = smul.u32 96, %s2032_s13  ;;  %v1525_v41 = vld [vmem:[%s2028_s1 + $0xa4] ss:$8 sps:$4 sm:$0xff]   ;;  %s1209_s15 = sshll.u32 %s2032_s13, 1 }
  0x14   : > { %694 = vmatpush1.bf16.msra.mxu0 %v1486_v15  ;;  %452 = vmatprep.subr.bf16.mxu1 %v1487_v16  ;;  %v1527_v42 = vld [vmem:[%s2028_s1 + $0x1a0] ss:$8 sps:$4 sm:$0xff]   ;;  %v1529_v44 = vld [vmem:[%s2028_s1 + $0x1b4] ss:$8 sps:$4 sm:$0xff]   ;;  %v1533_v46 = vld [vmem:[%s2028_s1 + $0x1b0] ss:$8 sps:$4 sm:$0xff]   ;;  %s168_s18 = scalar_lea.vmem %s2030_s3, %s1209_s15 }
  0x15   : > { %695 = vmatprep.subr.bf16.mxu0 %v1489_v17  ;;  %v1528_v43 = vld [vmem:[%s2028_s1 + $0xa0] ss:$8 sps:$4 sm:$0xff]   ;;  %s1806_s5 = scalar_lea.vmem %s2027_s0, %s1454_s21  ;;  %v1531_v45 = vld [vmem:[%s2028_s1 + $0xb4] ss:$8 sps:$4 sm:$0xff]   ;;  %v1534_v47 = vld [vmem:[%s2028_s1 + $0xb0] ss:$8 sps:$4 sm:$0xff]  }
  0x16   : > { %v1535_v48 = vld [vmem:[%s2028_s1 + $0x1c4] ss:$8 sps:$4 sm:$0xff]   ;;  %v1561_v49 = vld [vmem:[%s1806_s5 + $0x14] ss:$8 sps:$4 sm:$0xff]   ;;  %v1539_v52 = vld [vmem:[%s2028_s1 + $0x1c0] ss:$8 sps:$4 sm:$0xff]  }
  0x17   : > { %453 = vmatpush1.bf16.msra.mxu1 %v1491_v18  ;;  %v1537_v50 = vld [vmem:[%s2028_s1 + $0xc4] ss:$8 sps:$4 sm:$0xff]   ;;  %476 = vmatprep.mubr.bf16.mxu1 %v1561_v49  ;;  %v1540_v53 = vld [vmem:[%s2028_s1 + $0xc0] ss:$8 sps:$4 sm:$0xff]   ;;  %v1541_v54 = vld [vmem:[%s2028_s1 + $0x1d4] ss:$8 sps:$4 sm:$0xff]  }
  0x18   : > { %696 = vmatpush1.bf16.msra.mxu0 %v1492_v19  ;;  %454 = vmatprep.subr.bf16.mxu1 %v1493_v20  ;;  %v1564_v51 = vld [vmem:[%s1806_s5 + $0x4] ss:$8 sps:$4 sm:$0xff]   ;;  %v1543_v55 = vld [vmem:[%s2028_s1 + $0xd4] ss:$8 sps:$4 sm:$0xff]   ;;  %v1545_v56 = vld [vmem:[%s2028_s1 + $0x1d0] ss:$8 sps:$4 sm:$0xff]  }
  0x19   : > { %697 = vmatprep.subr.bf16.mxu0 %v1495_v21  ;;  %719 = vmatprep.mubr.bf16.mxu0 %v1564_v51  ;;  %v1546_v57 = vld [vmem:[%s2028_s1 + $0xd0] ss:$8 sps:$4 sm:$0xff]   ;;  %v1547_v58 = vld [vmem:[%s2028_s1 + $0x1e4] ss:$8 sps:$4 sm:$0xff]   ;;  %v1551_v60 = vld [vmem:[%s2028_s1 + $0x1e0] ss:$8 sps:$4 sm:$0xff]  }
  0x1a   : > { %v1549_v59 = vld [vmem:[%s2028_s1 + $0xe4] ss:$8 sps:$4 sm:$0xff]   ;;  %v1552_v61 = vld [vmem:[%s2028_s1 + $0xe0] ss:$8 sps:$4 sm:$0xff]   ;;  %v1553_v62 = vld [vmem:[%s2028_s1 + $0x1f4] ss:$8 sps:$4 sm:$0xff]  }
  0x1b   : > { %455 = vmatpush1.bf16.msra.mxu1 %v1497_v22  ;;  %v1555_v63 = vld [vmem:[%s2028_s1 + $0xf4] ss:$8 sps:$4 sm:$0xff]   ;;  %v1557_v0 = vld [vmem:[%s2028_s1 + $0x1f0] ss:$8 sps:$4 sm:$0xff]   ;;  %v1567_v2 = vld [vmem:[%s2028_s1 + $0x204] ss:$8 sps:$4 sm:$0xff]  }
  0x1c   : > { %698 = vmatpush1.bf16.msra.mxu0 %v1498_v23  ;;  %456 = vmatprep.subr.bf16.mxu1 %v1499_v24  ;;  %v1558_v1 = vld [vmem:[%s2028_s1 + $0xf0] ss:$8 sps:$4 sm:$0xff]   ;;  %v1562_v4 = vld [vmem:[%s1806_s5] ss:$8 sps:$4 sm:$0xff]   ;;  %v1570_v6 = vld [vmem:[%s2028_s1 + $0x214] ss:$8 sps:$4 sm:$0xff]  }
  0x1d   : > { %699 = vmatprep.subr.bf16.mxu0 %v1501_v25  ;;  %v1559_v3 = vld [vmem:[%s1806_s5 + $0x10] ss:$8 sps:$4 sm:$0xff]   ;;  %v1565_v5 = vld [vmem:[%s2028_s1 + $0x200] ss:$8 sps:$4 sm:$0xff]   ;;  %v1592_v7 = vld [vmem:[%s1806_s5 + $0x24] ss:$8 sps:$4 sm:$0xff]  }
  0x1e   : > { %v1568_v8 = vld [vmem:[%s2028_s1 + $0x210] ss:$8 sps:$4 sm:$0xff]   ;;  %v1573_v9 = vld [vmem:[%s2028_s1 + $0x224] ss:$8 sps:$4 sm:$0xff]   ;;  %v1886_v10 = vld [vmem:[%s1806_s5 + $0x20] ss:$8 sps:$4 sm:$0xff]  }
  0x1f   : > { %457 = vmatpush1.bf16.msra.mxu1 %v1503_v26  ;;  %v1571_v11 = vld [vmem:[%s2028_s1 + $0x220] ss:$8 sps:$4 sm:$0xff]   ;;  %v1576_v12 = vld [vmem:[%s2028_s1 + $0x234] ss:$8 sps:$4 sm:$0xff]   ;;  %v1574_v14 = vld [vmem:[%s2028_s1 + $0x230] ss:$8 sps:$4 sm:$0xff]  }
  0x20   : > { %700 = vmatpush1.bf16.msra.mxu0 %v1504_v27  ;;  %458 = vmatprep.subr.bf16.mxu1 %v1505_v28  ;;  %v1895_v13 = vld [vmem:[%s1806_s5 + $0x34] ss:$8 sps:$4 sm:$0xff]   ;;  %v1579_v15 = vld [vmem:[%s2028_s1 + $0x244] ss:$8 sps:$4 sm:$0xff]   ;;  %v1906_v16 = vld [vmem:[%s1806_s5 + $0x30] ss:$8 sps:$4 sm:$0xff]  }
  0x21   : > { %701 = vmatprep.subr.bf16.mxu0 %v1507_v29  ;;  %v1577_v17 = vld [vmem:[%s2028_s1 + $0x240] ss:$8 sps:$4 sm:$0xff]   ;;  %v1582_v18 = vld [vmem:[%s2028_s1 + $0x254] ss:$8 sps:$4 sm:$0xff]   ;;  %v1610_v19 = vld [vmem:[%s1806_s5 + $0x44] ss:$8 sps:$4 sm:$0xff]  }
  0x22   : > { %v1580_v20 = vld [vmem:[%s2028_s1 + $0x250] ss:$8 sps:$4 sm:$0xff]   ;;  %v1585_v21 = vld [vmem:[%s2028_s1 + $0x264] ss:$8 sps:$4 sm:$0xff]   ;;  %v1925_v22 = vld [vmem:[%s1806_s5 + $0x40] ss:$8 sps:$4 sm:$0xff]  }
  0x23   : > { %459 = vmatpush1.bf16.msra.mxu1 %v1509_v30  ;;  %v1583_v23 = vld [vmem:[%s2028_s1 + $0x260] ss:$8 sps:$4 sm:$0xff]   ;;  %v1588_v24 = vld [vmem:[%s2028_s1 + $0x274] ss:$8 sps:$4 sm:$0xff]   ;;  %v1586_v25 = vld [vmem:[%s2028_s1 + $0x270] ss:$8 sps:$4 sm:$0xff]  }
  0x24   : > { %702 = vmatpush1.bf16.msra.mxu0 %v1510_v31  ;;  %460 = vmatprep.subr.bf16.mxu1 %v1511_v32  ;;  %v1591_v26 = vld [vmem:[%s2028_s1 + $0x284] ss:$8 sps:$4 sm:$0xff]   ;;  %v1589_v27 = vld [vmem:[%s2028_s1 + $0x280] ss:$8 sps:$4 sm:$0xff]   ;;  %v1596_v28 = vld [vmem:[%s2028_s1 + $0x294] ss:$8 sps:$4 sm:$0xff]  }
  0x25   : > { %703 = vmatprep.subr.bf16.mxu0 %v1513_v33  ;;  %v1594_v29 = vld [vmem:[%s2028_s1 + $0x290] ss:$8 sps:$4 sm:$0xff]   ;;  %v1600_v30 = vld [vmem:[%s2028_s1 + $0x2a4] ss:$8 sps:$4 sm:$0xff]   ;;  %v1598_v31 = vld [vmem:[%s2028_s1 + $0x2a0] ss:$8 sps:$4 sm:$0xff]  }
  0x26   : > { %v1605_v32 = vld [vmem:[%s2028_s1 + $0x2b4] ss:$8 sps:$4 sm:$0xff]   ;;  %v1603_v33 = vld [vmem:[%s2028_s1 + $0x2b0] ss:$8 sps:$4 sm:$0xff]  }
  0x27   : > { %461 = vmatpush1.bf16.msra.mxu1 %v1515_v34  ;;  %v1609_v34 = vld [vmem:[%s2028_s1 + $0x2c4] ss:$8 sps:$4 sm:$0xff]  }
  0x28   : > { %704 = vmatpush1.bf16.msra.mxu0 %v1516_v35  ;;  %462 = vmatprep.subr.bf16.mxu1 %v1517_v36  ;;  %v1607_v35 = vld [vmem:[%s2028_s1 + $0x2c0] ss:$8 sps:$4 sm:$0xff]   ;;  %v1614_v36 = vld [vmem:[%s2028_s1 + $0x2d4] ss:$8 sps:$4 sm:$0xff]  }
  0x29   : > { %705 = vmatprep.subr.bf16.mxu0 %v1519_v37  ;;  %v1612_v37 = vld [vmem:[%s2028_s1 + $0x2d0] ss:$8 sps:$4 sm:$0xff]  }
  0x2b   : > { %463 = vmatpush1.bf16.msra.mxu1 %v1521_v38  ;;  %v1618_v38 = vld [vmem:[%s2028_s1 + $0x2e4] ss:$8 sps:$4 sm:$0xff]  }
  0x2c   : > { %706 = vmatpush1.bf16.msra.mxu0 %v1522_v39  ;;  %464 = vmatprep.subr.bf16.mxu1 %v1523_v40  ;;  %v1616_v39 = vld [vmem:[%s2028_s1 + $0x2e0] ss:$8 sps:$4 sm:$0xff]   ;;  %v1621_v40 = vld [vmem:[%s2028_s1 + $0x2f4] ss:$8 sps:$4 sm:$0xff]  }
  0x2d   : > { %707 = vmatprep.subr.bf16.mxu0 %v1525_v41  ;;  %v1619_v41 = vld [vmem:[%s2028_s1 + $0x2f0] ss:$8 sps:$4 sm:$0xff]  }
  0x2f   : > { %465 = vmatpush1.bf16.msra.mxu1 %v1527_v42  ;;  %v1622_v42 = vld [vmem:[%s1806_s5 + $0x54] ss:$8 sps:$4 sm:$0xff]  }
  0x30   : > { %708 = vmatpush1.bf16.msra.mxu0 %v1528_v43  ;;  %466 = vmatprep.subr.bf16.mxu1 %v1529_v44  ;;  %v1624_v43 = vld [vmem:[%s1806_s5 + $0x50] ss:$8 sps:$4 sm:$0xff]  }
  0x31   : > { %709 = vmatprep.subr.bf16.mxu0 %v1531_v45 }
  0x33   : > { %467 = vmatpush1.bf16.msra.mxu1 %v1533_v46 }
  0x34   : > { %710 = vmatpush1.bf16.msra.mxu0 %v1534_v47  ;;  %468 = vmatprep.subr.bf16.mxu1 %v1535_v48 }
  0x35   : > { %711 = vmatprep.subr.bf16.mxu0 %v1537_v50 }
  0x37   : > { %469 = vmatpush1.bf16.msra.mxu1 %v1539_v52 }
  0x38   : > { %712 = vmatpush1.bf16.msra.mxu0 %v1540_v53  ;;  %470 = vmatprep.subr.bf16.mxu1 %v1541_v54 }
  0x39   : > { %713 = vmatprep.subr.bf16.mxu0 %v1543_v55 }
  0x3b   : > { %471 = vmatpush1.bf16.msra.mxu1 %v1545_v56 }
  0x3c   : > { %714 = vmatpush1.bf16.msra.mxu0 %v1546_v57  ;;  %472 = vmatprep.subr.bf16.mxu1 %v1547_v58 }
  0x3d   : > { %715 = vmatprep.subr.bf16.mxu0 %v1549_v59 }
  0x3f   : > { %473 = vmatpush1.bf16.msra.mxu1 %v1551_v60 }
  0x40   : > { %716 = vmatpush1.bf16.msra.mxu0 %v1552_v61  ;;  %474 = vmatprep.subr.bf16.mxu1 %v1553_v62 }
  0x41   : > { %717 = vmatprep.subr.bf16.mxu0 %v1555_v63 }
  0x43   : > { %475 = vmatpush1.bf16.msra.mxu1 %v1557_v0 }
  0x44   : > { %718 = vmatpush1.bf16.msra.mxu0 %v1558_v1  ;;  %1390 = vmatprep.subr.bf16.mxu1 %v1567_v2 }
  0x45   : > { %1001 = vmatprep.subr.bf16.mxu0 %v1567_v2 }
  0x46   : > { %477 = vmatmul.mubr.bf16.vlgmr.msra.gmra.mrb[0].mxu1 %v1559_v3 }
  0x47   : > { %720 = vmatmul.mubr.bf16.vlgmr.msra.gmra.mrb[0].mxu0 %v1562_v4  ;;  %1406 = vmatpush1.bf16.msra.mxu1 %v1565_v5 }
  0x48   : > { %1002 = vmatpush1.bf16.msra.mxu0 %v1565_v5  ;;  %1391 = vmatprep.subr.bf16.mxu1 %v1570_v6 }
  0x49   : > { %1003 = vmatprep.subr.bf16.mxu0 %v1570_v6  ;;  %486 = vmatprep.mubr.bf16.mxu1 %v1592_v7 }
  0x4a   : > { %729 = vmatprep.mubr.bf16.mxu0 %v1561_v49 }
  0x4b   : > { %1407 = vmatpush1.bf16.msra.mxu1 %v1568_v8 }
  0x4c   : > { %1004 = vmatpush1.bf16.msra.mxu0 %v1568_v8  ;;  %1392 = vmatprep.subr.bf16.mxu1 %v1573_v9 }
  0x4d   : > { %1005 = vmatprep.subr.bf16.mxu0 %v1573_v9 }
  0x4e   : > { %487 = vmatmul.mubr.bf16.gmra.mrb[4].mxu1 %v1886_v10 }
  0x4f   : > { %730 = vmatmul.mubr.bf16.gmra.mrb[4].mxu0 %v1559_v3  ;;  %1408 = vmatpush1.bf16.msra.mxu1 %v1571_v11 }
  0x50   : > { %1006 = vmatpush1.bf16.msra.mxu0 %v1571_v11  ;;  %1393 = vmatprep.subr.bf16.mxu1 %v1576_v12 }
  0x51   : > { %1007 = vmatprep.subr.bf16.mxu0 %v1576_v12  ;;  %496 = vmatprep.mubr.bf16.mxu1 %v1895_v13  ;;  %v1092_v12 = vlaneseq }
  0x52   : > { %739 = vmatprep.mubr.bf16.mxu0 %v1592_v7 }
  0x53   : > { %1409 = vmatpush1.bf16.msra.mxu1 %v1574_v14 }
  0x54   : > { %1008 = vmatpush1.bf16.msra.mxu0 %v1574_v14  ;;  %1394 = vmatprep.subr.bf16.mxu1 %v1579_v15 }
  0x55   : > { %1009 = vmatprep.subr.bf16.mxu0 %v1579_v15  ;;  %v1090_v15 = vld [vmem:[%s2029_s2] sm:$0x3] }
  0x56   : > { %497 = vmatmul.mubr.bf16.gmra.mrb[8].mxu1 %v1906_v16 }
  0x57   : > { %740 = vmatmul.mubr.bf16.gmra.mrb[8].mxu0 %v1886_v10  ;;  %1410 = vmatpush1.bf16.msra.mxu1 %v1577_v17 }
  0x58   : > { %1010 = vmatpush1.bf16.msra.mxu0 %v1577_v17  ;;  %1395 = vmatprep.subr.bf16.mxu1 %v1582_v18 }
  0x59   : > { %1011 = vmatprep.subr.bf16.mxu0 %v1582_v18  ;;  %506 = vmatprep.mubr.bf16.mxu1 %v1610_v19 }
  0x5a   : > { %749 = vmatprep.mubr.bf16.mxu0 %v1895_v13 }
  0x5b   : > { %1411 = vmatpush1.bf16.msra.mxu1 %v1580_v20 }
  0x5c   : > { %1012 = vmatpush1.bf16.msra.mxu0 %v1580_v20  ;;  %1396 = vmatprep.subr.bf16.mxu1 %v1585_v21 }
  0x5d   : > { %1013 = vmatprep.subr.bf16.mxu0 %v1585_v21 }
  0x5e   : > { %507 = vmatmul.mubr.bf16.gmra.mrb[12].mxu1 %v1925_v22 }
  0x5f   : > { %750 = vmatmul.mubr.bf16.gmra.mrb[12].mxu0 %v1906_v16  ;;  %1412 = vmatpush1.bf16.msra.mxu1 %v1583_v23 }
  0x60   : > { %1014 = vmatpush1.bf16.msra.mxu0 %v1583_v23  ;;  %1397 = vmatprep.subr.bf16.mxu1 %v1588_v24 }
  0x61   : > { %1015 = vmatprep.subr.bf16.mxu0 %v1588_v24  ;;  %1033 = vmatprep.mubr.bf16.mxu0 %v1592_v7 }
  0x62   : > { %1053 = vmatprep.mubr.bf16.mxu1 %v1610_v19 }
  0x63   : > { %1413 = vmatpush1.bf16.msra.mxu1 %v1586_v25 }
  0x64   : > { %1016 = vmatpush1.bf16.msra.mxu0 %v1586_v25  ;;  %1398 = vmatprep.subr.bf16.mxu1 %v1591_v26 }
  0x65   : > { %1017 = vmatprep.subr.bf16.mxu0 %v1591_v26 }
  0x67   : > { %1414 = vmatpush1.bf16.msra.mxu1 %v1589_v27 }
  0x68   : > { %1018 = vmatpush1.bf16.msra.mxu0 %v1589_v27  ;;  %1399 = vmatprep.subr.bf16.mxu1 %v1596_v28 }
  0x69   : > { %1019 = vmatprep.subr.bf16.mxu0 %v1596_v28 }
  0x6b   : > { %1415 = vmatpush1.bf16.msra.mxu1 %v1594_v29 }
  0x6c   : > { %1020 = vmatpush1.bf16.msra.mxu0 %v1594_v29  ;;  %1400 = vmatprep.subr.bf16.mxu1 %v1600_v30 }
  0x6d   : > { %1021 = vmatprep.subr.bf16.mxu0 %v1600_v30 }
  0x6f   : > { %1416 = vmatpush1.bf16.msra.mxu1 %v1598_v31 }
  0x70   : > { %1022 = vmatpush1.bf16.msra.mxu0 %v1598_v31  ;;  %1401 = vmatprep.subr.bf16.mxu1 %v1605_v32 }
  0x71   : > { %1023 = vmatprep.subr.bf16.mxu0 %v1605_v32 }
  0x73   : > { %1417 = vmatpush1.bf16.msra.mxu1 %v1603_v33 }
  0x74   : > { %1024 = vmatpush1.bf16.msra.mxu0 %v1603_v33  ;;  %1402 = vmatprep.subr.bf16.mxu1 %v1609_v34 }
  0x75   : > { %1025 = vmatprep.subr.bf16.mxu0 %v1609_v34 }
  0x77   : > { %1418 = vmatpush1.bf16.msra.mxu1 %v1607_v35 }
  0x78   : > { %1026 = vmatpush1.bf16.msra.mxu0 %v1607_v35  ;;  %1403 = vmatprep.subr.bf16.mxu1 %v1614_v36 }
  0x79   : > { %1027 = vmatprep.subr.bf16.mxu0 %v1614_v36 }
  0x7b   : > { %1419 = vmatpush1.bf16.msra.mxu1 %v1612_v37 }
  0x7c   : > { %1028 = vmatpush1.bf16.msra.mxu0 %v1612_v37  ;;  %1404 = vmatprep.subr.bf16.mxu1 %v1618_v38 }
  0x7d   : > { %1029 = vmatprep.subr.bf16.mxu0 %v1618_v38 }
  0x7f   : > { %1420 = vmatpush1.bf16.msra.mxu1 %v1616_v39 }
  0x80   : > { %1030 = vmatpush1.bf16.msra.mxu0 %v1616_v39  ;;  %1405 = vmatprep.subr.bf16.mxu1 %v1621_v40 }
  0x81   : > { %1031 = vmatprep.subr.bf16.mxu0 %v1621_v40 }
  0x83   : > { %1421 = vmatpush1.bf16.msra.mxu1 %v1619_v41 }
  0x84   : > { %1032 = vmatpush1.bf16.msra.mxu0 %v1619_v41 }
  0x86   : > { %1054 = vmatmul.mubr.bf16.vlgmr.msra.gmra.mrb[16].mxu1 %v1925_v22 }
  0x87   : > { %1034 = vmatmul.mubr.bf16.vlgmr.msra.gmra.mrb[0].mxu0 %v1886_v10  ;;  %1063 = vmatprep.mubr.bf16.mxu1 %v1622_v42 }
  0x88   : > { %1043 = vmatprep.mubr.bf16.mxu0 %v1895_v13  ;;  %v1093_v13 = vshrl.u32 %v1092_v12, 7 }
  0x8a   : > { %v1094_v14 = vsub.s32 0, %v1093_v13 }
  0x8c   : > { %v1095_v17 = vrot.slane %v1090_v15, %v1094_v14 }
  0x8e   : > { %1064 = vmatmul.mubr.bf16.gmra.mrb[20].mxu1 %v1624_v43 }
  0x8f   : > { %1044 = vmatmul.mubr.bf16.gmra.mrb[4].mxu0 %v1906_v16  ;;  %v1098_v16 = vsub.s32 1, %v1093_v13 }
  0x91   : > { %v2005_v20 = vrot.slane %v1090_v15, %v1098_v16 }
 0x119   : > { %v478_v44 = vpop.f32.mrb[0].mxu1 }
 0x11a   : > { %v480_v45 = vpop.f32.mrb[1].mxu1 }
 0x11b   : > { %v482_v46 = vpop.f32.mrb[2].mxu1 }
 0x11c   : > { %v484_v47 = vpop.f32.mrb[3].mxu1 }
 0x121   : > { %v1992_v48 = vpop.f32.mrb[4].mxu1 }
 0x122   : > { %v1994_v49 = vpop.f32.mrb[5].mxu1 }
 0x123   : > { %v1996_v50 = vpop.f32.mrb[6].mxu1 }
 0x124   : > { %v1998_v51 = vpop.f32.mrb[7].mxu1 }
 0x129   : > { %v498_v52 = vpop.f32.mrb[8].mxu1 }
 0x12a   : > { %v741_v53 = vpop.f32.mrb[8].mxu0  ;;  %v500_v55 = vpop.f32.mrb[9].mxu1 }
 0x12b   : > { %v742_v54 = vadd.f32 %v741_v53, %v498_v52  ;;  %v743_v56 = vpop.f32.mrb[9].mxu0  ;;  %v502_v58 = vpop.f32.mrb[10].mxu1 }
 0x12c   : > { %v744_v57 = vadd.f32 %v743_v56, %v500_v55  ;;  %v745_v59 = vpop.f32.mrb[10].mxu0  ;;  %v504_v61 = vpop.f32.mrb[11].mxu1 }
 0x12d   : > { %v746_v60 = vadd.f32 %v745_v59, %v502_v58  ;;  %v747_v62 = vpop.f32.mrb[11].mxu0 }
 0x12e   : > { %v748_v63 = vadd.f32 %v747_v62, %v504_v61 }
 0x131   : > { %v508_v0 = vpop.f32.mrb[12].mxu1 }
 0x132   : > { %v751_v1 = vpop.f32.mrb[12].mxu0  ;;  %v510_v3 = vpop.f32.mrb[13].mxu1 }
 0x133   : > { %v752_v2 = vadd.f32 %v751_v1, %v508_v0  ;;  %v753_v4 = vpop.f32.mrb[13].mxu0  ;;  %v512_v6 = vpop.f32.mrb[14].mxu1 }
 0x134   : > { %v754_v5 = vadd.f32 %v753_v4, %v510_v3  ;;  %v755_v7 = vpop.f32.mrb[14].mxu0  ;;  %v514_v9 = vpop.f32.mrb[15].mxu1 }
 0x135   : > { %v756_v8 = vadd.f32 %v755_v7, %v512_v6  ;;  %v757_v10 = vpop.f32.mrb[15].mxu0 }
 0x136   : > { %v2000_v11 = vadd.f32 %v757_v10, %v514_v9 }
 0x159   : > { %v1055_v19 = vpop.f32.mrb[16].mxu1 }
 0x15a   : > { %v1035_v18 = vpop.f32.mrb[0].mxu0  ;;  %v1082_v22 = vadd.f32 %v1055_v19, %v742_v54  ;;  %v1057_v24 = vpop.f32.mrb[17].mxu1 }
 0x15b   : > { %v1422_v21 = vadd.f32 %v1035_v18, %v478_v44  ;;  %v1037_v23 = vpop.f32.mrb[1].mxu0  ;;  %v1083_v26 = vadd.f32 %v1057_v24, %v744_v57  ;;  %v1059_v28 = vpop.f32.mrb[18].mxu1 }
 0x15c   : > { %v1423_v25 = vadd.f32 %v1037_v23, %v480_v45  ;;  %v1039_v27 = vpop.f32.mrb[2].mxu0  ;;  %v1110_v30 = vadd.f32 %v1095_v17, %v1082_v22  ;;  %v1084_v32 = vadd.f32 %v1059_v28, %v746_v60  ;;  %v1061_v34 = vpop.f32.mrb[19].mxu1 }
 0x15d   : > { %v1102_v29 = vadd.f32 %v1422_v21, %v1095_v17  ;;  %v1424_v31 = vadd.f32 %v1039_v27, %v482_v46  ;;  %v1041_v33 = vpop.f32.mrb[3].mxu0  ;;  %v1111_v36 = vadd.f32 %v2005_v20, %v1083_v26  ;;  %v1085_v38 = vadd.f32 %v1061_v34, %v748_v63 }
 0x15e   : > { %v1103_v35 = vadd.f32 %v1423_v25, %v2005_v20  ;;  %v1425_v37 = vadd.f32 %v1041_v33, %v484_v47  ;;  %v1112_v40 = vadd.f32 %v1095_v17, %v1084_v32  ;;  %v1126_v44 = vmax.f32 %v1110_v30, 0.0 }
 0x15f   : > { %v1104_v39 = vadd.f32 %v1424_v31, %v1095_v17  ;;  %v1113_v42 = vadd.f32 %v2005_v20, %v1085_v38  ;;  %v1118_v43 = vmax.f32 %v1102_v29, 0.0  ;;  %v1127_v53 = vmax.f32 %v1111_v36, 0.0 }
 0x160   : > { %v1105_v41 = vadd.f32 %v1425_v37, %v2005_v20  ;;  %v1128_v52 = vmax.f32 %v1112_v40, 0.0  ;;  %v1119_v46 = vmax.f32 %v1103_v35, 0.0 }
 0x161   : > { %v1120_v45 = vmax.f32 %v1104_v39, 0.0  ;;  %v1129_v55 = vmax.f32 %v1113_v42, 0.0  ;;  %v1065_v57 = vpop.f32.mrb[20].mxu1 }
 0x162   : > { %v1121_v54 = vmax.f32 %v1105_v41, 0.0  ;;  %v1045_v56 = vpop.f32.mrb[4].mxu0  ;;  %v1138_v59 = vpack.c.bf16 %v1128_v52, %v1126_v44  ;;  %v1086_v60 = vadd.f32 %v1065_v57, %v752_v2  ;;  %v1067_v62 = vpop.f32.mrb[21].mxu1 }
 0x163   : > { %v1134_v58 = vpack.c.bf16 %v1120_v45, %v1118_v43  ;;  %v1426_v47 = vadd.f32 %v1045_v56, %v1992_v48  ;;  %v1047_v61 = vpop.f32.mrb[5].mxu0  ;;  %v1139_v0 = vpack.c.bf16 %v1129_v55, %v1127_v53  ;;  %v1087_v3 = vadd.f32 %v1067_v62, %v754_v5  ;;  %v1069_v6 = vpop.f32.mrb[22].mxu1 }
 0x164   : > { %v1135_v63 = vpack.c.bf16 %v1121_v54, %v1119_v46  ;;  %v1427_v1 = vadd.f32 %v1047_v61, %v1994_v49  ;;  %v1049_v4 = vpop.f32.mrb[6].mxu0  ;;  %v1114_v9 = vadd.f32 %v1095_v17, %v1086_v60  ;;  %v1088_v12 = vadd.f32 %v1069_v6, %v756_v8  ;;  %v1071_v14 = vpop.f32.mrb[23].mxu1 }
 0x165   : > { %v1106_v7 = vadd.f32 %v1426_v47, %v1095_v17  ;;  %v1428_v10 = vadd.f32 %v1049_v4, %v1996_v50  ;;  %v1051_v13 = vpop.f32.mrb[7].mxu0  ;;  %v1144_v16 = vmax.bf16 %v1139_v0, %v1138_v59  ;;  %v1115_v19 = vadd.f32 %v2005_v20, %v1087_v3 }
 0x166   : > { %v1142_v15 = vmax.bf16 %v1135_v63, %v1134_v58  ;;  %v1116_v2 = vadd.f32 %v1095_v17, %v1088_v12  ;;  %v1107_v18 = vadd.f32 %v1427_v1, %v2005_v20  ;;  %v1429_v49 = vadd.f32 %v1051_v13, %v1998_v51 }
 0x167   : > { %v1108_v48 = vadd.f32 %v1428_v10, %v1095_v17  ;;  %v1089_v5 = vadd.f32 %v1071_v14, %v2000_v11  ;;  %v1122_v21 = vmax.f32 %v1106_v7, 0.0  ;;  %v1130_v22 = vmax.f32 %v1114_v9, 0.0 }
 0x168   : > { %v1132_v50 = vmax.f32 %v1116_v2, 0.0  ;;  %v1109_v8 = vadd.f32 %v1429_v49, %v2005_v20  ;;  %v1123_v17 = vmax.f32 %v1107_v18, 0.0  ;;  %v1131_v27 = vmax.f32 %v1115_v19, 0.0 }
 0x169   : > { %v1124_v23 = vmax.f32 %v1108_v48, 0.0  ;;  %v1117_v24 = vadd.f32 %v2005_v20, %v1089_v5 }
 0x16a   : > { %v1140_v26 = vpack.c.bf16 %v1132_v50, %v1130_v22  ;;  %v1125_v28 = vmax.f32 %v1109_v8, 0.0 }
 0x16b   : > { %v1136_v25 = vpack.c.bf16 %v1124_v23, %v1122_v21  ;;  %v1133_v29 = vmax.f32 %v1117_v24, 0.0 }
 0x16c   : > { %v1137_v30 = vpack.c.bf16 %v1125_v28, %v1123_v17 }
 0x16d   : > { %v1141_v31 = vpack.c.bf16 %v1133_v29, %v1131_v27 }
 0x16e   : > { %v1143_v51 = vmax.bf16 %v1137_v30, %v1136_v25 }
 0x16f   : > { %v1145_v32 = vmax.bf16 %v1141_v31, %v1140_v26 }
 0x170   : > { %v1146_v11 = vmax.bf16 %v1143_v51, %v1142_v15 }
 0x171   : > { %v1147_v33 = vmax.bf16 %v1145_v32, %v1144_v16 }
 0x172   : > { %1148 = vst [vmem:[%s168_s18] sm:$0x1] %v1146_v11 }
 0x173   : > { %1149 = vst [vmem:[%s168_s18 + $0x1] sm:$0x1] %v1147_v33 }
 0x174 PF: > { %s13_s12 = sadd.s32 1, %s1631_s12  }
 0x175   : > { %p10_p4 = scmp.ge.s32.totalorder %s13_s12, 4  }
 0x177   :  { %12 = sbr.rel (!%p10_p4) target bundleno = 1 (0x1), region = 64 }

// kernel: tile.23
= control target key start
LH: loop header
LB: loop body
LE: loop exit
PB: predicated region body
PF: predicated region fallthrough
CT: control target
= control target key end

     0   :  { %s22_s0 = inlined_call_operand.vmem [shape: f32[128], index: 0, kind: input, shape index: {}]   ;;  %s23_s1 = inlined_call_operand.vmem [shape: f32[4,128], index: 1, kind: output, shape index: {}]  }
   0x1   :  { %v4_v0 = vld [vmem:[%s22_s0] ss:$0 sm:$0xff] }
   0x2   :  { %5 = vst [vmem:[%s23_s1] sm:$0xf] %v4_v0 }

// kernel: denoising_autoencoder.11
= control target key start
LH: loop header
LB: loop body
LE: loop exit
PB: predicated region body
PF: predicated region fallthrough
CT: control target
= control target key end

     0   :  { %s4795_s12 = smov 0   ;;  %s6008_s0 = inlined_call_operand.vmem [shape: bf16[2,64,512], index: 0, kind: input, shape index: {}]   ;;  %s6009_s1 = inlined_call_operand.vmem [shape: bf16[3,512,512], index: 1, kind: input, shape index: {}]   ;;  %s6010_s2 = inlined_call_operand.vmem [shape: f32[1,512], index: 2, kind: input, shape index: {}]   ;;  %s6011_s3 = inlined_call_operand.vmem [shape: bf16[2,1,1,256], index: 3, kind: output, shape index: {}]  }
   0x1 LB: > { %s3396_s13 = sadd.s32 4294967295, %s4772_s12   ;;  %p3400_p0 = scmp.ge.s32.totalorder %s4772_s12, 1  ;;  %s4772_s12 = sphi %s4795_s12, %s13_s12  }
   0x2   : > { %p137_p1 = scmp.lt.s32.totalorder %s4772_s12, 3 }
   0x4   : > { %p138_p2 = pnand %p3400_p0, %p137_p1 }
   0x5   : > { %v4156_v0 = vld [vmem:[%s6009_s1 + $0x404] ss:$16 sps:$4 sm:$0xff] (!%p138_p2)   ;;  %v4158_v1 = vld [vmem:[%s6009_s1 + $0x40c] ss:$16 sps:$4 sm:$0xff] (!%p138_p2)   ;;  %v4160_v2 = vld [vmem:[%s6009_s1 + $0x400] ss:$16 sps:$4 sm:$0xff] (!%p138_p2)  }
   0x6   : > { %141 = sbr.rel (%p138_p2) target bundleno = 631 (0x277), region = 32  ;;  %1118 = vmatprep.subr.bf16.mxu0 (!%p138_p2), %v4156_v0  ;;  %v4161_v3 = vld [vmem:[%s6009_s1 + $0x408] ss:$16 sps:$4 sm:$0xff] (!%p138_p2)   ;;  %1224 = vmatprep.subr.bf16.mxu1 (!%p138_p2), %v4158_v1  ;;  %v4162_v4 = vld [vmem:[%s6009_s1 + $0x424] ss:$16 sps:$4 sm:$0xff] (!%p138_p2)   ;;  %p160_p3 = scmp.lt.s32.totalorder (!%p138_p2), %s3396_s13, 1 }
   0x7   : > { %1119 = vmatpush1.bf16.msra.mxu0 (!%p138_p2), %v4160_v2  ;;  %1225 = vmatpush1.bf16.msra.mxu1 (!%p138_p2), %v4161_v3  ;;  %v4164_v5 = vld [vmem:[%s6009_s1 + $0x42c] ss:$16 sps:$4 sm:$0xff] (!%p138_p2)   ;;  %v4166_v6 = vld [vmem:[%s6009_s1 + $0x420] ss:$16 sps:$4 sm:$0xff] (!%p138_p2)   ;;  %v4167_v7 = vld [vmem:[%s6009_s1 + $0x428] ss:$16 sps:$4 sm:$0xff] (!%p138_p2)  }
   0x8   : > { %1120 = vmatprep.subr.bf16.mxu0 (!%p138_p2), %v4162_v4  ;;  %1226 = vmatprep.subr.bf16.mxu1 (!%p138_p2), %v4164_v5  ;;  %v4168_v8 = vld [vmem:[%s6009_s1 + $0x444] ss:$16 sps:$4 sm:$0xff] (!%p138_p2)   ;;  %v4170_v9 = vld [vmem:[%s6009_s1 + $0x44c] ss:$16 sps:$4 sm:$0xff] (!%p138_p2)   ;;  %v4172_v10 = vld [vmem:[%s6009_s1 + $0x440] ss:$16 sps:$4 sm:$0xff] (!%p138_p2)  }
   0x9   : > { %v4173_v11 = vld [vmem:[%s6009_s1 + $0x448] ss:$16 sps:$4 sm:$0xff] (!%p138_p2)   ;;  %v4174_v12 = vld [vmem:[%s6009_s1 + $0x464] ss:$16 sps:$4 sm:$0xff] (!%p138_p2)   ;;  %v4176_v13 = vld [vmem:[%s6009_s1 + $0x46c] ss:$16 sps:$4 sm:$0xff] (!%p138_p2)  }
   0xa   : > { %v4178_v14 = vld [vmem:[%s6009_s1 + $0x460] ss:$16 sps:$4 sm:$0xff] (!%p138_p2)   ;;  %v4179_v15 = vld [vmem:[%s6009_s1 + $0x468] ss:$16 sps:$4 sm:$0xff] (!%p138_p2)   ;;  %v4180_v16 = vld [vmem:[%s6009_s1 + $0x484] ss:$16 sps:$4 sm:$0xff] (!%p138_p2)  }
   0xb   : > { %1121 = vmatpush1.bf16.msra.mxu0 (!%p138_p2), %v4166_v6  ;;  %1227 = vmatpush1.bf16.msra.mxu1 (!%p138_p2), %v4167_v7  ;;  %v4182_v17 = vld [vmem:[%s6009_s1 + $0x48c] ss:$16 sps:$4 sm:$0xff] (!%p138_p2)   ;;  %v4184_v18 = vld [vmem:[%s6009_s1 + $0x480] ss:$16 sps:$4 sm:$0xff] (!%p138_p2)   ;;  %v4185_v19 = vld [vmem:[%s6009_s1 + $0x488] ss:$16 sps:$4 sm:$0xff] (!%p138_p2)  }
   0xc   : > { %1122 = vmatprep.subr.bf16.mxu0 (!%p138_p2), %v4168_v8  ;;  %1228 = vmatprep.subr.bf16.mxu1 (!%p138_p2), %v4170_v9  ;;  %v4186_v20 = vld [vmem:[%s6009_s1 + $0x4a4] ss:$16 sps:$4 sm:$0xff] (!%p138_p2)   ;;  %v4188_v21 = vld [vmem:[%s6009_s1 + $0x4ac] ss:$16 sps:$4 sm:$0xff] (!%p138_p2)   ;;  %v4190_v22 = vld [vmem:[%s6009_s1 + $0x4a0] ss:$16 sps:$4 sm:$0xff] (!%p138_p2)  }
   0xd   : > { %v4191_v23 = vld [vmem:[%s6009_s1 + $0x4a8] ss:$16 sps:$4 sm:$0xff]   ;;  %v4192_v24 = vld [vmem:[%s6009_s1 + $0x4c4] ss:$16 sps:$4 sm:$0xff]   ;;  %v4194_v25 = vld [vmem:[%s6009_s1 + $0x4cc] ss:$16 sps:$4 sm:$0xff]  }
   0xe   : > { %v4196_v26 = vld [vmem:[%s6009_s1 + $0x4c0] ss:$16 sps:$4 sm:$0xff]   ;;  %v4197_v27 = vld [vmem:[%s6009_s1 + $0x4c8] ss:$16 sps:$4 sm:$0xff]   ;;  %v4198_v28 = vld [vmem:[%s6009_s1 + $0x4e4] ss:$16 sps:$4 sm:$0xff]  }
   0xf   : > { %1123 = vmatpush1.bf16.msra.mxu0 %v4172_v10  ;;  %1229 = vmatpush1.bf16.msra.mxu1 %v4173_v11  ;;  %v4200_v29 = vld [vmem:[%s6009_s1 + $0x4ec] ss:$16 sps:$4 sm:$0xff]   ;;  %v4202_v30 = vld [vmem:[%s6009_s1 + $0x4e0] ss:$16 sps:$4 sm:$0xff]   ;;  %v4203_v31 = vld [vmem:[%s6009_s1 + $0x4e8] ss:$16 sps:$4 sm:$0xff]  }
  0x10   : > { %1124 = vmatprep.subr.bf16.mxu0 %v4174_v12  ;;  %1230 = vmatprep.subr.bf16.mxu1 %v4176_v13  ;;  %v4204_v32 = vld [vmem:[%s6009_s1 + $0x504] ss:$16 sps:$4 sm:$0xff]   ;;  %v4206_v33 = vld [vmem:[%s6009_s1 + $0x50c] ss:$16 sps:$4 sm:$0xff]   ;;  %v4208_v34 = vld [vmem:[%s6009_s1 + $0x500] ss:$16 sps:$4 sm:$0xff]  }
  0x11   : > { %v4209_v35 = vld [vmem:[%s6009_s1 + $0x508] ss:$16 sps:$4 sm:$0xff]   ;;  %v4210_v36 = vld [vmem:[%s6009_s1 + $0x524] ss:$16 sps:$4 sm:$0xff]   ;;  %v4212_v37 = vld [vmem:[%s6009_s1 + $0x52c] ss:$16 sps:$4 sm:$0xff]  }
  0x12   : > { %s6013_s13 = smov (!%p160_p3, %s3396_s13), 1  ;;  %v4214_v38 = vld [vmem:[%s6009_s1 + $0x520] ss:$16 sps:$4 sm:$0xff]   ;;  %v4215_v39 = vld [vmem:[%s6009_s1 + $0x528] ss:$16 sps:$4 sm:$0xff]   ;;  %vm3333_vm0 = vcmask 1040384  }
  0x13   : > { %1125 = vmatpush1.bf16.msra.mxu0 %v4178_v14  ;;  %1231 = vmatpush1.bf16.msra.mxu1 %v4179_v15  ;;  %v4216_v40 = vld [vmem:[%s6009_s1 + $0x544] ss:$16 sps:$4 sm:$0xff]   ;;  %v4218_v41 = vld [vmem:[%s6009_s1 + $0x54c] ss:$16 sps:$4 sm:$0xff]   ;;  %s4066_s23 = sshll.u32 %s6013_s13, 7  ;;  %vm3336_vm2 = vcmask 1041409  }
  0x14   : > { %1126 = vmatprep.subr.bf16.mxu0 %v4180_v16  ;;  %1232 = vmatprep.subr.bf16.mxu1 %v4182_v17  ;;  %v4220_v42 = vld [vmem:[%s6009_s1 + $0x540] ss:$16 sps:$4 sm:$0xff]   ;;  %v4221_v43 = vld [vmem:[%s6009_s1 + $0x548] ss:$16 sps:$4 sm:$0xff]   ;;  %v4222_v44 = vld [vmem:[%s6009_s1 + $0x564] ss:$16 sps:$4 sm:$0xff]   ;;  %s4948_s5 = scalar_lea.vmem %s6008_s0, %s4066_s23 }
  0x15   : > { %v4224_v45 = vld [vmem:[%s6009_s1 + $0x56c] ss:$16 sps:$4 sm:$0xff]   ;;  %v4226_v46 = vld [vmem:[%s6009_s1 + $0x560] ss:$16 sps:$4 sm:$0xff]   ;;  %v4252_v47 = vld [vmem:[%s4948_s5 + $0x24] ss:$16 sps:$4 sm:$0xff]  }
  0x16   : > { %v4227_v48 = vld [vmem:[%s6009_s1 + $0x568] ss:$16 sps:$4 sm:$0xff]   ;;  %v4228_v49 = vld [vmem:[%s6009_s1 + $0x584] ss:$16 sps:$4 sm:$0xff]   ;;  %v4230_v50 = vld [vmem:[%s6009_s1 + $0x58c] ss:$16 sps:$4 sm:$0xff]   ;;  %1150 = vmatprep.mubr.bf16.mxu0 %v4252_v47  ;;  %1256 = vmatprep.mubr.bf16.mxu1 %v4252_v47 }
  0x17   : > { %1127 = vmatpush1.bf16.msra.mxu0 %v4184_v18  ;;  %1233 = vmatpush1.bf16.msra.mxu1 %v4185_v19  ;;  %v4232_v51 = vld [vmem:[%s6009_s1 + $0x580] ss:$16 sps:$4 sm:$0xff]   ;;  %v4233_v52 = vld [vmem:[%s6009_s1 + $0x588] ss:$16 sps:$4 sm:$0xff]   ;;  %v4234_v53 = vld [vmem:[%s6009_s1 + $0x5a4] ss:$16 sps:$4 sm:$0xff]  }
  0x18   : > { %1128 = vmatprep.subr.bf16.mxu0 %v4186_v20  ;;  %1234 = vmatprep.subr.bf16.mxu1 %v4188_v21  ;;  %v4236_v54 = vld [vmem:[%s6009_s1 + $0x5ac] ss:$16 sps:$4 sm:$0xff]   ;;  %v4238_v55 = vld [vmem:[%s6009_s1 + $0x5a0] ss:$16 sps:$4 sm:$0xff]   ;;  %v4239_v56 = vld [vmem:[%s6009_s1 + $0x5a8] ss:$16 sps:$4 sm:$0xff]  }
  0x19   : > { %v4240_v57 = vld [vmem:[%s6009_s1 + $0x5c4] ss:$16 sps:$4 sm:$0xff]   ;;  %v4242_v58 = vld [vmem:[%s6009_s1 + $0x5cc] ss:$16 sps:$4 sm:$0xff]   ;;  %v4244_v59 = vld [vmem:[%s6009_s1 + $0x5c0] ss:$16 sps:$4 sm:$0xff]  }
  0x1a   : > { %v4245_v60 = vld [vmem:[%s6009_s1 + $0x5c8] ss:$16 sps:$4 sm:$0xff]   ;;  %v4246_v61 = vld [vmem:[%s6009_s1 + $0x5e4] ss:$16 sps:$4 sm:$0xff]   ;;  %v4248_v62 = vld [vmem:[%s6009_s1 + $0x5ec] ss:$16 sps:$4 sm:$0xff]  }
  0x1b   : > { %1129 = vmatpush1.bf16.msra.mxu0 %v4190_v22  ;;  %1235 = vmatpush1.bf16.msra.mxu1 %v4191_v23  ;;  %v4250_v63 = vld [vmem:[%s6009_s1 + $0x5e0] ss:$16 sps:$4 sm:$0xff]   ;;  %v4251_v0 = vld [vmem:[%s6009_s1 + $0x5e8] ss:$16 sps:$4 sm:$0xff]   ;;  %v4256_v1 = vld [vmem:[%s6009_s1 + $0x604] ss:$16 sps:$4 sm:$0xff]  }
  0x1c   : > { %1130 = vmatprep.subr.bf16.mxu0 %v4192_v24  ;;  %1236 = vmatprep.subr.bf16.mxu1 %v4194_v25  ;;  %v4259_v2 = vld [vmem:[%s6009_s1 + $0x60c] ss:$16 sps:$4 sm:$0xff]   ;;  %v4254_v3 = vld [vmem:[%s6009_s1 + $0x600] ss:$16 sps:$4 sm:$0xff]   ;;  %v4257_v4 = vld [vmem:[%s6009_s1 + $0x608] ss:$16 sps:$4 sm:$0xff]  }
  0x1d   : > { %v4260_v5 = vld [vmem:[%s4948_s5 + $0x20] ss:$16 sps:$4 sm:$0xff]   ;;  %v4263_v6 = vld [vmem:[%s6009_s1 + $0x624] ss:$16 sps:$4 sm:$0xff]   ;;  %v4266_v7 = vld [vmem:[%s6009_s1 + $0x62c] ss:$16 sps:$4 sm:$0xff]  }
  0x1e   : > { %v4261_v8 = vld [vmem:[%s6009_s1 + $0x620] ss:$16 sps:$4 sm:$0xff]   ;;  %v4264_v9 = vld [vmem:[%s6009_s1 + $0x628] ss:$16 sps:$4 sm:$0xff]   ;;  %v4269_v10 = vld [vmem:[%s6009_s1 + $0x644] ss:$16 sps:$4 sm:$0xff]  }
  0x1f   : > { %1131 = vmatpush1.bf16.msra.mxu0 %v4196_v26  ;;  %1237 = vmatpush1.bf16.msra.mxu1 %v4197_v27  ;;  %v4272_v11 = vld [vmem:[%s6009_s1 + $0x64c] ss:$16 sps:$4 sm:$0xff]   ;;  %v4267_v12 = vld [vmem:[%s6009_s1 + $0x640] ss:$16 sps:$4 sm:$0xff]   ;;  %v4270_v13 = vld [vmem:[%s6009_s1 + $0x648] ss:$16 sps:$4 sm:$0xff]  }
  0x20   : > { %1132 = vmatprep.subr.bf16.mxu0 %v4198_v28  ;;  %1238 = vmatprep.subr.bf16.mxu1 %v4200_v29  ;;  %v4275_v14 = vld [vmem:[%s6009_s1 + $0x664] ss:$16 sps:$4 sm:$0xff]   ;;  %v4278_v15 = vld [vmem:[%s6009_s1 + $0x66c] ss:$16 sps:$4 sm:$0xff]   ;;  %v4273_v16 = vld [vmem:[%s6009_s1 + $0x660] ss:$16 sps:$4 sm:$0xff]  }
  0x21   : > { %v4276_v17 = vld [vmem:[%s6009_s1 + $0x668] ss:$16 sps:$4 sm:$0xff]   ;;  %v4281_v18 = vld [vmem:[%s6009_s1 + $0x684] ss:$16 sps:$4 sm:$0xff]   ;;  %v4284_v19 = vld [vmem:[%s6009_s1 + $0x68c] ss:$16 sps:$4 sm:$0xff]  }
  0x22   : > { %v4279_v20 = vld [vmem:[%s6009_s1 + $0x680] ss:$16 sps:$4 sm:$0xff]   ;;  %v4282_v21 = vld [vmem:[%s6009_s1 + $0x688] ss:$16 sps:$4 sm:$0xff]   ;;  %v4287_v22 = vld [vmem:[%s6009_s1 + $0x6a4] ss:$16 sps:$4 sm:$0xff]  }
  0x23   : > { %1133 = vmatpush1.bf16.msra.mxu0 %v4202_v30  ;;  %1239 = vmatpush1.bf16.msra.mxu1 %v4203_v31  ;;  %v4290_v23 = vld [vmem:[%s6009_s1 + $0x6ac] ss:$16 sps:$4 sm:$0xff]   ;;  %v4339_v24 = vld [vmem:[%s4948_s5 + $0x44] ss:$16 sps:$4 sm:$0xff]   ;;  %v4285_v25 = vld [vmem:[%s6009_s1 + $0x6a0] ss:$16 sps:$4 sm:$0xff]  }
  0x24   : > { %1134 = vmatprep.subr.bf16.mxu0 %v4204_v32  ;;  %1240 = vmatprep.subr.bf16.mxu1 %v4206_v33  ;;  %v4288_v26 = vld [vmem:[%s6009_s1 + $0x6a8] ss:$16 sps:$4 sm:$0xff]   ;;  %v4293_v27 = vld [vmem:[%s6009_s1 + $0x6c4] ss:$16 sps:$4 sm:$0xff]   ;;  %v4296_v28 = vld [vmem:[%s6009_s1 + $0x6cc] ss:$16 sps:$4 sm:$0xff]  }
  0x25   : > { %v4347_v29 = vld [vmem:[%s4948_s5 + $0x40] ss:$16 sps:$4 sm:$0xff]   ;;  %v4294_v31 = vld [vmem:[%s6009_s1 + $0x6c8] ss:$16 sps:$4 sm:$0xff]   ;;  %v4299_v32 = vld [vmem:[%s6009_s1 + $0x6e4] ss:$16 sps:$4 sm:$0xff]  }
  0x26   : > { %v4291_v30 = vld [vmem:[%s6009_s1 + $0x6c0] ss:$16 sps:$4 sm:$0xff]   ;;  %v4302_v33 = vld [vmem:[%s6009_s1 + $0x6ec] ss:$16 sps:$4 sm:$0xff]   ;;  %vm3334_vm1 = vsmask.f32 256 }
  0x27   : > { %1135 = vmatpush1.bf16.msra.mxu0 %v4208_v34  ;;  %1241 = vmatpush1.bf16.msra.mxu1 %v4209_v35  ;;  %v4356_v34 = vld [vmem:[%s4948_s5 + $0x2c] ss:$16 sps:$4 sm:$0xff]   ;;  %v4297_v35 = vld [vmem:[%s6009_s1 + $0x6e0] ss:$16 sps:$4 sm:$0xff]   ;;  %vm3337_vm3 = vsmask.f32 1280  ;;  %vm3335_vm4 = vmand %vm3333_vm0, %vm3334_vm1 }
  0x28   : > { %1136 = vmatprep.subr.bf16.mxu0 %v4210_v36  ;;  %1242 = vmatprep.subr.bf16.mxu1 %v4212_v37  ;;  %v4300_v36 = vld [vmem:[%s6009_s1 + $0x6e8] ss:$16 sps:$4 sm:$0xff]   ;;  %v4305_v37 = vld [vmem:[%s6009_s1 + $0x704] ss:$16 sps:$4 sm:$0xff]   ;;  %v4315_v47 = vld [vmem:[%s6009_s1 + $0x740] ss:$16 sps:$4 sm:$0xff]  }
  0x29   : > { %vm3338_vm5 = vmand %vm3336_vm2, %vm3337_vm3 }
  0x2a   : > { %vm3339_vm6 = vmor %vm3338_vm5, %vm3335_vm4 }
  0x2b   : > { %1137 = vmatpush1.bf16.msra.mxu0 %v4214_v38  ;;  %1243 = vmatpush1.bf16.msra.mxu1 %v4215_v39  ;;  %v4308_v38 = vld [vmem:[%s6009_s1 + $0x70c] ss:$16 sps:$4 sm:$0xff]   ;;  %v4303_v39 = vld [vmem:[%s6009_s1 + $0x700] ss:$16 sps:$4 sm:$0xff]  }
  0x2c   : > { %1138 = vmatprep.subr.bf16.mxu0 %v4216_v40  ;;  %1244 = vmatprep.subr.bf16.mxu1 %v4218_v41  ;;  %v4306_v40 = vld [vmem:[%s6009_s1 + $0x708] ss:$16 sps:$4 sm:$0xff]   ;;  %v4311_v41 = vld [vmem:[%s6009_s1 + $0x724] ss:$16 sps:$4 sm:$0xff]  }
  0x2f   : > { %1139 = vmatpush1.bf16.msra.mxu0 %v4220_v42  ;;  %1245 = vmatpush1.bf16.msra.mxu1 %v4221_v43  ;;  %v4314_v42 = vld [vmem:[%s6009_s1 + $0x72c] ss:$16 sps:$4 sm:$0xff]   ;;  %v4309_v43 = vld [vmem:[%s6009_s1 + $0x720] ss:$16 sps:$4 sm:$0xff]  }
  0x30   : > { %1140 = vmatprep.subr.bf16.mxu0 %v4222_v44  ;;  %1246 = vmatprep.subr.bf16.mxu1 %v4224_v45  ;;  %v4312_v44 = vld [vmem:[%s6009_s1 + $0x728] ss:$16 sps:$4 sm:$0xff]   ;;  %v4317_v45 = vld [vmem:[%s6009_s1 + $0x744] ss:$16 sps:$4 sm:$0xff]  }
  0x33   : > { %1141 = vmatpush1.bf16.msra.mxu0 %v4226_v46  ;;  %1247 = vmatpush1.bf16.msra.mxu1 %v4227_v48  ;;  %v4320_v46 = vld [vmem:[%s6009_s1 + $0x74c] ss:$16 sps:$4 sm:$0xff]   ;;  %v4318_v48 = vld [vmem:[%s6009_s1 + $0x748] ss:$16 sps:$4 sm:$0xff]  }
  0x34   : > { %1142 = vmatprep.subr.bf16.mxu0 %v4228_v49  ;;  %1248 = vmatprep.subr.bf16.mxu1 %v4230_v50  ;;  %v4323_v49 = vld [vmem:[%s6009_s1 + $0x764] ss:$16 sps:$4 sm:$0xff]   ;;  %v4326_v50 = vld [vmem:[%s6009_s1 + $0x76c] ss:$16 sps:$4 sm:$0xff]  }
  0x37   : > { %1143 = vmatpush1.bf16.msra.mxu0 %v4232_v51  ;;  %1249 = vmatpush1.bf16.msra.mxu1 %v4233_v52  ;;  %v4321_v51 = vld [vmem:[%s6009_s1 + $0x760] ss:$16 sps:$4 sm:$0xff]   ;;  %v4324_v52 = vld [vmem:[%s6009_s1 + $0x768] ss:$16 sps:$4 sm:$0xff]  }
  0x38   : > { %1144 = vmatprep.subr.bf16.mxu0 %v4234_v53  ;;  %1250 = vmatprep.subr.bf16.mxu1 %v4236_v54  ;;  %v4329_v53 = vld [vmem:[%s6009_s1 + $0x784] ss:$16 sps:$4 sm:$0xff]   ;;  %v4332_v54 = vld [vmem:[%s6009_s1 + $0x78c] ss:$16 sps:$4 sm:$0xff]  }
  0x3b   : > { %1145 = vmatpush1.bf16.msra.mxu0 %v4238_v55  ;;  %1251 = vmatpush1.bf16.msra.mxu1 %v4239_v56  ;;  %v4327_v55 = vld [vmem:[%s6009_s1 + $0x780] ss:$16 sps:$4 sm:$0xff]   ;;  %v4330_v56 = vld [vmem:[%s6009_s1 + $0x788] ss:$16 sps:$4 sm:$0xff]  }
  0x3c   : > { %1146 = vmatprep.subr.bf16.mxu0 %v4240_v57  ;;  %1252 = vmatprep.subr.bf16.mxu1 %v4242_v58  ;;  %v4335_v57 = vld [vmem:[%s6009_s1 + $0x7a4] ss:$16 sps:$4 sm:$0xff]   ;;  %v4338_v58 = vld [vmem:[%s6009_s1 + $0x7ac] ss:$16 sps:$4 sm:$0xff]  }
  0x3f   : > { %1147 = vmatpush1.bf16.msra.mxu0 %v4244_v59  ;;  %1253 = vmatpush1.bf16.msra.mxu1 %v4245_v60  ;;  %v4333_v59 = vld [vmem:[%s6009_s1 + $0x7a0] ss:$16 sps:$4 sm:$0xff]   ;;  %v4336_v60 = vld [vmem:[%s6009_s1 + $0x7a8] ss:$16 sps:$4 sm:$0xff]  }
  0x40   : > { %1148 = vmatprep.subr.bf16.mxu0 %v4246_v61  ;;  %1254 = vmatprep.subr.bf16.mxu1 %v4248_v62  ;;  %v4343_v61 = vld [vmem:[%s6009_s1 + $0x7c4] ss:$16 sps:$4 sm:$0xff]   ;;  %v4346_v62 = vld [vmem:[%s6009_s1 + $0x7cc] ss:$16 sps:$4 sm:$0xff]  }
  0x43   : > { %1149 = vmatpush1.bf16.msra.mxu0 %v4250_v63  ;;  %1255 = vmatpush1.bf16.msra.mxu1 %v4251_v0  ;;  %v4341_v63 = vld [vmem:[%s6009_s1 + $0x7c0] ss:$16 sps:$4 sm:$0xff]   ;;  %v4344_v0 = vld [vmem:[%s6009_s1 + $0x7c8] ss:$16 sps:$4 sm:$0xff]  }
  0x44   : > { %1171 = vmatprep.subr.bf16.mxu0 %v4256_v1  ;;  %1277 = vmatprep.subr.bf16.mxu1 %v4259_v2  ;;  %v4350_v1 = vld [vmem:[%s6009_s1 + $0x7e4] ss:$16 sps:$4 sm:$0xff]   ;;  %v4353_v2 = vld [vmem:[%s6009_s1 + $0x7ec] ss:$16 sps:$4 sm:$0xff]  }
  0x46   : > { %1151 = vmatmul.mubr.bf16.vlgmr.msra.gmra.mrb[0].mxu0 %v4260_v5  ;;  %1257 = vmatmul.mubr.bf16.vlgmr.msra.gmra.mrb[0].mxu1 %v4260_v5  ;;  %v4359_v5 = vld [vmem:[%s6009_s1 + $0x4] ss:$16 sps:$4 sm:$0xff]  }
  0x47   : > { %1172 = vmatpush1.bf16.msra.mxu0 %v4254_v3  ;;  %1278 = vmatpush1.bf16.msra.mxu1 %v4257_v4  ;;  %v4348_v3 = vld [vmem:[%s6009_s1 + $0x7e0] ss:$16 sps:$4 sm:$0xff]   ;;  %v4351_v4 = vld [vmem:[%s6009_s1 + $0x7e8] ss:$16 sps:$4 sm:$0xff]  }
  0x48   : > { %1173 = vmatprep.subr.bf16.mxu0 %v4263_v6  ;;  %1279 = vmatprep.subr.bf16.mxu1 %v4266_v7  ;;  %v4362_v6 = vld [vmem:[%s6009_s1 + $0xc] ss:$16 sps:$4 sm:$0xff]   ;;  %v4354_v7 = vld [vmem:[%s4948_s5 + $0x28] ss:$16 sps:$4 sm:$0xff]  }
  0x49   : > { %1160 = vmatprep.mubr.bf16.mxu0 %v4339_v24  ;;  %1266 = vmatprep.mubr.bf16.mxu1 %v4339_v24  ;;  %v4378_v24 = vld [vmem:[%s6009_s1 + $0x68] ss:$16 sps:$4 sm:$0xff]  }
  0x4b   : > { %1174 = vmatpush1.bf16.msra.mxu0 %v4261_v8  ;;  %1280 = vmatpush1.bf16.msra.mxu1 %v4264_v9  ;;  %v4357_v8 = vld [vmem:[%s6009_s1] ss:$16 sps:$4 sm:$0xff]   ;;  %v4360_v9 = vld [vmem:[%s6009_s1 + $0x8] ss:$16 sps:$4 sm:$0xff]  }
  0x4c   : > { %1175 = vmatprep.subr.bf16.mxu0 %v4269_v10  ;;  %1281 = vmatprep.subr.bf16.mxu1 %v4272_v11  ;;  %v4365_v10 = vld [vmem:[%s6009_s1 + $0x24] ss:$16 sps:$4 sm:$0xff]   ;;  %v4368_v11 = vld [vmem:[%s6009_s1 + $0x2c] ss:$16 sps:$4 sm:$0xff]  }
  0x4e   : > { %1161 = vmatmul.mubr.bf16.gmra.mrb[4].mxu0 %v4347_v29  ;;  %1267 = vmatmul.mubr.bf16.gmra.mrb[4].mxu1 %v4347_v29  ;;  %v4389_v29 = vld [vmem:[%s6009_s1 + $0xa4] ss:$16 sps:$4 sm:$0xff]  }
  0x4f   : > { %1176 = vmatpush1.bf16.msra.mxu0 %v4267_v12  ;;  %1282 = vmatpush1.bf16.msra.mxu1 %v4270_v13  ;;  %v4441_v12 = vld [vmem:[%s4948_s5 + $0x4c] ss:$16 sps:$4 sm:$0xff]   ;;  %v4363_v13 = vld [vmem:[%s6009_s1 + $0x20] ss:$16 sps:$4 sm:$0xff]  }
  0x50   : > { %1177 = vmatprep.subr.bf16.mxu0 %v4275_v14  ;;  %1283 = vmatprep.subr.bf16.mxu1 %v4278_v15  ;;  %v4366_v14 = vld [vmem:[%s6009_s1 + $0x28] ss:$16 sps:$4 sm:$0xff]   ;;  %v4371_v15 = vld [vmem:[%s6009_s1 + $0x44] ss:$16 sps:$4 sm:$0xff]  }
  0x51   : > { %1203 = vmatprep.mubr.bf16.mxu0 %v4356_v34  ;;  %1309 = vmatprep.mubr.bf16.mxu1 %v4356_v34  ;;  %v4398_v34 = vld [vmem:[%s6009_s1 + $0xcc] ss:$16 sps:$4 sm:$0xff]  }
  0x53   : > { %1178 = vmatpush1.bf16.msra.mxu0 %v4273_v16  ;;  %1284 = vmatpush1.bf16.msra.mxu1 %v4276_v17  ;;  %v4374_v16 = vld [vmem:[%s6009_s1 + $0x4c] ss:$16 sps:$4 sm:$0xff]   ;;  %v4369_v17 = vld [vmem:[%s6009_s1 + $0x40] ss:$16 sps:$4 sm:$0xff]  }
  0x54   : > { %1179 = vmatprep.subr.bf16.mxu0 %v4281_v18  ;;  %1285 = vmatprep.subr.bf16.mxu1 %v4284_v19  ;;  %v4372_v18 = vld [vmem:[%s6009_s1 + $0x48] ss:$16 sps:$4 sm:$0xff]  }
  0x55   : > { %v4449_v19 = vld [vmem:[%s4948_s5 + $0x48] ss:$16 sps:$4 sm:$0xff]  }
  0x57   : > { %1180 = vmatpush1.bf16.msra.mxu0 %v4279_v20  ;;  %1286 = vmatpush1.bf16.msra.mxu1 %v4282_v21  ;;  %v4377_v20 = vld [vmem:[%s6009_s1 + $0x64] ss:$16 sps:$4 sm:$0xff]   ;;  %v4380_v21 = vld [vmem:[%s6009_s1 + $0x6c] ss:$16 sps:$4 sm:$0xff]  }
  0x58   : > { %1181 = vmatprep.subr.bf16.mxu0 %v4287_v22  ;;  %1287 = vmatprep.subr.bf16.mxu1 %v4290_v23  ;;  %v4458_v22 = vld [vmem:[%s4948_s5 + $0x4] ss:$16 sps:$4 sm:$0xff]   ;;  %v4375_v23 = vld [vmem:[%s6009_s1 + $0x60] ss:$16 sps:$4 sm:$0xff]  }
  0x5b   : > { %1182 = vmatpush1.bf16.msra.mxu0 %v4285_v25  ;;  %1288 = vmatpush1.bf16.msra.mxu1 %v4288_v26  ;;  %v4383_v25 = vld [vmem:[%s6009_s1 + $0x84] ss:$16 sps:$4 sm:$0xff]   ;;  %v4386_v26 = vld [vmem:[%s6009_s1 + $0x8c] ss:$16 sps:$4 sm:$0xff]  }
  0x5c   : > { %1183 = vmatprep.subr.bf16.mxu0 %v4293_v27  ;;  %1289 = vmatprep.subr.bf16.mxu1 %v4296_v28  ;;  %v4381_v27 = vld [vmem:[%s6009_s1 + $0x80] ss:$16 sps:$4 sm:$0xff]   ;;  %v4384_v28 = vld [vmem:[%s6009_s1 + $0x88] ss:$16 sps:$4 sm:$0xff]  }
  0x5f   : > { %1184 = vmatpush1.bf16.msra.mxu0 %v4291_v30  ;;  %1290 = vmatpush1.bf16.msra.mxu1 %v4294_v31  ;;  %v4392_v30 = vld [vmem:[%s6009_s1 + $0xac] ss:$16 sps:$4 sm:$0xff]   ;;  %v4387_v31 = vld [vmem:[%s6009_s1 + $0xa0] ss:$16 sps:$4 sm:$0xff]  }
  0x60   : > { %1185 = vmatprep.subr.bf16.mxu0 %v4299_v32  ;;  %1291 = vmatprep.subr.bf16.mxu1 %v4302_v33  ;;  %v4390_v32 = vld [vmem:[%s6009_s1 + $0xa8] ss:$16 sps:$4 sm:$0xff]   ;;  %v4395_v33 = vld [vmem:[%s6009_s1 + $0xc4] ss:$16 sps:$4 sm:$0xff]  }
  0x63   : > { %1186 = vmatpush1.bf16.msra.mxu0 %v4297_v35  ;;  %1292 = vmatpush1.bf16.msra.mxu1 %v4300_v36  ;;  %v4393_v35 = vld [vmem:[%s6009_s1 + $0xc0] ss:$16 sps:$4 sm:$0xff]   ;;  %v4396_v36 = vld [vmem:[%s6009_s1 + $0xc8] ss:$16 sps:$4 sm:$0xff]  }
  0x64   : > { %1187 = vmatprep.subr.bf16.mxu0 %v4305_v37  ;;  %1293 = vmatprep.subr.bf16.mxu1 %v4308_v38  ;;  %v4401_v37 = vld [vmem:[%s6009_s1 + $0xe4] ss:$16 sps:$4 sm:$0xff]   ;;  %v4404_v38 = vld [vmem:[%s6009_s1 + $0xec] ss:$16 sps:$4 sm:$0xff]  }
  0x67   : > { %1188 = vmatpush1.bf16.msra.mxu0 %v4303_v39  ;;  %1294 = vmatpush1.bf16.msra.mxu1 %v4306_v40  ;;  %v4399_v39 = vld [vmem:[%s6009_s1 + $0xe0] ss:$16 sps:$4 sm:$0xff]   ;;  %v4402_v40 = vld [vmem:[%s6009_s1 + $0xe8] ss:$16 sps:$4 sm:$0xff]  }
  0x68   : > { %1189 = vmatprep.subr.bf16.mxu0 %v4311_v41  ;;  %1295 = vmatprep.subr.bf16.mxu1 %v4314_v42  ;;  %v4407_v41 = vld [vmem:[%s6009_s1 + $0x104] ss:$16 sps:$4 sm:$0xff]   ;;  %v4410_v42 = vld [vmem:[%s6009_s1 + $0x10c] ss:$16 sps:$4 sm:$0xff]  }
  0x6b   : > { %1190 = vmatpush1.bf16.msra.mxu0 %v4309_v43  ;;  %1296 = vmatpush1.bf16.msra.mxu1 %v4312_v44  ;;  %v4405_v43 = vld [vmem:[%s6009_s1 + $0x100] ss:$16 sps:$4 sm:$0xff]   ;;  %v4408_v44 = vld [vmem:[%s6009_s1 + $0x108] ss:$16 sps:$4 sm:$0xff]  }
  0x6c   : > { %1191 = vmatprep.subr.bf16.mxu0 %v4317_v45  ;;  %1297 = vmatprep.subr.bf16.mxu1 %v4320_v46  ;;  %v4413_v45 = vld [vmem:[%s6009_s1 + $0x124] ss:$16 sps:$4 sm:$0xff]   ;;  %v4416_v46 = vld [vmem:[%s6009_s1 + $0x12c] ss:$16 sps:$4 sm:$0xff]  }
  0x6f   : > { %1192 = vmatpush1.bf16.msra.mxu0 %v4315_v47  ;;  %1298 = vmatpush1.bf16.msra.mxu1 %v4318_v48  ;;  %v4411_v47 = vld [vmem:[%s6009_s1 + $0x120] ss:$16 sps:$4 sm:$0xff]   ;;  %v4414_v48 = vld [vmem:[%s6009_s1 + $0x128] ss:$16 sps:$4 sm:$0xff]  }
  0x70   : > { %1193 = vmatprep.subr.bf16.mxu0 %v4323_v49  ;;  %1299 = vmatprep.subr.bf16.mxu1 %v4326_v50  ;;  %v4419_v49 = vld [vmem:[%s6009_s1 + $0x144] ss:$16 sps:$4 sm:$0xff]   ;;  %v4422_v50 = vld [vmem:[%s6009_s1 + $0x14c] ss:$16 sps:$4 sm:$0xff]  }
  0x73   : > { %1194 = vmatpush1.bf16.msra.mxu0 %v4321_v51  ;;  %1300 = vmatpush1.bf16.msra.mxu1 %v4324_v52  ;;  %v4417_v51 = vld [vmem:[%s6009_s1 + $0x140] ss:$16 sps:$4 sm:$0xff]   ;;  %v4420_v52 = vld [vmem:[%s6009_s1 + $0x148] ss:$16 sps:$4 sm:$0xff]  }
  0x74   : > { %1195 = vmatprep.subr.bf16.mxu0 %v4329_v53  ;;  %1301 = vmatprep.subr.bf16.mxu1 %v4332_v54  ;;  %v4425_v53 = vld [vmem:[%s6009_s1 + $0x164] ss:$16 sps:$4 sm:$0xff]   ;;  %v4428_v54 = vld [vmem:[%s6009_s1 + $0x16c] ss:$16 sps:$4 sm:$0xff]  }
  0x77   : > { %1196 = vmatpush1.bf16.msra.mxu0 %v4327_v55  ;;  %1302 = vmatpush1.bf16.msra.mxu1 %v4330_v56  ;;  %v4423_v55 = vld [vmem:[%s6009_s1 + $0x160] ss:$16 sps:$4 sm:$0xff]   ;;  %v4426_v56 = vld [vmem:[%s6009_s1 + $0x168] ss:$16 sps:$4 sm:$0xff]  }
  0x78   : > { %1197 = vmatprep.subr.bf16.mxu0 %v4335_v57  ;;  %1303 = vmatprep.subr.bf16.mxu1 %v4338_v58  ;;  %v4431_v57 = vld [vmem:[%s6009_s1 + $0x184] ss:$16 sps:$4 sm:$0xff]   ;;  %v4434_v58 = vld [vmem:[%s6009_s1 + $0x18c] ss:$16 sps:$4 sm:$0xff]  }
  0x7b   : > { %1198 = vmatpush1.bf16.msra.mxu0 %v4333_v59  ;;  %1304 = vmatpush1.bf16.msra.mxu1 %v4336_v60  ;;  %v4429_v59 = vld [vmem:[%s6009_s1 + $0x180] ss:$16 sps:$4 sm:$0xff]   ;;  %v4432_v60 = vld [vmem:[%s6009_s1 + $0x188] ss:$16 sps:$4 sm:$0xff]  }
  0x7c   : > { %1199 = vmatprep.subr.bf16.mxu0 %v4343_v61  ;;  %1305 = vmatprep.subr.bf16.mxu1 %v4346_v62  ;;  %v4437_v61 = vld [vmem:[%s6009_s1 + $0x1a4] ss:$16 sps:$4 sm:$0xff]   ;;  %v4440_v62 = vld [vmem:[%s6009_s1 + $0x1ac] ss:$16 sps:$4 sm:$0xff]  }
  0x7f   : > { %1200 = vmatpush1.bf16.msra.mxu0 %v4341_v63  ;;  %1306 = vmatpush1.bf16.msra.mxu1 %v4344_v0  ;;  %v4435_v63 = vld [vmem:[%s6009_s1 + $0x1a0] ss:$16 sps:$4 sm:$0xff]   ;;  %v4438_v0 = vld [vmem:[%s6009_s1 + $0x1a8] ss:$16 sps:$4 sm:$0xff]  }
  0x80   : > { %1201 = vmatprep.subr.bf16.mxu0 %v4350_v1  ;;  %1307 = vmatprep.subr.bf16.mxu1 %v4353_v2  ;;  %v4445_v1 = vld [vmem:[%s6009_s1 + $0x1c4] ss:$16 sps:$4 sm:$0xff]   ;;  %v4448_v2 = vld [vmem:[%s6009_s1 + $0x1cc] ss:$16 sps:$4 sm:$0xff]  }
  0x83   : > { %1202 = vmatpush1.bf16.msra.mxu0 %v4348_v3  ;;  %1308 = vmatpush1.bf16.msra.mxu1 %v4351_v4  ;;  %v4443_v3 = vld [vmem:[%s6009_s1 + $0x1c0] ss:$16 sps:$4 sm:$0xff]   ;;  %v4446_v4 = vld [vmem:[%s6009_s1 + $0x1c8] ss:$16 sps:$4 sm:$0xff]  }
  0x84   : > { %1990 = vmatprep.subr.bf16.mxu0 %v4359_v5  ;;  %2096 = vmatprep.subr.bf16.mxu1 %v4362_v6  ;;  %v4452_v5 = vld [vmem:[%s6009_s1 + $0x1e4] ss:$16 sps:$4 sm:$0xff]   ;;  %v4455_v6 = vld [vmem:[%s6009_s1 + $0x1ec] ss:$16 sps:$4 sm:$0xff]  }
  0x86   : > { %1204 = vmatmul.mubr.bf16.vlgmr.msra.gmra.mrb[0].mxu0 %v4354_v7  ;;  %1310 = vmatmul.mubr.bf16.vlgmr.msra.gmra.mrb[0].mxu1 %v4354_v7  ;;  %v4450_v7 = vld [vmem:[%s6009_s1 + $0x1e0] ss:$16 sps:$4 sm:$0xff]  }
  0x87   : > { %1991 = vmatpush1.bf16.msra.mxu0 %v4357_v8  ;;  %2097 = vmatpush1.bf16.msra.mxu1 %v4360_v9  ;;  %v4453_v8 = vld [vmem:[%s6009_s1 + $0x1e8] ss:$16 sps:$4 sm:$0xff]   ;;  %v4461_v9 = vld [vmem:[%s6009_s1 + $0x204] ss:$16 sps:$4 sm:$0xff]  }
  0x88   : > { %1992 = vmatprep.subr.bf16.mxu0 %v4365_v10  ;;  %2098 = vmatprep.subr.bf16.mxu1 %v4368_v11  ;;  %v4464_v10 = vld [vmem:[%s6009_s1 + $0x20c] ss:$16 sps:$4 sm:$0xff]   ;;  %v4456_v11 = vld [vmem:[%s4948_s5] ss:$16 sps:$4 sm:$0xff]  }
  0x89   : > { %1213 = vmatprep.mubr.bf16.mxu0 %v4441_v12  ;;  %1319 = vmatprep.mubr.bf16.mxu1 %v4441_v12  ;;  %v4459_v12 = vld [vmem:[%s6009_s1 + $0x200] ss:$16 sps:$4 sm:$0xff]  }
  0x8b   : > { %1993 = vmatpush1.bf16.msra.mxu0 %v4363_v13  ;;  %2099 = vmatpush1.bf16.msra.mxu1 %v4366_v14  ;;  %v4462_v13 = vld [vmem:[%s6009_s1 + $0x208] ss:$16 sps:$4 sm:$0xff]   ;;  %v4467_v14 = vld [vmem:[%s6009_s1 + $0x224] ss:$16 sps:$4 sm:$0xff]  }
  0x8c   : > { %1994 = vmatprep.subr.bf16.mxu0 %v4371_v15  ;;  %2100 = vmatprep.subr.bf16.mxu1 %v4374_v16  ;;  %v4470_v15 = vld [vmem:[%s6009_s1 + $0x22c] ss:$16 sps:$4 sm:$0xff]   ;;  %v4465_v16 = vld [vmem:[%s6009_s1 + $0x220] ss:$16 sps:$4 sm:$0xff]  }
  0x8e   : > { %1214 = vmatmul.mubr.bf16.gmra.mrb[4].mxu0 %v4449_v19  ;;  %1320 = vmatmul.mubr.bf16.gmra.mrb[4].mxu1 %v4449_v19  ;;  %v4476_v19 = vld [vmem:[%s6009_s1 + $0x24c] ss:$16 sps:$4 sm:$0xff]  }
  0x8f   : > { %1995 = vmatpush1.bf16.msra.mxu0 %v4369_v17  ;;  %2101 = vmatpush1.bf16.msra.mxu1 %v4372_v18  ;;  %v4468_v17 = vld [vmem:[%s6009_s1 + $0x228] ss:$16 sps:$4 sm:$0xff]   ;;  %v4473_v18 = vld [vmem:[%s6009_s1 + $0x244] ss:$16 sps:$4 sm:$0xff]  }
  0x90   : > { %1996 = vmatprep.subr.bf16.mxu0 %v4377_v20  ;;  %2102 = vmatprep.subr.bf16.mxu1 %v4380_v21  ;;  %v4762_v20 = vld [vmem:[%s4948_s5 + $0x24] ss:$16 sps:$4 sm:$0xff]   ;;  %v4471_v21 = vld [vmem:[%s6009_s1 + $0x240] ss:$16 sps:$4 sm:$0xff]  }
  0x91   : > { %2022 = vmatprep.mubr.bf16.mxu0 %v4458_v22  ;;  %2128 = vmatprep.mubr.bf16.mxu1 %v4458_v22  ;;  %v4474_v22 = vld [vmem:[%s6009_s1 + $0x248] ss:$16 sps:$4 sm:$0xff]  }
  0x93   : > { %1997 = vmatpush1.bf16.msra.mxu0 %v4375_v23  ;;  %2103 = vmatpush1.bf16.msra.mxu1 %v4378_v24  ;;  %v4479_v23 = vld [vmem:[%s6009_s1 + $0x264] ss:$16 sps:$4 sm:$0xff]   ;;  %v4482_v24 = vld [vmem:[%s6009_s1 + $0x26c] ss:$16 sps:$4 sm:$0xff]  }
  0x94   : > { %1998 = vmatprep.subr.bf16.mxu0 %v4383_v25  ;;  %2104 = vmatprep.subr.bf16.mxu1 %v4386_v26  ;;  %v4557_v25 = vld [vmem:[%s4948_s5 + $0xc] ss:$16 sps:$4 sm:$0xff]   ;;  %v4477_v26 = vld [vmem:[%s6009_s1 + $0x260] ss:$16 sps:$4 sm:$0xff]  }
  0x97   : > { %1999 = vmatpush1.bf16.msra.mxu0 %v4381_v27  ;;  %2105 = vmatpush1.bf16.msra.mxu1 %v4384_v28  ;;  %v4480_v27 = vld [vmem:[%s6009_s1 + $0x268] ss:$16 sps:$4 sm:$0xff]   ;;  %v4763_v28 = vld [vmem:[%s4948_s5 + $0x20] ss:$16 sps:$4 sm:$0xff]  }
  0x98   : > { %2000 = vmatprep.subr.bf16.mxu0 %v4389_v29  ;;  %2106 = vmatprep.subr.bf16.mxu1 %v4392_v30  ;;  %v4485_v29 = vld [vmem:[%s6009_s1 + $0x284] ss:$16 sps:$4 sm:$0xff]   ;;  %v4488_v30 = vld [vmem:[%s6009_s1 + $0x28c] ss:$16 sps:$4 sm:$0xff]  }
  0x9b   : > { %2001 = vmatpush1.bf16.msra.mxu0 %v4387_v31  ;;  %2107 = vmatpush1.bf16.msra.mxu1 %v4390_v32  ;;  %v4483_v31 = vld [vmem:[%s6009_s1 + $0x280] ss:$16 sps:$4 sm:$0xff]   ;;  %v4486_v32 = vld [vmem:[%s6009_s1 + $0x288] ss:$16 sps:$4 sm:$0xff]  }
  0x9c   : > { %2002 = vmatprep.subr.bf16.mxu0 %v4395_v33  ;;  %2108 = vmatprep.subr.bf16.mxu1 %v4398_v34  ;;  %v4491_v33 = vld [vmem:[%s6009_s1 + $0x2a4] ss:$16 sps:$4 sm:$0xff]   ;;  %v4494_v34 = vld [vmem:[%s6009_s1 + $0x2ac] ss:$16 sps:$4 sm:$0xff]  }
  0x9f   : > { %2003 = vmatpush1.bf16.msra.mxu0 %v4393_v35  ;;  %2109 = vmatpush1.bf16.msra.mxu1 %v4396_v36  ;;  %v4489_v35 = vld [vmem:[%s6009_s1 + $0x2a0] ss:$16 sps:$4 sm:$0xff]   ;;  %v4492_v36 = vld [vmem:[%s6009_s1 + $0x2a8] ss:$16 sps:$4 sm:$0xff]  }
  0xa0   : > { %2004 = vmatprep.subr.bf16.mxu0 %v4401_v37  ;;  %2110 = vmatprep.subr.bf16.mxu1 %v4404_v38  ;;  %v4497_v37 = vld [vmem:[%s6009_s1 + $0x2c4] ss:$16 sps:$4 sm:$0xff]   ;;  %v4500_v38 = vld [vmem:[%s6009_s1 + $0x2cc] ss:$16 sps:$4 sm:$0xff]  }
  0xa3   : > { %2005 = vmatpush1.bf16.msra.mxu0 %v4399_v39  ;;  %2111 = vmatpush1.bf16.msra.mxu1 %v4402_v40  ;;  %v4495_v39 = vld [vmem:[%s6009_s1 + $0x2c0] ss:$16 sps:$4 sm:$0xff]   ;;  %v4498_v40 = vld [vmem:[%s6009_s1 + $0x2c8] ss:$16 sps:$4 sm:$0xff]  }
  0xa4   : > { %2006 = vmatprep.subr.bf16.mxu0 %v4407_v41  ;;  %2112 = vmatprep.subr.bf16.mxu1 %v4410_v42  ;;  %v4503_v41 = vld [vmem:[%s6009_s1 + $0x2e4] ss:$16 sps:$4 sm:$0xff]   ;;  %v4506_v42 = vld [vmem:[%s6009_s1 + $0x2ec] ss:$16 sps:$4 sm:$0xff]  }
  0xa7   : > { %2007 = vmatpush1.bf16.msra.mxu0 %v4405_v43  ;;  %2113 = vmatpush1.bf16.msra.mxu1 %v4408_v44  ;;  %v4501_v43 = vld [vmem:[%s6009_s1 + $0x2e0] ss:$16 sps:$4 sm:$0xff]   ;;  %v4504_v44 = vld [vmem:[%s6009_s1 + $0x2e8] ss:$16 sps:$4 sm:$0xff]  }
  0xa8   : > { %2008 = vmatprep.subr.bf16.mxu0 %v4413_v45  ;;  %2114 = vmatprep.subr.bf16.mxu1 %v4416_v46  ;;  %v4509_v45 = vld [vmem:[%s6009_s1 + $0x304] ss:$16 sps:$4 sm:$0xff]   ;;  %v4512_v46 = vld [vmem:[%s6009_s1 + $0x30c] ss:$16 sps:$4 sm:$0xff]  }
  0xab   : > { %2009 = vmatpush1.bf16.msra.mxu0 %v4411_v47  ;;  %2115 = vmatpush1.bf16.msra.mxu1 %v4414_v48  ;;  %v4507_v47 = vld [vmem:[%s6009_s1 + $0x300] ss:$16 sps:$4 sm:$0xff]   ;;  %v4510_v48 = vld [vmem:[%s6009_s1 + $0x308] ss:$16 sps:$4 sm:$0xff]  }
  0xac   : > { %2010 = vmatprep.subr.bf16.mxu0 %v4419_v49  ;;  %2116 = vmatprep.subr.bf16.mxu1 %v4422_v50  ;;  %v4515_v49 = vld [vmem:[%s6009_s1 + $0x324] ss:$16 sps:$4 sm:$0xff]   ;;  %v4518_v50 = vld [vmem:[%s6009_s1 + $0x32c] ss:$16 sps:$4 sm:$0xff]  }
  0xaf   : > { %2011 = vmatpush1.bf16.msra.mxu0 %v4417_v51  ;;  %2117 = vmatpush1.bf16.msra.mxu1 %v4420_v52  ;;  %v4513_v51 = vld [vmem:[%s6009_s1 + $0x320] ss:$16 sps:$4 sm:$0xff]   ;;  %v4516_v52 = vld [vmem:[%s6009_s1 + $0x328] ss:$16 sps:$4 sm:$0xff]  }
  0xb0   : > { %2012 = vmatprep.subr.bf16.mxu0 %v4425_v53  ;;  %2118 = vmatprep.subr.bf16.mxu1 %v4428_v54  ;;  %v4521_v53 = vld [vmem:[%s6009_s1 + $0x344] ss:$16 sps:$4 sm:$0xff]   ;;  %v4524_v54 = vld [vmem:[%s6009_s1 + $0x34c] ss:$16 sps:$4 sm:$0xff]  }
  0xb3   : > { %2013 = vmatpush1.bf16.msra.mxu0 %v4423_v55  ;;  %2119 = vmatpush1.bf16.msra.mxu1 %v4426_v56  ;;  %v4519_v55 = vld [vmem:[%s6009_s1 + $0x340] ss:$16 sps:$4 sm:$0xff]   ;;  %v4522_v56 = vld [vmem:[%s6009_s1 + $0x348] ss:$16 sps:$4 sm:$0xff]  }
  0xb4   : > { %2014 = vmatprep.subr.bf16.mxu0 %v4431_v57  ;;  %2120 = vmatprep.subr.bf16.mxu1 %v4434_v58  ;;  %v4527_v57 = vld [vmem:[%s6009_s1 + $0x364] ss:$16 sps:$4 sm:$0xff]   ;;  %v4530_v58 = vld [vmem:[%s6009_s1 + $0x36c] ss:$16 sps:$4 sm:$0xff]  }
  0xb7   : > { %2015 = vmatpush1.bf16.msra.mxu0 %v4429_v59  ;;  %2121 = vmatpush1.bf16.msra.mxu1 %v4432_v60  ;;  %v4525_v59 = vld [vmem:[%s6009_s1 + $0x360] ss:$16 sps:$4 sm:$0xff]   ;;  %v4528_v60 = vld [vmem:[%s6009_s1 + $0x368] ss:$16 sps:$4 sm:$0xff]  }
  0xb8   : > { %2016 = vmatprep.subr.bf16.mxu0 %v4437_v61  ;;  %2122 = vmatprep.subr.bf16.mxu1 %v4440_v62  ;;  %v4533_v61 = vld [vmem:[%s6009_s1 + $0x384] ss:$16 sps:$4 sm:$0xff]   ;;  %v4536_v62 = vld [vmem:[%s6009_s1 + $0x38c] ss:$16 sps:$4 sm:$0xff]  }
  0xbb   : > { %2017 = vmatpush1.bf16.msra.mxu0 %v4435_v63  ;;  %2123 = vmatpush1.bf16.msra.mxu1 %v4438_v0  ;;  %v4531_v63 = vld [vmem:[%s6009_s1 + $0x380] ss:$16 sps:$4 sm:$0xff]   ;;  %v4534_v0 = vld [vmem:[%s6009_s1 + $0x388] ss:$16 sps:$4 sm:$0xff]  }
  0xbc   : > { %2018 = vmatprep.subr.bf16.mxu0 %v4445_v1  ;;  %2124 = vmatprep.subr.bf16.mxu1 %v4448_v2  ;;  %v4539_v1 = vld [vmem:[%s6009_s1 + $0x3a4] ss:$16 sps:$4 sm:$0xff]   ;;  %v4542_v2 = vld [vmem:[%s6009_s1 + $0x3ac] ss:$16 sps:$4 sm:$0xff]  }
  0xbf   : > { %2019 = vmatpush1.bf16.msra.mxu0 %v4443_v3  ;;  %2125 = vmatpush1.bf16.msra.mxu1 %v4446_v4  ;;  %v4537_v3 = vld [vmem:[%s6009_s1 + $0x3a0] ss:$16 sps:$4 sm:$0xff]   ;;  %v4540_v4 = vld [vmem:[%s6009_s1 + $0x3a8] ss:$16 sps:$4 sm:$0xff]  }
  0xc0   : > { %2020 = vmatprep.subr.bf16.mxu0 %v4452_v5  ;;  %2126 = vmatprep.subr.bf16.mxu1 %v4455_v6  ;;  %v4545_v5 = vld [vmem:[%s6009_s1 + $0x3c4] ss:$16 sps:$4 sm:$0xff]   ;;  %v4548_v6 = vld [vmem:[%s6009_s1 + $0x3cc] ss:$16 sps:$4 sm:$0xff]  }
  0xc3   : > { %2021 = vmatpush1.bf16.msra.mxu0 %v4450_v7  ;;  %2127 = vmatpush1.bf16.msra.mxu1 %v4453_v8  ;;  %v4543_v7 = vld [vmem:[%s6009_s1 + $0x3c0] ss:$16 sps:$4 sm:$0xff]   ;;  %v4546_v8 = vld [vmem:[%s6009_s1 + $0x3c8] ss:$16 sps:$4 sm:$0xff]  }
  0xc4   : > { %2043 = vmatprep.subr.bf16.mxu0 %v4461_v9  ;;  %2149 = vmatprep.subr.bf16.mxu1 %v4464_v10  ;;  %v4551_v9 = vld [vmem:[%s6009_s1 + $0x3e4] ss:$16 sps:$4 sm:$0xff]   ;;  %v4554_v10 = vld [vmem:[%s6009_s1 + $0x3ec] ss:$16 sps:$4 sm:$0xff]  }
  0xc6   : > { %2023 = vmatmul.mubr.bf16.vlgmr.msra.gmra.mrb[0].mxu0 %v4456_v11  ;;  %2129 = vmatmul.mubr.bf16.vlgmr.msra.gmra.mrb[0].mxu1 %v4456_v11  ;;  %v4549_v11 = vld [vmem:[%s6009_s1 + $0x3e0] ss:$16 sps:$4 sm:$0xff]  }
  0xc7   : > { %2044 = vmatpush1.bf16.msra.mxu0 %v4459_v12  ;;  %2150 = vmatpush1.bf16.msra.mxu1 %v4462_v13  ;;  %v4552_v12 = vld [vmem:[%s6009_s1 + $0x3e8] ss:$16 sps:$4 sm:$0xff]   ;;  %v4560_v13 = vld [vmem:[%s6009_s1 + $0x804] ss:$16 sps:$4 sm:$0xff]  }
  0xc8   : > { %2045 = vmatprep.subr.bf16.mxu0 %v4467_v14  ;;  %2151 = vmatprep.subr.bf16.mxu1 %v4470_v15  ;;  %v4563_v14 = vld [vmem:[%s6009_s1 + $0x80c] ss:$16 sps:$4 sm:$0xff]   ;;  %v4555_v15 = vld [vmem:[%s4948_s5 + $0x8] ss:$16 sps:$4 sm:$0xff]  }
  0xc9   : > { %2032 = vmatprep.mubr.bf16.mxu0 %v4762_v20  ;;  %2138 = vmatprep.mubr.bf16.mxu1 %v4762_v20  ;;  %v4564_v20 = vld [vmem:[%s6009_s1 + $0x820] ss:$16 sps:$4 sm:$0xff]  }
  0xcb   : > { %2046 = vmatpush1.bf16.msra.mxu0 %v4465_v16  ;;  %2152 = vmatpush1.bf16.msra.mxu1 %v4468_v17  ;;  %v4558_v16 = vld [vmem:[%s6009_s1 + $0x800] ss:$16 sps:$4 sm:$0xff]   ;;  %v4561_v17 = vld [vmem:[%s6009_s1 + $0x808] ss:$16 sps:$4 sm:$0xff]  }
  0xcc   : > { %2047 = vmatprep.subr.bf16.mxu0 %v4473_v18  ;;  %2153 = vmatprep.subr.bf16.mxu1 %v4476_v19  ;;  %v4566_v18 = vld [vmem:[%s6009_s1 + $0x824] ss:$16 sps:$4 sm:$0xff]   ;;  %v4569_v19 = vld [vmem:[%s6009_s1 + $0x82c] ss:$16 sps:$4 sm:$0xff]  }
  0xce   : > { %2033 = vmatmul.mubr.bf16.gmra.mrb[4].mxu0 %v4763_v28  ;;  %2139 = vmatmul.mubr.bf16.gmra.mrb[4].mxu1 %v4763_v28  ;;  %v4581_v28 = vld [vmem:[%s6009_s1 + $0x86c] ss:$16 sps:$4 sm:$0xff]  }
  0xcf   : > { %2048 = vmatpush1.bf16.msra.mxu0 %v4471_v21  ;;  %2154 = vmatpush1.bf16.msra.mxu1 %v4474_v22  ;;  %v4567_v21 = vld [vmem:[%s6009_s1 + $0x828] ss:$16 sps:$4 sm:$0xff]   ;;  %v4572_v22 = vld [vmem:[%s6009_s1 + $0x844] ss:$16 sps:$4 sm:$0xff]  }
  0xd0   : > { %2049 = vmatprep.subr.bf16.mxu0 %v4479_v23  ;;  %2155 = vmatprep.subr.bf16.mxu1 %v4482_v24  ;;  %v4575_v23 = vld [vmem:[%s6009_s1 + $0x84c] ss:$16 sps:$4 sm:$0xff]  }
  0xd1   : > { %2075 = vmatprep.mubr.bf16.mxu0 %v4557_v25  ;;  %2181 = vmatprep.mubr.bf16.mxu1 %v4557_v25  ;;  %v4764_v24 = vld [vmem:[%s4948_s5 + $0x2c] ss:$16 sps:$4 sm:$0xff]   ;;  %v4570_v25 = vld [vmem:[%s6009_s1 + $0x840] ss:$16 sps:$4 sm:$0xff]  }
  0xd3   : > { %2050 = vmatpush1.bf16.msra.mxu0 %v4477_v26  ;;  %2156 = vmatpush1.bf16.msra.mxu1 %v4480_v27  ;;  %v4573_v26 = vld [vmem:[%s6009_s1 + $0x848] ss:$16 sps:$4 sm:$0xff]   ;;  %v4578_v27 = vld [vmem:[%s6009_s1 + $0x864] ss:$16 sps:$4 sm:$0xff]  }
  0xd4   : > { %2051 = vmatprep.subr.bf16.mxu0 %v4485_v29  ;;  %2157 = vmatprep.subr.bf16.mxu1 %v4488_v30  ;;  %v4656_v29 = vld [vmem:[%s4948_s5 + $0x44] ss:$16 sps:$4 sm:$0xff]   ;;  %v4576_v30 = vld [vmem:[%s6009_s1 + $0x860] ss:$16 sps:$4 sm:$0xff]  }
  0xd7   : > { %2052 = vmatpush1.bf16.msra.mxu0 %v4483_v31  ;;  %2158 = vmatpush1.bf16.msra.mxu1 %v4486_v32  ;;  %v4765_v31 = vld [vmem:[%s4948_s5 + $0x28] ss:$16 sps:$4 sm:$0xff]  }
  0xd8   : > { %2053 = vmatprep.subr.bf16.mxu0 %v4491_v33  ;;  %2159 = vmatprep.subr.bf16.mxu1 %v4494_v34  ;;  %v4579_v32 = vld [vmem:[%s6009_s1 + $0x868] ss:$16 sps:$4 sm:$0xff]   ;;  %v4584_v33 = vld [vmem:[%s6009_s1 + $0x884] ss:$16 sps:$4 sm:$0xff]   ;;  %v4587_v34 = vld [vmem:[%s6009_s1 + $0x88c] ss:$16 sps:$4 sm:$0xff]  }
  0xdb   : > { %2054 = vmatpush1.bf16.msra.mxu0 %v4489_v35  ;;  %2160 = vmatpush1.bf16.msra.mxu1 %v4492_v36  ;;  %v4582_v35 = vld [vmem:[%s6009_s1 + $0x880] ss:$16 sps:$4 sm:$0xff]   ;;  %v4585_v36 = vld [vmem:[%s6009_s1 + $0x888] ss:$16 sps:$4 sm:$0xff]  }
  0xdc   : > { %2055 = vmatprep.subr.bf16.mxu0 %v4497_v37  ;;  %2161 = vmatprep.subr.bf16.mxu1 %v4500_v38  ;;  %v4590_v37 = vld [vmem:[%s6009_s1 + $0x8a4] ss:$16 sps:$4 sm:$0xff]   ;;  %v4593_v38 = vld [vmem:[%s6009_s1 + $0x8ac] ss:$16 sps:$4 sm:$0xff]  }
  0xdf   : > { %2056 = vmatpush1.bf16.msra.mxu0 %v4495_v39  ;;  %2162 = vmatpush1.bf16.msra.mxu1 %v4498_v40  ;;  %v4588_v39 = vld [vmem:[%s6009_s1 + $0x8a0] ss:$16 sps:$4 sm:$0xff]   ;;  %v4591_v40 = vld [vmem:[%s6009_s1 + $0x8a8] ss:$16 sps:$4 sm:$0xff]  }
  0xe0   : > { %2057 = vmatprep.subr.bf16.mxu0 %v4503_v41  ;;  %2163 = vmatprep.subr.bf16.mxu1 %v4506_v42  ;;  %v4596_v41 = vld [vmem:[%s6009_s1 + $0x8c4] ss:$16 sps:$4 sm:$0xff]   ;;  %v4599_v42 = vld [vmem:[%s6009_s1 + $0x8cc] ss:$16 sps:$4 sm:$0xff]  }
  0xe3   : > { %2058 = vmatpush1.bf16.msra.mxu0 %v4501_v43  ;;  %2164 = vmatpush1.bf16.msra.mxu1 %v4504_v44  ;;  %v4594_v43 = vld [vmem:[%s6009_s1 + $0x8c0] ss:$16 sps:$4 sm:$0xff]   ;;  %v4597_v44 = vld [vmem:[%s6009_s1 + $0x8c8] ss:$16 sps:$4 sm:$0xff]  }
  0xe4   : > { %2059 = vmatprep.subr.bf16.mxu0 %v4509_v45  ;;  %2165 = vmatprep.subr.bf16.mxu1 %v4512_v46  ;;  %v4602_v45 = vld [vmem:[%s6009_s1 + $0x8e4] ss:$16 sps:$4 sm:$0xff]   ;;  %v4605_v46 = vld [vmem:[%s6009_s1 + $0x8ec] ss:$16 sps:$4 sm:$0xff]  }
  0xe7   : > { %2060 = vmatpush1.bf16.msra.mxu0 %v4507_v47  ;;  %2166 = vmatpush1.bf16.msra.mxu1 %v4510_v48  ;;  %v4600_v47 = vld [vmem:[%s6009_s1 + $0x8e0] ss:$16 sps:$4 sm:$0xff]   ;;  %v4603_v48 = vld [vmem:[%s6009_s1 + $0x8e8] ss:$16 sps:$4 sm:$0xff]  }
  0xe8   : > { %2061 = vmatprep.subr.bf16.mxu0 %v4515_v49  ;;  %2167 = vmatprep.subr.bf16.mxu1 %v4518_v50  ;;  %v4608_v49 = vld [vmem:[%s6009_s1 + $0x904] ss:$16 sps:$4 sm:$0xff]   ;;  %v4611_v50 = vld [vmem:[%s6009_s1 + $0x90c] ss:$16 sps:$4 sm:$0xff]  }
  0xeb   : > { %2062 = vmatpush1.bf16.msra.mxu0 %v4513_v51  ;;  %2168 = vmatpush1.bf16.msra.mxu1 %v4516_v52  ;;  %v4606_v51 = vld [vmem:[%s6009_s1 + $0x900] ss:$16 sps:$4 sm:$0xff]   ;;  %v4609_v52 = vld [vmem:[%s6009_s1 + $0x908] ss:$16 sps:$4 sm:$0xff]  }
  0xec   : > { %2063 = vmatprep.subr.bf16.mxu0 %v4521_v53  ;;  %2169 = vmatprep.subr.bf16.mxu1 %v4524_v54  ;;  %v4614_v53 = vld [vmem:[%s6009_s1 + $0x924] ss:$16 sps:$4 sm:$0xff]   ;;  %v4617_v54 = vld [vmem:[%s6009_s1 + $0x92c] ss:$16 sps:$4 sm:$0xff]  }
  0xef   : > { %2064 = vmatpush1.bf16.msra.mxu0 %v4519_v55  ;;  %2170 = vmatpush1.bf16.msra.mxu1 %v4522_v56  ;;  %v4612_v55 = vld [vmem:[%s6009_s1 + $0x920] ss:$16 sps:$4 sm:$0xff]   ;;  %v4615_v56 = vld [vmem:[%s6009_s1 + $0x928] ss:$16 sps:$4 sm:$0xff]  }
  0xf0   : > { %2065 = vmatprep.subr.bf16.mxu0 %v4527_v57  ;;  %2171 = vmatprep.subr.bf16.mxu1 %v4530_v58  ;;  %v4620_v57 = vld [vmem:[%s6009_s1 + $0x944] ss:$16 sps:$4 sm:$0xff]   ;;  %v4623_v58 = vld [vmem:[%s6009_s1 + $0x94c] ss:$16 sps:$4 sm:$0xff]  }
  0xf3   : > { %2066 = vmatpush1.bf16.msra.mxu0 %v4525_v59  ;;  %2172 = vmatpush1.bf16.msra.mxu1 %v4528_v60  ;;  %v4618_v59 = vld [vmem:[%s6009_s1 + $0x940] ss:$16 sps:$4 sm:$0xff]   ;;  %v4621_v60 = vld [vmem:[%s6009_s1 + $0x948] ss:$16 sps:$4 sm:$0xff]  }
  0xf4   : > { %2067 = vmatprep.subr.bf16.mxu0 %v4533_v61  ;;  %2173 = vmatprep.subr.bf16.mxu1 %v4536_v62  ;;  %v4626_v61 = vld [vmem:[%s6009_s1 + $0x964] ss:$16 sps:$4 sm:$0xff]   ;;  %v4629_v62 = vld [vmem:[%s6009_s1 + $0x96c] ss:$16 sps:$4 sm:$0xff]  }
  0xf7   : > { %2068 = vmatpush1.bf16.msra.mxu0 %v4531_v63  ;;  %2174 = vmatpush1.bf16.msra.mxu1 %v4534_v0  ;;  %v4624_v63 = vld [vmem:[%s6009_s1 + $0x960] ss:$16 sps:$4 sm:$0xff]   ;;  %v4627_v0 = vld [vmem:[%s6009_s1 + $0x968] ss:$16 sps:$4 sm:$0xff]  }
  0xf8   : > { %2069 = vmatprep.subr.bf16.mxu0 %v4539_v1  ;;  %2175 = vmatprep.subr.bf16.mxu1 %v4542_v2  ;;  %v4632_v1 = vld [vmem:[%s6009_s1 + $0x984] ss:$16 sps:$4 sm:$0xff]   ;;  %v4635_v2 = vld [vmem:[%s6009_s1 + $0x98c] ss:$16 sps:$4 sm:$0xff]  }
  0xfb   : > { %2070 = vmatpush1.bf16.msra.mxu0 %v4537_v3  ;;  %2176 = vmatpush1.bf16.msra.mxu1 %v4540_v4  ;;  %v4630_v3 = vld [vmem:[%s6009_s1 + $0x980] ss:$16 sps:$4 sm:$0xff]   ;;  %v4633_v4 = vld [vmem:[%s6009_s1 + $0x988] ss:$16 sps:$4 sm:$0xff]  }
  0xfc   : > { %2071 = vmatprep.subr.bf16.mxu0 %v4545_v5  ;;  %2177 = vmatprep.subr.bf16.mxu1 %v4548_v6  ;;  %v4638_v5 = vld [vmem:[%s6009_s1 + $0x9a4] ss:$16 sps:$4 sm:$0xff]   ;;  %v4641_v6 = vld [vmem:[%s6009_s1 + $0x9ac] ss:$16 sps:$4 sm:$0xff]  }
  0xff   : > { %2072 = vmatpush1.bf16.msra.mxu0 %v4543_v7  ;;  %2178 = vmatpush1.bf16.msra.mxu1 %v4546_v8  ;;  %v4636_v7 = vld [vmem:[%s6009_s1 + $0x9a0] ss:$16 sps:$4 sm:$0xff]   ;;  %v4639_v8 = vld [vmem:[%s6009_s1 + $0x9a8] ss:$16 sps:$4 sm:$0xff]  }
 0x100   : > { %2073 = vmatprep.subr.bf16.mxu0 %v4551_v9  ;;  %2179 = vmatprep.subr.bf16.mxu1 %v4554_v10  ;;  %v4644_v9 = vld [vmem:[%s6009_s1 + $0x9c4] ss:$16 sps:$4 sm:$0xff]   ;;  %v4647_v10 = vld [vmem:[%s6009_s1 + $0x9cc] ss:$16 sps:$4 sm:$0xff]  }
 0x103   : > { %2074 = vmatpush1.bf16.msra.mxu0 %v4549_v11  ;;  %2180 = vmatpush1.bf16.msra.mxu1 %v4552_v12  ;;  %v4642_v11 = vld [vmem:[%s6009_s1 + $0x9c0] ss:$16 sps:$4 sm:$0xff]   ;;  %v4645_v12 = vld [vmem:[%s6009_s1 + $0x9c8] ss:$16 sps:$4 sm:$0xff]  }
 0x104   : > { %3019 = vmatprep.subr.bf16.mxu0 %v4560_v13  ;;  %3125 = vmatprep.subr.bf16.mxu1 %v4563_v14  ;;  %v4650_v13 = vld [vmem:[%s6009_s1 + $0x9e4] ss:$16 sps:$4 sm:$0xff]   ;;  %v4653_v14 = vld [vmem:[%s6009_s1 + $0x9ec] ss:$16 sps:$4 sm:$0xff]  }
 0x106   : > { %2076 = vmatmul.mubr.bf16.vlgmr.msra.gmra.mrb[0].mxu0 %v4555_v15  ;;  %2182 = vmatmul.mubr.bf16.vlgmr.msra.gmra.mrb[0].mxu1 %v4555_v15  ;;  %v4648_v15 = vld [vmem:[%s6009_s1 + $0x9e0] ss:$16 sps:$4 sm:$0xff]  }
 0x107   : > { %3020 = vmatpush1.bf16.msra.mxu0 %v4558_v16  ;;  %3126 = vmatpush1.bf16.msra.mxu1 %v4561_v17  ;;  %v4651_v16 = vld [vmem:[%s6009_s1 + $0x9e8] ss:$16 sps:$4 sm:$0xff]   ;;  %v4659_v17 = vld [vmem:[%s6009_s1 + $0xa04] ss:$16 sps:$4 sm:$0xff]  }
 0x108   : > { %3021 = vmatprep.subr.bf16.mxu0 %v4566_v18  ;;  %3127 = vmatprep.subr.bf16.mxu1 %v4569_v19  ;;  %v4662_v18 = vld [vmem:[%s6009_s1 + $0xa0c] ss:$16 sps:$4 sm:$0xff]   ;;  %v4654_v19 = vld [vmem:[%s4948_s5 + $0x40] ss:$16 sps:$4 sm:$0xff]  }
 0x109   : > { %2085 = vmatprep.mubr.bf16.mxu0 %v4764_v24  ;;  %2191 = vmatprep.mubr.bf16.mxu1 %v4764_v24  ;;  %v4741_v24 = vld [vmem:[%s4948_s5 + $0x64] ss:$16 sps:$4 sm:$0xff]  }
 0x10b   : > { %3022 = vmatpush1.bf16.msra.mxu0 %v4564_v20  ;;  %3128 = vmatpush1.bf16.msra.mxu1 %v4567_v21  ;;  %v4657_v20 = vld [vmem:[%s6009_s1 + $0xa00] ss:$16 sps:$4 sm:$0xff]   ;;  %v4660_v21 = vld [vmem:[%s6009_s1 + $0xa08] ss:$16 sps:$4 sm:$0xff]  }
 0x10c   : > { %3023 = vmatprep.subr.bf16.mxu0 %v4572_v22  ;;  %3129 = vmatprep.subr.bf16.mxu1 %v4575_v23  ;;  %v4665_v22 = vld [vmem:[%s6009_s1 + $0xa24] ss:$16 sps:$4 sm:$0xff]   ;;  %v4668_v23 = vld [vmem:[%s6009_s1 + $0xa2c] ss:$16 sps:$4 sm:$0xff]  }
 0x10e   : > { %2086 = vmatmul.mubr.bf16.gmra.mrb[4].mxu0 %v4765_v31  ;;  %2192 = vmatmul.mubr.bf16.gmra.mrb[4].mxu1 %v4765_v31  ;;  %v4672_v31 = vld [vmem:[%s6009_s1 + $0xa48] ss:$16 sps:$4 sm:$0xff]  }
 0x10f   : > { %3024 = vmatpush1.bf16.msra.mxu0 %v4570_v25  ;;  %3130 = vmatpush1.bf16.msra.mxu1 %v4573_v26  ;;  %v4663_v25 = vld [vmem:[%s6009_s1 + $0xa20] ss:$16 sps:$4 sm:$0xff]   ;;  %v4666_v26 = vld [vmem:[%s6009_s1 + $0xa28] ss:$16 sps:$4 sm:$0xff]  }
 0x110   : > { %3025 = vmatprep.subr.bf16.mxu0 %v4578_v27  ;;  %3131 = vmatprep.subr.bf16.mxu1 %v4581_v28  ;;  %v4671_v27 = vld [vmem:[%s6009_s1 + $0xa44] ss:$16 sps:$4 sm:$0xff]   ;;  %v4674_v28 = vld [vmem:[%s6009_s1 + $0xa4c] ss:$16 sps:$4 sm:$0xff]  }
 0x111   : > { %3051 = vmatprep.mubr.bf16.mxu0 %v4656_v29  ;;  %3157 = vmatprep.mubr.bf16.mxu1 %v4656_v29  ;;  %v4743_v29 = vld [vmem:[%s4948_s5 + $0x60] ss:$16 sps:$4 sm:$0xff]  }
 0x113   : > { %3026 = vmatpush1.bf16.msra.mxu0 %v4576_v30  ;;  %3132 = vmatpush1.bf16.msra.mxu1 %v4579_v32  ;;  %v4669_v30 = vld [vmem:[%s6009_s1 + $0xa40] ss:$16 sps:$4 sm:$0xff]   ;;  %v4677_v32 = vld [vmem:[%s6009_s1 + $0xa64] ss:$16 sps:$4 sm:$0xff]  }
 0x114   : > { %3027 = vmatprep.subr.bf16.mxu0 %v4584_v33  ;;  %3133 = vmatprep.subr.bf16.mxu1 %v4587_v34  ;;  %v4680_v33 = vld [vmem:[%s6009_s1 + $0xa6c] ss:$16 sps:$4 sm:$0xff]  }
 0x115   : > { %v4758_v34 = vld [vmem:[%s4948_s5 + $0x4c] ss:$16 sps:$4 sm:$0xff]  }
 0x117   : > { %3028 = vmatpush1.bf16.msra.mxu0 %v4582_v35  ;;  %3134 = vmatpush1.bf16.msra.mxu1 %v4585_v36  ;;  %v4675_v35 = vld [vmem:[%s6009_s1 + $0xa60] ss:$16 sps:$4 sm:$0xff]   ;;  %v4678_v36 = vld [vmem:[%s6009_s1 + $0xa68] ss:$16 sps:$4 sm:$0xff]  }
 0x118   : > { %3029 = vmatprep.subr.bf16.mxu0 %v4590_v37  ;;  %3135 = vmatprep.subr.bf16.mxu1 %v4593_v38  ;;  %v4683_v37 = vld [vmem:[%s6009_s1 + $0xa84] ss:$16 sps:$4 sm:$0xff]   ;;  %v4686_v38 = vld [vmem:[%s6009_s1 + $0xa8c] ss:$16 sps:$4 sm:$0xff]  }
 0x11b   : > { %3030 = vmatpush1.bf16.msra.mxu0 %v4588_v39  ;;  %3136 = vmatpush1.bf16.msra.mxu1 %v4591_v40  ;;  %v4681_v39 = vld [vmem:[%s6009_s1 + $0xa80] ss:$16 sps:$4 sm:$0xff]   ;;  %v4684_v40 = vld [vmem:[%s6009_s1 + $0xa88] ss:$16 sps:$4 sm:$0xff]  }
 0x11c   : > { %3031 = vmatprep.subr.bf16.mxu0 %v4596_v41  ;;  %3137 = vmatprep.subr.bf16.mxu1 %v4599_v42  ;;  %v4689_v41 = vld [vmem:[%s6009_s1 + $0xaa4] ss:$16 sps:$4 sm:$0xff]   ;;  %v4692_v42 = vld [vmem:[%s6009_s1 + $0xaac] ss:$16 sps:$4 sm:$0xff]  }
 0x11f   : > { %3032 = vmatpush1.bf16.msra.mxu0 %v4594_v43  ;;  %3138 = vmatpush1.bf16.msra.mxu1 %v4597_v44  ;;  %v4687_v43 = vld [vmem:[%s6009_s1 + $0xaa0] ss:$16 sps:$4 sm:$0xff]   ;;  %v4690_v44 = vld [vmem:[%s6009_s1 + $0xaa8] ss:$16 sps:$4 sm:$0xff]  }
 0x120   : > { %3033 = vmatprep.subr.bf16.mxu0 %v4602_v45  ;;  %3139 = vmatprep.subr.bf16.mxu1 %v4605_v46  ;;  %v4695_v45 = vld [vmem:[%s6009_s1 + $0xac4] ss:$16 sps:$4 sm:$0xff]   ;;  %v4698_v46 = vld [vmem:[%s6009_s1 + $0xacc] ss:$16 sps:$4 sm:$0xff]  }
 0x123   : > { %3034 = vmatpush1.bf16.msra.mxu0 %v4600_v47  ;;  %3140 = vmatpush1.bf16.msra.mxu1 %v4603_v48  ;;  %v4693_v47 = vld [vmem:[%s6009_s1 + $0xac0] ss:$16 sps:$4 sm:$0xff]   ;;  %v4696_v48 = vld [vmem:[%s6009_s1 + $0xac8] ss:$16 sps:$4 sm:$0xff]  }
 0x124   : > { %3035 = vmatprep.subr.bf16.mxu0 %v4608_v49  ;;  %3141 = vmatprep.subr.bf16.mxu1 %v4611_v50  ;;  %v4701_v49 = vld [vmem:[%s6009_s1 + $0xae4] ss:$16 sps:$4 sm:$0xff]   ;;  %v4704_v50 = vld [vmem:[%s6009_s1 + $0xaec] ss:$16 sps:$4 sm:$0xff]  }
 0x127   : > { %3036 = vmatpush1.bf16.msra.mxu0 %v4606_v51  ;;  %3142 = vmatpush1.bf16.msra.mxu1 %v4609_v52  ;;  %v4699_v51 = vld [vmem:[%s6009_s1 + $0xae0] ss:$16 sps:$4 sm:$0xff]   ;;  %v4702_v52 = vld [vmem:[%s6009_s1 + $0xae8] ss:$16 sps:$4 sm:$0xff]  }
 0x128   : > { %3037 = vmatprep.subr.bf16.mxu0 %v4614_v53  ;;  %3143 = vmatprep.subr.bf16.mxu1 %v4617_v54  ;;  %v4707_v53 = vld [vmem:[%s6009_s1 + $0xb04] ss:$16 sps:$4 sm:$0xff]   ;;  %v4710_v54 = vld [vmem:[%s6009_s1 + $0xb0c] ss:$16 sps:$4 sm:$0xff]  }
 0x12b   : > { %3038 = vmatpush1.bf16.msra.mxu0 %v4612_v55  ;;  %3144 = vmatpush1.bf16.msra.mxu1 %v4615_v56  ;;  %v4705_v55 = vld [vmem:[%s6009_s1 + $0xb00] ss:$16 sps:$4 sm:$0xff]   ;;  %v4708_v56 = vld [vmem:[%s6009_s1 + $0xb08] ss:$16 sps:$4 sm:$0xff]  }
 0x12c   : > { %3039 = vmatprep.subr.bf16.mxu0 %v4620_v57  ;;  %3145 = vmatprep.subr.bf16.mxu1 %v4623_v58  ;;  %v4713_v57 = vld [vmem:[%s6009_s1 + $0xb24] ss:$16 sps:$4 sm:$0xff]   ;;  %v4716_v58 = vld [vmem:[%s6009_s1 + $0xb2c] ss:$16 sps:$4 sm:$0xff]  }
 0x12f   : > { %3040 = vmatpush1.bf16.msra.mxu0 %v4618_v59  ;;  %3146 = vmatpush1.bf16.msra.mxu1 %v4621_v60  ;;  %v4711_v59 = vld [vmem:[%s6009_s1 + $0xb20] ss:$16 sps:$4 sm:$0xff]   ;;  %v4714_v60 = vld [vmem:[%s6009_s1 + $0xb28] ss:$16 sps:$4 sm:$0xff]  }
 0x130   : > { %3041 = vmatprep.subr.bf16.mxu0 %v4626_v61  ;;  %3147 = vmatprep.subr.bf16.mxu1 %v4629_v62  ;;  %v4719_v61 = vld [vmem:[%s6009_s1 + $0xb44] ss:$16 sps:$4 sm:$0xff]   ;;  %v4722_v62 = vld [vmem:[%s6009_s1 + $0xb4c] ss:$16 sps:$4 sm:$0xff]  }
 0x133   : > { %3042 = vmatpush1.bf16.msra.mxu0 %v4624_v63  ;;  %3148 = vmatpush1.bf16.msra.mxu1 %v4627_v0  ;;  %v4717_v63 = vld [vmem:[%s6009_s1 + $0xb40] ss:$16 sps:$4 sm:$0xff]   ;;  %v4720_v0 = vld [vmem:[%s6009_s1 + $0xb48] ss:$16 sps:$4 sm:$0xff]  }
 0x134   : > { %3043 = vmatprep.subr.bf16.mxu0 %v4632_v1  ;;  %3149 = vmatprep.subr.bf16.mxu1 %v4635_v2  ;;  %v4725_v1 = vld [vmem:[%s6009_s1 + $0xb64] ss:$16 sps:$4 sm:$0xff]   ;;  %v4728_v2 = vld [vmem:[%s6009_s1 + $0xb6c] ss:$16 sps:$4 sm:$0xff]  }
 0x137   : > { %3044 = vmatpush1.bf16.msra.mxu0 %v4630_v3  ;;  %3150 = vmatpush1.bf16.msra.mxu1 %v4633_v4  ;;  %v4723_v3 = vld [vmem:[%s6009_s1 + $0xb60] ss:$16 sps:$4 sm:$0xff]   ;;  %v4726_v4 = vld [vmem:[%s6009_s1 + $0xb68] ss:$16 sps:$4 sm:$0xff]  }
 0x138   : > { %3045 = vmatprep.subr.bf16.mxu0 %v4638_v5  ;;  %3151 = vmatprep.subr.bf16.mxu1 %v4641_v6  ;;  %v4731_v5 = vld [vmem:[%s6009_s1 + $0xb84] ss:$16 sps:$4 sm:$0xff]   ;;  %v4734_v6 = vld [vmem:[%s6009_s1 + $0xb8c] ss:$16 sps:$4 sm:$0xff]  }
 0x13b   : > { %3046 = vmatpush1.bf16.msra.mxu0 %v4636_v7  ;;  %3152 = vmatpush1.bf16.msra.mxu1 %v4639_v8  ;;  %v4729_v7 = vld [vmem:[%s6009_s1 + $0xb80] ss:$16 sps:$4 sm:$0xff]   ;;  %v4732_v8 = vld [vmem:[%s6009_s1 + $0xb88] ss:$16 sps:$4 sm:$0xff]  }
 0x13c   : > { %3047 = vmatprep.subr.bf16.mxu0 %v4644_v9  ;;  %3153 = vmatprep.subr.bf16.mxu1 %v4647_v10  ;;  %v4737_v9 = vld [vmem:[%s6009_s1 + $0xba4] ss:$16 sps:$4 sm:$0xff]   ;;  %v4740_v10 = vld [vmem:[%s6009_s1 + $0xbac] ss:$16 sps:$4 sm:$0xff]  }
 0x13f   : > { %3048 = vmatpush1.bf16.msra.mxu0 %v4642_v11  ;;  %3154 = vmatpush1.bf16.msra.mxu1 %v4645_v12  ;;  %v4735_v11 = vld [vmem:[%s6009_s1 + $0xba0] ss:$16 sps:$4 sm:$0xff]   ;;  %v4738_v12 = vld [vmem:[%s6009_s1 + $0xba8] ss:$16 sps:$4 sm:$0xff]  }
 0x140   : > { %3049 = vmatprep.subr.bf16.mxu0 %v4650_v13  ;;  %3155 = vmatprep.subr.bf16.mxu1 %v4653_v14  ;;  %v4746_v13 = vld [vmem:[%s6009_s1 + $0xbc4] ss:$16 sps:$4 sm:$0xff]   ;;  %v4749_v14 = vld [vmem:[%s6009_s1 + $0xbcc] ss:$16 sps:$4 sm:$0xff]  }
 0x143   : > { %3050 = vmatpush1.bf16.msra.mxu0 %v4648_v15  ;;  %3156 = vmatpush1.bf16.msra.mxu1 %v4651_v16  ;;  %v4744_v15 = vld [vmem:[%s6009_s1 + $0xbc0] ss:$16 sps:$4 sm:$0xff]   ;;  %v4747_v16 = vld [vmem:[%s6009_s1 + $0xbc8] ss:$16 sps:$4 sm:$0xff]  }
 0x144   : > { %3072 = vmatprep.subr.bf16.mxu0 %v4659_v17  ;;  %3178 = vmatprep.subr.bf16.mxu1 %v4662_v18  ;;  %v4752_v17 = vld [vmem:[%s6009_s1 + $0xbe4] ss:$16 sps:$4 sm:$0xff]   ;;  %v4755_v18 = vld [vmem:[%s6009_s1 + $0xbec] ss:$16 sps:$4 sm:$0xff]  }
 0x146   : > { %3052 = vmatmul.mubr.bf16.vlgmr.msra.gmra.mrb[0].mxu0 %v4654_v19  ;;  %3158 = vmatmul.mubr.bf16.vlgmr.msra.gmra.mrb[0].mxu1 %v4654_v19  ;;  %v4750_v19 = vld [vmem:[%s6009_s1 + $0xbe0] ss:$16 sps:$4 sm:$0xff]  }
 0x147   : > { %3073 = vmatpush1.bf16.msra.mxu0 %v4657_v20  ;;  %3179 = vmatpush1.bf16.msra.mxu1 %v4660_v21  ;;  %v4753_v20 = vld [vmem:[%s6009_s1 + $0xbe8] ss:$16 sps:$4 sm:$0xff]  }
 0x148   : > { %3074 = vmatprep.subr.bf16.mxu0 %v4665_v22  ;;  %3180 = vmatprep.subr.bf16.mxu1 %v4668_v23  ;;  %v4756_v21 = vld [vmem:[%s4948_s5 + $0x48] ss:$16 sps:$4 sm:$0xff]   ;;  %v4759_v22 = vld [vmem:[%s4948_s5 + $0x6c] ss:$16 sps:$4 sm:$0xff]  }
 0x149   : > { %3061 = vmatprep.mubr.bf16.mxu0 %v4741_v24  ;;  %3167 = vmatprep.mubr.bf16.mxu1 %v4741_v24  ;;  %v4761_v23 = vld [vmem:[%s4948_s5 + $0x68] ss:$16 sps:$4 sm:$0xff]   ;;  %v3249_v24 = vlaneseq  ;;  %s3403_s5 = sshll.u32 %s6013_s13, 1 }
 0x14a   : > { %s168_s18 = scalar_lea.vmem %s6011_s3, %s3403_s5 }
 0x14b   : > { %3075 = vmatpush1.bf16.msra.mxu0 %v4663_v25  ;;  %3181 = vmatpush1.bf16.msra.mxu1 %v4666_v26  ;;  %v5991_v25 = vshrl.u32 %v3249_v24, 7 }
 0x14c   : > { %3076 = vmatprep.subr.bf16.mxu0 %v4671_v27  ;;  %3182 = vmatprep.subr.bf16.mxu1 %v4674_v28  ;;  %v3247_v28 = vld [vmem:[%s6010_s2] sm:$0xf] }
 0x14d   : > { %v3251_v26 = vsub.s32 0, %v5991_v25  ;;  %v3259_v27 = vsub.s32 2, %v5991_v25 }
 0x14e   : > { %3062 = vmatmul.mubr.bf16.gmra.mrb[4].mxu0 %v4743_v29  ;;  %3168 = vmatmul.mubr.bf16.gmra.mrb[4].mxu1 %v4743_v29  ;;  %v3255_v29 = vsub.s32 1, %v5991_v25 }
 0x14f   : > { %3077 = vmatpush1.bf16.msra.mxu0 %v4669_v30  ;;  %3183 = vmatpush1.bf16.msra.mxu1 %v4672_v31  ;;  %v3263_v30 = vsub.s32 3, %v5991_v25  ;;  %v3252_v31 = vrot.slane %v3247_v28, %v3251_v26 }
 0x150   : > { %3078 = vmatprep.subr.bf16.mxu0 %v4677_v32  ;;  %3184 = vmatprep.subr.bf16.mxu1 %v4680_v33  ;;  %v3260_v32 = vrot.slane %v3247_v28, %v3259_v27  ;;  %v3256_v33 = vrot.slane %v3247_v28, %v3255_v29 }
 0x151   : > { %3104 = vmatprep.mubr.bf16.mxu0 %v4758_v34  ;;  %3210 = vmatprep.mubr.bf16.mxu1 %v4758_v34  ;;  %v3264_v34 = vrot.slane %v3247_v28, %v3263_v30 }
 0x153   : > { %3079 = vmatpush1.bf16.msra.mxu0 %v4675_v35  ;;  %3185 = vmatpush1.bf16.msra.mxu1 %v4678_v36 }
 0x154   : > { %3080 = vmatprep.subr.bf16.mxu0 %v4683_v37  ;;  %3186 = vmatprep.subr.bf16.mxu1 %v4686_v38 }
 0x157   : > { %3081 = vmatpush1.bf16.msra.mxu0 %v4681_v39  ;;  %3187 = vmatpush1.bf16.msra.mxu1 %v4684_v40 }
 0x158   : > { %3082 = vmatprep.subr.bf16.mxu0 %v4689_v41  ;;  %3188 = vmatprep.subr.bf16.mxu1 %v4692_v42 }
 0x15b   : > { %3083 = vmatpush1.bf16.msra.mxu0 %v4687_v43  ;;  %3189 = vmatpush1.bf16.msra.mxu1 %v4690_v44 }
 0x15c   : > { %3084 = vmatprep.subr.bf16.mxu0 %v4695_v45  ;;  %3190 = vmatprep.subr.bf16.mxu1 %v4698_v46 }
 0x15f   : > { %3085 = vmatpush1.bf16.msra.mxu0 %v4693_v47  ;;  %3191 = vmatpush1.bf16.msra.mxu1 %v4696_v48 }
 0x160   : > { %3086 = vmatprep.subr.bf16.mxu0 %v4701_v49  ;;  %3192 = vmatprep.subr.bf16.mxu1 %v4704_v50 }
 0x163   : > { %3087 = vmatpush1.bf16.msra.mxu0 %v4699_v51  ;;  %3193 = vmatpush1.bf16.msra.mxu1 %v4702_v52 }
 0x164   : > { %3088 = vmatprep.subr.bf16.mxu0 %v4707_v53  ;;  %3194 = vmatprep.subr.bf16.mxu1 %v4710_v54 }
 0x167   : > { %3089 = vmatpush1.bf16.msra.mxu0 %v4705_v55  ;;  %3195 = vmatpush1.bf16.msra.mxu1 %v4708_v56 }
 0x168   : > { %3090 = vmatprep.subr.bf16.mxu0 %v4713_v57  ;;  %3196 = vmatprep.subr.bf16.mxu1 %v4716_v58 }
 0x16b   : > { %3091 = vmatpush1.bf16.msra.mxu0 %v4711_v59  ;;  %3197 = vmatpush1.bf16.msra.mxu1 %v4714_v60 }
 0x16c   : > { %3092 = vmatprep.subr.bf16.mxu0 %v4719_v61  ;;  %3198 = vmatprep.subr.bf16.mxu1 %v4722_v62 }
 0x16f   : > { %3093 = vmatpush1.bf16.msra.mxu0 %v4717_v63  ;;  %3199 = vmatpush1.bf16.msra.mxu1 %v4720_v0 }
 0x170   : > { %3094 = vmatprep.subr.bf16.mxu0 %v4725_v1  ;;  %3200 = vmatprep.subr.bf16.mxu1 %v4728_v2 }
 0x173   : > { %3095 = vmatpush1.bf16.msra.mxu0 %v4723_v3  ;;  %3201 = vmatpush1.bf16.msra.mxu1 %v4726_v4 }
 0x174   : > { %3096 = vmatprep.subr.bf16.mxu0 %v4731_v5  ;;  %3202 = vmatprep.subr.bf16.mxu1 %v4734_v6 }
 0x177   : > { %3097 = vmatpush1.bf16.msra.mxu0 %v4729_v7  ;;  %3203 = vmatpush1.bf16.msra.mxu1 %v4732_v8 }
 0x178   : > { %3098 = vmatprep.subr.bf16.mxu0 %v4737_v9  ;;  %3204 = vmatprep.subr.bf16.mxu1 %v4740_v10 }
 0x17b   : > { %3099 = vmatpush1.bf16.msra.mxu0 %v4735_v11  ;;  %3205 = vmatpush1.bf16.msra.mxu1 %v4738_v12 }
 0x17c   : > { %3100 = vmatprep.subr.bf16.mxu0 %v4746_v13  ;;  %3206 = vmatprep.subr.bf16.mxu1 %v4749_v14 }
 0x17f   : > { %3101 = vmatpush1.bf16.msra.mxu0 %v4744_v15  ;;  %3207 = vmatpush1.bf16.msra.mxu1 %v4747_v16 }
 0x180   : > { %3102 = vmatprep.subr.bf16.mxu0 %v4752_v17  ;;  %3208 = vmatprep.subr.bf16.mxu1 %v4755_v18  ;;  %v4774_v17 = vmov 1966171168  }
 0x181   : > { %v3319_v18 = vunpack.c.l.s4 %v4774_v17 }
 0x183   : > { %3103 = vmatpush1.bf16.msra.mxu0 %v4750_v19  ;;  %3209 = vmatpush1.bf16.msra.mxu1 %v4753_v20 }
 0x186   : > { %3105 = vmatmul.mubr.bf16.vlgmr.msra.gmra.mrb[0].mxu0 %v4756_v21  ;;  %3211 = vmatmul.mubr.bf16.vlgmr.msra.gmra.mrb[0].mxu1 %v4756_v21 }
 0x187   : > { %3114 = vmatprep.mubr.bf16.mxu0 %v4759_v22  ;;  %3220 = vmatprep.mubr.bf16.mxu1 %v4759_v22 }
 0x18e   : > { %3115 = vmatmul.mubr.bf16.gmra.mrb[4].mxu0 %v4761_v23  ;;  %3221 = vmatmul.mubr.bf16.gmra.mrb[4].mxu1 %v4761_v23 }
 0x259   : > { %v3106_v35 = vpop.f32.mrb[0].mxu0  ;;  %v3212_v36 = vpop.f32.mrb[0].mxu1 }
 0x25a   : > { %v3269_v37 = vadd.f32 %v3252_v31, %v3106_v35  ;;  %v3271_v38 = vadd.f32 %v3260_v32, %v3212_v36  ;;  %v3108_v39 = vpop.f32.mrb[1].mxu0  ;;  %v3214_v40 = vpop.f32.mrb[1].mxu1 }
 0x25b   : > { %v3270_v41 = vadd.f32 %v3256_v33, %v3108_v39  ;;  %v3272_v42 = vadd.f32 %v3264_v34, %v3214_v40  ;;  %v3110_v43 = vpop.f32.mrb[2].mxu0  ;;  %v3216_v44 = vpop.f32.mrb[2].mxu1  ;;  %v3340_v40 = vld [vmem:[%s168_s18] sm:$0x3] }
 0x25c   : > { %v3273_v45 = vadd.f32 %v3252_v31, %v3110_v43  ;;  %v3275_v46 = vadd.f32 %v3260_v32, %v3216_v44  ;;  %v3112_v47 = vpop.f32.mrb[3].mxu0  ;;  %v3218_v48 = vpop.f32.mrb[3].mxu1  ;;  %v3285_v51 = vmax.f32 %v3269_v37, 0.0  ;;  %v3287_v52 = vmax.f32 %v3271_v38, 0.0 }
 0x25d   : > { %v3274_v49 = vadd.f32 %v3256_v33, %v3112_v47  ;;  %v3276_v50 = vadd.f32 %v3264_v34, %v3218_v48  ;;  %v3286_v55 = vmax.f32 %v3270_v41, 0.0  ;;  %v3288_v56 = vmax.f32 %v3272_v42, 0.0 }
 0x25e   : > { %v3289_v53 = vmax.f32 %v3273_v45, 0.0  ;;  %v3291_v54 = vmax.f32 %v3275_v46, 0.0 }
 0x25f   : > { %v3290_v57 = vmax.f32 %v3274_v49, 0.0  ;;  %v3292_v58 = vmax.f32 %v3276_v50, 0.0 }
 0x260   : > { %v3301_v59 = vpack.c.bf16 %v3289_v53, %v3285_v51  ;;  %v3303_v60 = vpack.c.bf16 %v3291_v54, %v3287_v52 }
 0x261   : > { %v3302_v61 = vpack.c.bf16 %v3290_v57, %v3286_v55  ;;  %v3304_v62 = vpack.c.bf16 %v3292_v58, %v3288_v56  ;;  %v3116_v63 = vpop.f32.mrb[4].mxu0  ;;  %v3222_v0 = vpop.f32.mrb[4].mxu1 }
 0x262   : > { %v3309_v1 = vmax.bf16 %v3303_v60, %v3301_v59  ;;  %v3277_v2 = vadd.f32 %v3252_v31, %v3116_v63  ;;  %v3279_v3 = vadd.f32 %v3260_v32, %v3222_v0  ;;  %v3118_v4 = vpop.f32.mrb[5].mxu0  ;;  %v3224_v5 = vpop.f32.mrb[5].mxu1 }
 0x263   : > { %v3310_v6 = vmax.bf16 %v3304_v62, %v3302_v61  ;;  %v3278_v7 = vadd.f32 %v3256_v33, %v3118_v4  ;;  %v3280_v8 = vadd.f32 %v3264_v34, %v3224_v5  ;;  %v3120_v9 = vpop.f32.mrb[6].mxu0  ;;  %v3226_v10 = vpop.f32.mrb[6].mxu1 }
 0x264   : > { %v3281_v11 = vadd.f32 %v3252_v31, %v3120_v9  ;;  %v3283_v12 = vadd.f32 %v3260_v32, %v3226_v10  ;;  %v3122_v13 = vpop.f32.mrb[7].mxu0  ;;  %v3228_v14 = vpop.f32.mrb[7].mxu1  ;;  %v3293_v19 = vmax.f32 %v3277_v2, 0.0  ;;  %v3295_v20 = vmax.f32 %v3279_v3, 0.0 }
 0x265   : > { %v3282_v15 = vadd.f32 %v3256_v33, %v3122_v13  ;;  %v3284_v16 = vadd.f32 %v3264_v34, %v3228_v14  ;;  %v3294_v23 = vmax.f32 %v3278_v7, 0.0  ;;  %v3296_v24 = vmax.f32 %v3280_v8, 0.0 }
 0x266   : > { %v3297_v21 = vmax.f32 %v3281_v11, 0.0  ;;  %v3299_v22 = vmax.f32 %v3283_v12, 0.0  ;;  %v3320_v32 = vunpack.c.0.s8 %v3319_v18 }
 0x267   : > { %v3298_v26 = vmax.f32 %v3282_v15, 0.0  ;;  %v3300_v27 = vmax.f32 %v3284_v16, 0.0 }
 0x268   : > { %v3305_v28 = vpack.c.bf16 %v3297_v21, %v3293_v19  ;;  %v3307_v29 = vpack.c.bf16 %v3299_v22, %v3295_v20  ;;  %v3323_v37 = vsub.s32 %v3320_v32, %v5991_v25 }
 0x269   : > { %v3306_v30 = vpack.c.bf16 %v3298_v26, %v3294_v23  ;;  %v3308_v31 = vpack.c.bf16 %v3300_v27, %v3296_v24 }
 0x26a   : > { %v3311_v35 = vmax.bf16 %v3307_v29, %v3305_v28 }
 0x26b   : > { %v3312_v36 = vmax.bf16 %v3308_v31, %v3306_v30 }
 0x26c   : > { %v3313_v33 = vmax.bf16 %v3311_v35, %v3309_v1 }
 0x26d   : > { %v3314_v34 = vmax.bf16 %v3312_v36, %v3310_v6 }
 0x26f   : > { %v3317_v38 = vcombine.low %v3313_v33, %v3314_v34 }
 0x271   : > { %v3324_v39 = vrot.slane %v3317_v38, %v3323_v37 }
 0x273   : > { %v3331_v41 = vrot.slane %v3324_v39, %v3323_v37 }
 0x275   : > { %v3341_v42 = vsel %vm3339_vm6, %v3331_v41, %v3340_v40 }
 0x276   : > { %3342 = vst [vmem:[%s168_s18] sm:$0x3] %v3341_v42 }
 0x277 PF: > { %s13_s12 = sadd.s32 1, %s4772_s12  }
 0x278   : > { %p10_p4 = scmp.ge.s32.totalorder %s13_s12, 4  }
 0x27a   :  { %12 = sbr.rel (!%p10_p4) target bundleno = 1 (0x1), region = 64 }

// kernel: tile.28
= control target key start
LH: loop header
LB: loop body
LE: loop exit
PB: predicated region body
PF: predicated region fallthrough
CT: control target
= control target key end

     0   :  { %s22_s0 = inlined_call_operand.vmem [shape: f32[64], index: 0, kind: input, shape index: {}]   ;;  %s23_s1 = inlined_call_operand.vmem [shape: f32[4,64], index: 1, kind: output, shape index: {}]  }
   0x1   :  { %v4_v0 = vld [vmem:[%s22_s0] ss:$0 sm:$0xff] }
   0x2   :  { %5 = vst [vmem:[%s23_s1] sm:$0xf] %v4_v0 }

// kernel: tile.29
= control target key start
LH: loop header
LB: loop body
LE: loop exit
PB: predicated region body
PF: predicated region fallthrough
CT: control target
= control target key end

     0   :  { %s6_s8 = smov 3  ;;  %vm8_vm0 = vcmask 523264   ;;  %s30_s9 = smov 64   ;;  %vm15_vm1 = vcmask 1048064   ;;  %s50_s0 = inlined_call_operand.vmem [shape: f32[4,64], index: 0, kind: input, shape index: {}]   ;;  %s51_s1 = inlined_call_operand.vmem [shape: f32[1,256], index: 1, kind: output, shape index: {}]  }
   0x1   :  { %v4_v0 = vld [vmem:[%s50_s0] sm:$0xf]  ;;  %s11_s0 = smov 3 }
   0x2   :  { %5 = vst [vmem:[#allocation1] sm:$0xf] %v4_v0 }
   0x9   :  { %v12_v1 = vld [vmem:[#allocation1 + $0x1] ss:$2 sm:%s11_s0]   ;;  %v7_v2 = vld [vmem:[#allocation1] ss:$2 sm:%s6_s8]  }
   0xa   :  { %13 = vrot.lane.b32.xlu0 %v12_v1, %s30_s9  ;;  %9 = vst.msk [vmem:[#allocation0] ss:$8 sm:$0x3] %vm8_vm0, %v7_v2  }
  0x7c   :  { %v14_v3 = vpop.permute.xlu0 %13  }
  0x7d   :  { %16 = vst.msk [vmem:[#allocation0] ss:$8 sm:$0x3] %vm15_vm1, %v14_v3  }
  0x84   :  { %v20_v4 = vld [vmem:[#allocation0] sm:$0x1]  ;;  %v24_v5 = vld [vmem:[#allocation0 + $0x8] sm:$0x1] }
  0x85   :  { %22 = vst [vmem:[%s51_s1] sm:$0x1] %v20_v4  ;;  %28 = vst [vmem:[%s51_s1 + $0x1] sm:$0x1] %v24_v5 }

// kernel: denoising_autoencoder.12
= control target key start
LH: loop header
LB: loop body
LE: loop exit
PB: predicated region body
PF: predicated region fallthrough
CT: control target
= control target key end

     0   :  { %v81_v38 = vlaneseq  ;;  %v735_v39 = vmov 1966171168   ;;  %s970_s1 = inlined_call_operand.vmem [shape: bf16[256,512], index: 1, kind: input, shape index: {}]   ;;  %s971_s0 = inlined_call_operand.vmem [shape: bf16[2,256], index: 0, kind: input, shape index: {}]   ;;  %s972_s2 = inlined_call_operand.vmem [shape: f32[1,512], index: 2, kind: input, shape index: {}]   ;;  %s973_s3 = inlined_call_operand.vmem [shape: bf16[2,512], index: 3, kind: output, shape index: {}]  }
   0x1   :  { %v639_v0 = vld [vmem:[%s970_s1 + $0x4] ss:$16 sps:$4 sm:$0xff]   ;;  %v641_v1 = vld [vmem:[%s970_s1 + $0xc] ss:$16 sps:$4 sm:$0xff]   ;;  %v643_v2 = vld [vmem:[%s970_s1] ss:$16 sps:$4 sm:$0xff]   ;;  %v111_v40 = vunpack.c.l.s4 %v735_v39 }
   0x2   :  { %446 = vmatprep.subr.bf16.mxu0 %v639_v0  ;;  %v644_v3 = vld [vmem:[%s970_s1 + $0x8] ss:$16 sps:$4 sm:$0xff]   ;;  %487 = vmatprep.subr.bf16.mxu1 %v641_v1  ;;  %v645_v4 = vld [vmem:[%s970_s1 + $0x24] ss:$16 sps:$4 sm:$0xff]   ;;  %v647_v5 = vld [vmem:[%s970_s1 + $0x2c] ss:$16 sps:$4 sm:$0xff]  }
   0x3   :  { %447 = vmatpush1.bf16.msra.mxu0 %v643_v2  ;;  %488 = vmatpush1.bf16.msra.mxu1 %v644_v3  ;;  %v649_v6 = vld [vmem:[%s970_s1 + $0x20] ss:$16 sps:$4 sm:$0xff]   ;;  %v650_v7 = vld [vmem:[%s970_s1 + $0x28] ss:$16 sps:$4 sm:$0xff]   ;;  %v651_v8 = vld [vmem:[%s970_s1 + $0x44] ss:$16 sps:$4 sm:$0xff]   ;;  %v112_v46 = vunpack.c.0.s8 %v111_v40 }
   0x4   :  { %448 = vmatprep.subr.bf16.mxu0 %v645_v4  ;;  %489 = vmatprep.subr.bf16.mxu1 %v647_v5  ;;  %v653_v9 = vld [vmem:[%s970_s1 + $0x4c] ss:$16 sps:$4 sm:$0xff]   ;;  %v655_v10 = vld [vmem:[%s970_s1 + $0x40] ss:$16 sps:$4 sm:$0xff]   ;;  %v656_v11 = vld [vmem:[%s970_s1 + $0x48] ss:$16 sps:$4 sm:$0xff]  }
   0x5   :  { %v657_v12 = vld [vmem:[%s970_s1 + $0x64] ss:$16 sps:$4 sm:$0xff]   ;;  %v659_v13 = vld [vmem:[%s970_s1 + $0x6c] ss:$16 sps:$4 sm:$0xff]   ;;  %v661_v14 = vld [vmem:[%s970_s1 + $0x60] ss:$16 sps:$4 sm:$0xff]  }
   0x6   :  { %v662_v15 = vld [vmem:[%s970_s1 + $0x68] ss:$16 sps:$4 sm:$0xff]   ;;  %v663_v16 = vld [vmem:[%s970_s1 + $0x84] ss:$16 sps:$4 sm:$0xff]   ;;  %v665_v17 = vld [vmem:[%s970_s1 + $0x8c] ss:$16 sps:$4 sm:$0xff]  }
   0x7   :  { %449 = vmatpush1.bf16.msra.mxu0 %v649_v6  ;;  %490 = vmatpush1.bf16.msra.mxu1 %v650_v7  ;;  %v667_v18 = vld [vmem:[%s970_s1 + $0x80] ss:$16 sps:$4 sm:$0xff]   ;;  %v668_v19 = vld [vmem:[%s970_s1 + $0x88] ss:$16 sps:$4 sm:$0xff]   ;;  %v669_v20 = vld [vmem:[%s970_s1 + $0xa4] ss:$16 sps:$4 sm:$0xff]  }
   0x8   :  { %450 = vmatprep.subr.bf16.mxu0 %v651_v8  ;;  %491 = vmatprep.subr.bf16.mxu1 %v653_v9  ;;  %v671_v21 = vld [vmem:[%s970_s1 + $0xac] ss:$16 sps:$4 sm:$0xff]   ;;  %v673_v22 = vld [vmem:[%s970_s1 + $0xa0] ss:$16 sps:$4 sm:$0xff]   ;;  %v674_v23 = vld [vmem:[%s970_s1 + $0xa8] ss:$16 sps:$4 sm:$0xff]  }
   0x9   :  { %v675_v24 = vld [vmem:[%s970_s1 + $0xc4] ss:$16 sps:$4 sm:$0xff]   ;;  %v677_v25 = vld [vmem:[%s970_s1 + $0xcc] ss:$16 sps:$4 sm:$0xff]   ;;  %v679_v26 = vld [vmem:[%s970_s1 + $0xc0] ss:$16 sps:$4 sm:$0xff]  }
   0xa   :  { %v680_v27 = vld [vmem:[%s970_s1 + $0xc8] ss:$16 sps:$4 sm:$0xff]   ;;  %v681_v28 = vld [vmem:[%s970_s1 + $0xe4] ss:$16 sps:$4 sm:$0xff]   ;;  %v683_v29 = vld [vmem:[%s970_s1 + $0xec] ss:$16 sps:$4 sm:$0xff]  }
   0xb   :  { %451 = vmatpush1.bf16.msra.mxu0 %v655_v10  ;;  %492 = vmatpush1.bf16.msra.mxu1 %v656_v11  ;;  %v685_v30 = vld [vmem:[%s970_s1 + $0xe0] ss:$16 sps:$4 sm:$0xff]   ;;  %v686_v31 = vld [vmem:[%s970_s1 + $0xe8] ss:$16 sps:$4 sm:$0xff]   ;;  %v687_v32 = vld [vmem:[%s970_s1 + $0x104] ss:$16 sps:$4 sm:$0xff]  }
   0xc   :  { %452 = vmatprep.subr.bf16.mxu0 %v657_v12  ;;  %493 = vmatprep.subr.bf16.mxu1 %v659_v13  ;;  %v689_v33 = vld [vmem:[%s970_s1 + $0x10c] ss:$16 sps:$4 sm:$0xff]   ;;  %v691_v34 = vld [vmem:[%s970_s1 + $0x100] ss:$16 sps:$4 sm:$0xff]   ;;  %v692_v35 = vld [vmem:[%s970_s1 + $0x108] ss:$16 sps:$4 sm:$0xff]  }
   0xd   :  { %v693_v36 = vld [vmem:[%s970_s1 + $0x124] ss:$16 sps:$4 sm:$0xff]   ;;  %v695_v37 = vld [vmem:[%s970_s1 + $0x12c] ss:$16 sps:$4 sm:$0xff]   ;;  %v697_v41 = vld [vmem:[%s970_s1 + $0x120] ss:$16 sps:$4 sm:$0xff]  }
   0xe   :  { %v698_v42 = vld [vmem:[%s970_s1 + $0x128] ss:$16 sps:$4 sm:$0xff]   ;;  %v699_v43 = vld [vmem:[%s970_s1 + $0x144] ss:$16 sps:$4 sm:$0xff]   ;;  %v701_v44 = vld [vmem:[%s970_s1 + $0x14c] ss:$16 sps:$4 sm:$0xff]  }
   0xf   :  { %453 = vmatpush1.bf16.msra.mxu0 %v661_v14  ;;  %494 = vmatpush1.bf16.msra.mxu1 %v662_v15  ;;  %v882_v45 = vshrl.u32 %v81_v38, 7  ;;  %v703_v47 = vld [vmem:[%s970_s1 + $0x140] ss:$16 sps:$4 sm:$0xff]   ;;  %v704_v48 = vld [vmem:[%s970_s1 + $0x148] ss:$16 sps:$4 sm:$0xff]  }
  0x10   :  { %454 = vmatprep.subr.bf16.mxu0 %v663_v16  ;;  %495 = vmatprep.subr.bf16.mxu1 %v665_v17  ;;  %v705_v49 = vld [vmem:[%s970_s1 + $0x164] ss:$16 sps:$4 sm:$0xff]   ;;  %v707_v50 = vld [vmem:[%s970_s1 + $0x16c] ss:$16 sps:$4 sm:$0xff]   ;;  %v709_v53 = vld [vmem:[%s970_s1 + $0x160] ss:$16 sps:$4 sm:$0xff]  }
  0x11   :  { %v897_v51 = vsub.s32 %v112_v46, %v882_v45  ;;  %v570_v52 = vld.sshfl [vmem:[%s971_s0] sm:$0x11 pattern:$0x75316420]  ;;  %v710_v54 = vld [vmem:[%s970_s1 + $0x168] ss:$16 sps:$4 sm:$0xff]  }
  0x12   :  { %v109_v55 = vcombine.high %v570_v52, %v570_v52  ;;  %v711_v56 = vld [vmem:[%s970_s1 + $0x184] ss:$16 sps:$4 sm:$0xff]   ;;  %v713_v57 = vld [vmem:[%s970_s1 + $0x18c] ss:$16 sps:$4 sm:$0xff]   ;;  %v715_v59 = vld [vmem:[%s970_s1 + $0x180] ss:$16 sps:$4 sm:$0xff]  }
  0x13   :  { %455 = vmatpush1.bf16.msra.mxu0 %v667_v18  ;;  %496 = vmatpush1.bf16.msra.mxu1 %v668_v19  ;;  %v716_v60 = vld [vmem:[%s970_s1 + $0x188] ss:$16 sps:$4 sm:$0xff]   ;;  %v717_v61 = vld [vmem:[%s970_s1 + $0x1a4] ss:$16 sps:$4 sm:$0xff]   ;;  %v719_v62 = vld [vmem:[%s970_s1 + $0x1ac] ss:$16 sps:$4 sm:$0xff]   ;;  %v116_v9 = vrot.slane %v570_v52, %v897_v51 }
  0x14   :  { %456 = vmatprep.subr.bf16.mxu0 %v669_v20  ;;  %497 = vmatprep.subr.bf16.mxu1 %v671_v21  ;;  %v123_v58 = vrot.slane %v109_v55, %v897_v51  ;;  %v721_v63 = vld [vmem:[%s970_s1 + $0x1a0] ss:$16 sps:$4 sm:$0xff]   ;;  %v722_v0 = vld [vmem:[%s970_s1 + $0x1a8] ss:$16 sps:$4 sm:$0xff]   ;;  %v723_v1 = vld [vmem:[%s970_s1 + $0x1c4] ss:$16 sps:$4 sm:$0xff]  }
  0x15   :  { %v725_v2 = vld [vmem:[%s970_s1 + $0x1cc] ss:$16 sps:$4 sm:$0xff]   ;;  %v727_v3 = vld [vmem:[%s970_s1 + $0x1c0] ss:$16 sps:$4 sm:$0xff]   ;;  %v728_v4 = vld [vmem:[%s970_s1 + $0x1c8] ss:$16 sps:$4 sm:$0xff]  }
  0x16   :  { %478 = vmatprep.mubr.bf16.mxu0 %v123_v58  ;;  %519 = vmatprep.mubr.bf16.mxu1 %v123_v58  ;;  %v729_v5 = vld [vmem:[%s970_s1 + $0x1e4] ss:$16 sps:$4 sm:$0xff]   ;;  %v731_v6 = vld [vmem:[%s970_s1 + $0x1ec] ss:$16 sps:$4 sm:$0xff]   ;;  %v733_v7 = vld [vmem:[%s970_s1 + $0x1e0] ss:$16 sps:$4 sm:$0xff]  }
  0x17   :  { %457 = vmatpush1.bf16.msra.mxu0 %v673_v22  ;;  %498 = vmatpush1.bf16.msra.mxu1 %v674_v23  ;;  %v734_v8 = vld [vmem:[%s970_s1 + $0x1e8] ss:$16 sps:$4 sm:$0xff]   ;;  %v83_v10 = vsub.s32 0, %v882_v45  ;;  %v91_v11 = vsub.s32 2, %v882_v45  ;;  %v79_v12 = vld [vmem:[%s972_s2] sm:$0xf] }
  0x18   :  { %458 = vmatprep.subr.bf16.mxu0 %v675_v24  ;;  %499 = vmatprep.subr.bf16.mxu1 %v677_v25  ;;  %v87_v13 = vsub.s32 1, %v882_v45  ;;  %v95_v14 = vsub.s32 3, %v882_v45 }
  0x19   :  { %v84_v15 = vrot.slane %v79_v12, %v83_v10  ;;  %v92_v16 = vrot.slane %v79_v12, %v91_v11 }
  0x1a   :  { %v88_v17 = vrot.slane %v79_v12, %v87_v13  ;;  %v96_v18 = vrot.slane %v79_v12, %v95_v14 }
  0x1b   :  { %459 = vmatpush1.bf16.msra.mxu0 %v679_v26  ;;  %500 = vmatpush1.bf16.msra.mxu1 %v680_v27 }
  0x1c   :  { %460 = vmatprep.subr.bf16.mxu0 %v681_v28  ;;  %501 = vmatprep.subr.bf16.mxu1 %v683_v29 }
  0x1f   :  { %461 = vmatpush1.bf16.msra.mxu0 %v685_v30  ;;  %502 = vmatpush1.bf16.msra.mxu1 %v686_v31 }
  0x20   :  { %462 = vmatprep.subr.bf16.mxu0 %v687_v32  ;;  %503 = vmatprep.subr.bf16.mxu1 %v689_v33 }
  0x23   :  { %463 = vmatpush1.bf16.msra.mxu0 %v691_v34  ;;  %504 = vmatpush1.bf16.msra.mxu1 %v692_v35 }
  0x24   :  { %464 = vmatprep.subr.bf16.mxu0 %v693_v36  ;;  %505 = vmatprep.subr.bf16.mxu1 %v695_v37 }
  0x27   :  { %465 = vmatpush1.bf16.msra.mxu0 %v697_v41  ;;  %506 = vmatpush1.bf16.msra.mxu1 %v698_v42 }
  0x28   :  { %466 = vmatprep.subr.bf16.mxu0 %v699_v43  ;;  %507 = vmatprep.subr.bf16.mxu1 %v701_v44 }
  0x2b   :  { %467 = vmatpush1.bf16.msra.mxu0 %v703_v47  ;;  %508 = vmatpush1.bf16.msra.mxu1 %v704_v48 }
  0x2c   :  { %468 = vmatprep.subr.bf16.mxu0 %v705_v49  ;;  %509 = vmatprep.subr.bf16.mxu1 %v707_v50 }
  0x2f   :  { %469 = vmatpush1.bf16.msra.mxu0 %v709_v53  ;;  %510 = vmatpush1.bf16.msra.mxu1 %v710_v54 }
  0x30   :  { %470 = vmatprep.subr.bf16.mxu0 %v711_v56  ;;  %511 = vmatprep.subr.bf16.mxu1 %v713_v57 }
  0x33   :  { %471 = vmatpush1.bf16.msra.mxu0 %v715_v59  ;;  %512 = vmatpush1.bf16.msra.mxu1 %v716_v60 }
  0x34   :  { %472 = vmatprep.subr.bf16.mxu0 %v717_v61  ;;  %513 = vmatprep.subr.bf16.mxu1 %v719_v62 }
  0x37   :  { %473 = vmatpush1.bf16.msra.mxu0 %v721_v63  ;;  %514 = vmatpush1.bf16.msra.mxu1 %v722_v0 }
  0x38   :  { %474 = vmatprep.subr.bf16.mxu0 %v723_v1  ;;  %515 = vmatprep.subr.bf16.mxu1 %v725_v2 }
  0x3b   :  { %475 = vmatpush1.bf16.msra.mxu0 %v727_v3  ;;  %516 = vmatpush1.bf16.msra.mxu1 %v728_v4 }
  0x3c   :  { %476 = vmatprep.subr.bf16.mxu0 %v729_v5  ;;  %517 = vmatprep.subr.bf16.mxu1 %v731_v6 }
  0x3f   :  { %477 = vmatpush1.bf16.msra.mxu0 %v733_v7  ;;  %518 = vmatpush1.bf16.msra.mxu1 %v734_v8 }
  0x42   :  { %479 = vmatmul.mubr.bf16.vlgmr.msra.gmra.mrb[0].mxu0 %v116_v9  ;;  %520 = vmatmul.mubr.bf16.vlgmr.msra.gmra.mrb[0].mxu1 %v116_v9 }
 0x115   :  { %v480_v19 = vpop.f32.mrb[0].mxu0  ;;  %v521_v20 = vpop.f32.mrb[0].mxu1 }
 0x116   :  { %v481_v21 = vadd.f32 %v480_v19, %v84_v15  ;;  %v522_v22 = vadd.f32 %v521_v20, %v92_v16  ;;  %v482_v23 = vpop.f32.mrb[1].mxu0  ;;  %v523_v24 = vpop.f32.mrb[1].mxu1 }
 0x117   :  { %v483_v25 = vadd.f32 %v482_v23, %v88_v17  ;;  %v524_v26 = vadd.f32 %v523_v24, %v96_v18  ;;  %v484_v27 = vpop.f32.mrb[2].mxu0  ;;  %v525_v28 = vpop.f32.mrb[2].mxu1 }
 0x118   :  { %v528_v29 = vmax.f32 %v481_v21, 0.0  ;;  %v530_v30 = vmax.f32 %v522_v22, 0.0  ;;  %v485_v31 = vpop.f32.mrb[3].mxu0  ;;  %v526_v32 = vpop.f32.mrb[3].mxu1 }
 0x119   :  { %v529_v33 = vmax.f32 %v483_v25, 0.0  ;;  %v531_v34 = vmax.f32 %v524_v26, 0.0 }
 0x11b   :  { %v635_v35 = vpack.c.bf16 %v529_v33, %v528_v29  ;;  %v636_v36 = vpack.c.bf16 %v531_v34, %v530_v30 }
 0x11d   :  { %v548_v37 = vrot.slane %v635_v35, %v897_v51  ;;  %v555_v38 = vrot.slane %v636_v36, %v897_v51 }
 0x11f   :  { %v556_v39 = vcombine.low %v548_v37, %v555_v38 }
 0x121   :  { %637 = vst.sshfl [vmem:[%s973_s3] sm:$0x55 pattern:$0x73625140] %v556_v39 }

// kernel: denoising_autoencoder.13
= control target key start
LH: loop header
LB: loop body
LE: loop exit
PB: predicated region body
PF: predicated region fallthrough
CT: control target
= control target key end

     0   :  { %v223_v1 = vmov 0   ;;  %v34_v18 = vlaneseq  ;;  %s301_s1 = inlined_call_operand.vmem [shape: bf16[128,256], index: 1, kind: input, shape index: {}]   ;;  %s302_s0 = inlined_call_operand.vmem [shape: bf16[8,128], index: 0, kind: input, shape index: {}]   ;;  %s303_s2 = inlined_call_operand.vmem [shape: f32[1,256], index: 2, kind: input, shape index: {}]   ;;  %s304_s3 = inlined_call_operand.vmem [shape: bf16[8,256], index: 3, kind: output, shape index: {}]  }
   0x1   :  { %v199_v0 = vld [vmem:[%s301_s1 + $0x4] ss:$8 sps:$4 sm:$0xff]   ;;  %156 = vmatprep.mubr.bf16.mxu0 %v223_v1  ;;  %v201_v2 = vld [vmem:[%s301_s1] ss:$8 sps:$4 sm:$0xff]   ;;  %v202_v3 = vld [vmem:[%s301_s1 + $0x14] ss:$8 sps:$4 sm:$0xff]  }
   0x2   :  { %124 = vmatprep.subr.bf16.mxu0 %v199_v0  ;;  %v204_v4 = vld [vmem:[%s301_s1 + $0x10] ss:$8 sps:$4 sm:$0xff]   ;;  %v205_v5 = vld [vmem:[%s301_s1 + $0x24] ss:$8 sps:$4 sm:$0xff]   ;;  %v207_v6 = vld [vmem:[%s301_s1 + $0x20] ss:$8 sps:$4 sm:$0xff]  }
   0x3   :  { %125 = vmatpush1.bf16.msra.mxu0 %v201_v2  ;;  %v208_v7 = vld [vmem:[%s301_s1 + $0x34] ss:$8 sps:$4 sm:$0xff]   ;;  %v210_v8 = vld [vmem:[%s301_s1 + $0x30] ss:$8 sps:$4 sm:$0xff]   ;;  %v211_v9 = vld [vmem:[%s301_s1 + $0x44] ss:$8 sps:$4 sm:$0xff]  }
   0x4   :  { %126 = vmatprep.subr.bf16.mxu0 %v202_v3  ;;  %v213_v10 = vld [vmem:[%s301_s1 + $0x40] ss:$8 sps:$4 sm:$0xff]   ;;  %v214_v11 = vld [vmem:[%s301_s1 + $0x54] ss:$8 sps:$4 sm:$0xff]   ;;  %v216_v12 = vld [vmem:[%s301_s1 + $0x50] ss:$8 sps:$4 sm:$0xff]  }
   0x5   :  { %v217_v13 = vld [vmem:[%s301_s1 + $0x64] ss:$8 sps:$4 sm:$0xff]   ;;  %v219_v14 = vld [vmem:[%s301_s1 + $0x60] ss:$8 sps:$4 sm:$0xff]   ;;  %v220_v15 = vld [vmem:[%s301_s1 + $0x74] ss:$8 sps:$4 sm:$0xff]  }
   0x6   :  { %v222_v16 = vld [vmem:[%s301_s1 + $0x70] ss:$8 sps:$4 sm:$0xff]   ;;  %v15_v17 = vld [vmem:[%s302_s0] sm:$0xf]  ;;  %v35_v19 = vshrl.u32 %v34_v18, 7 }
   0x7   :  { %127 = vmatpush1.bf16.msra.mxu0 %v204_v4  ;;  %v32_v21 = vld [vmem:[%s303_s2] sm:$0x3] }
   0x8   :  { %128 = vmatprep.subr.bf16.mxu0 %v205_v5  ;;  %v36_v20 = vsub.s32 0, %v35_v19  ;;  %v40_v22 = vsub.s32 1, %v35_v19 }
   0xa   :  { %v37_v23 = vrot.slane %v32_v21, %v36_v20  ;;  %v41_v24 = vrot.slane %v32_v21, %v40_v22 }
   0xb   :  { %129 = vmatpush1.bf16.msra.mxu0 %v207_v6 }
   0xc   :  { %130 = vmatprep.subr.bf16.mxu0 %v208_v7 }
   0xf   :  { %131 = vmatpush1.bf16.msra.mxu0 %v210_v8 }
  0x10   :  { %132 = vmatprep.subr.bf16.mxu0 %v211_v9 }
  0x13   :  { %133 = vmatpush1.bf16.msra.mxu0 %v213_v10 }
  0x14   :  { %134 = vmatprep.subr.bf16.mxu0 %v214_v11 }
  0x17   :  { %135 = vmatpush1.bf16.msra.mxu0 %v216_v12 }
  0x18   :  { %136 = vmatprep.subr.bf16.mxu0 %v217_v13 }
  0x1b   :  { %137 = vmatpush1.bf16.msra.mxu0 %v219_v14 }
  0x1c   :  { %138 = vmatprep.subr.bf16.mxu0 %v220_v15 }
  0x1f   :  { %139 = vmatpush1.bf16.msra.mxu0 %v222_v16 }
  0x22   :  { %157 = vmatmul.mubr.bf16.vlgmr.msra.gmra.mrb[0].mxu0 %v15_v17 }
  0xf5   :  { %v158_v25 = vpop.f32.mrb[0].mxu0 }
  0xf6   :  { %v159_v26 = vadd.f32 %v158_v25, %v37_v23  ;;  %v160_v27 = vpop.f32.mrb[1].mxu0 }
  0xf7   :  { %v161_v28 = vadd.f32 %v160_v27, %v41_v24  ;;  %v162_v29 = vpop.f32.mrb[2].mxu0 }
  0xf8   :  { %v165_v30 = vmax.f32 %v159_v26, 0.0  ;;  %v163_v31 = vpop.f32.mrb[3].mxu0 }
  0xf9   :  { %v166_v32 = vmax.f32 %v161_v28, 0.0 }
  0xfb   :  { %v197_v33 = vpack.c.bf16 %v166_v32, %v165_v30 }
  0xfd   :  { %175 = vst [vmem:[%s304_s3] sm:$0xff] %v197_v33 }

// kernel: tile.33
= control target key start
LH: loop header
LB: loop body
LE: loop exit
PB: predicated region body
PF: predicated region fallthrough
CT: control target
= control target key end

     0   :  { %s22_s0 = inlined_call_operand.vmem [shape: f32[32], index: 0, kind: input, shape index: {}]   ;;  %s23_s1 = inlined_call_operand.vmem [shape: f32[4,32], index: 1, kind: output, shape index: {}]  }
   0x1   :  { %v4_v0 = vld [vmem:[%s22_s0] ss:$0 sm:$0xff] }
   0x2   :  { %5 = vst [vmem:[%s23_s1] sm:$0xf] %v4_v0 }

// kernel: tile.34
= control target key start
LH: loop header
LB: loop body
LE: loop exit
PB: predicated region body
PF: predicated region fallthrough
CT: control target
= control target key end

     0   :  { %vm7_vm0 = vcmask 261120   ;;  %s37_s8 = smov 32   ;;  %s38_s9 = smov 64   ;;  %vm13_vm1 = vcmask 1048320   ;;  %vm19_vm2 = vcmask 785920   ;;  %vm25_vm3 = vcmask 523520   ;;  %s55_s0 = inlined_call_operand.vmem [shape: f32[4,32], index: 0, kind: input, shape index: {}]   ;;  %s56_s1 = inlined_call_operand.vmem [shape: f32[1,128], index: 1, kind: output, shape index: {}]  }
   0x1   :  { %v4_v0 = vld [vmem:[%s55_s0] sm:$0xf]  ;;  %s36_s0 = smov 96  }
   0x2   :  { %5 = vst [vmem:[#allocation1] sm:$0xf] %v4_v0 }
   0x9   :  { %v10_v1 = vld [vmem:[#allocation1 + $0x3] sm:$0x1]   ;;  %v22_v2 = vld [vmem:[#allocation1 + $0x1] sm:$0x1]   ;;  %v6_v3 = vld [vmem:[#allocation1] sm:$0x1]  }
   0xa   :  { %11 = vrot.lane.b32.xlu0 %v10_v1, %s36_s0  ;;  %23 = vrot.lane.b32.xlu1 %v22_v2, %s37_s8  ;;  %v16_v4 = vld [vmem:[#allocation1 + $0x2] sm:$0x1]   ;;  %8 = vst.msk [vmem:[#allocation0] sm:$0x1] %vm7_vm0, %v6_v3  }
   0xe   :  { %17 = vrot.lane.b32.xlu0 %v16_v4, %s38_s9 }
  0x7c   :  { %v12_v5 = vpop.permute.xlu0 %11   ;;  %v24_v6 = vpop.permute.xlu1 %23  }
  0x7d   :  { %14 = vst.msk [vmem:[#allocation0] sm:$0x1] %vm13_vm1, %v12_v5  }
  0x80   :  { %v18_v7 = vpop.permute.xlu0 %17  }
  0x81   :  { %20 = vst.msk [vmem:[#allocation0] sm:$0x1] %vm19_vm2, %v18_v7  }
  0x82   :  { %26 = vst.msk [vmem:[#allocation0] sm:$0x1] %vm25_vm3, %v24_v6  }
  0x89   :  { %v30_v8 = vld [vmem:[#allocation0] sm:$0x1] }
  0x8a   :  { %32 = vst [vmem:[%s56_s1] sm:$0x1] %v30_v8 }

// kernel: tile.38
= control target key start
LH: loop header
LB: loop body
LE: loop exit
PB: predicated region body
PF: predicated region fallthrough
CT: control target
= control target key end

     0   :  { %s22_s0 = inlined_call_operand.vmem [shape: f32[3], index: 0, kind: input, shape index: {}]   ;;  %s23_s1 = inlined_call_operand.vmem [shape: f32[4,3], index: 1, kind: output, shape index: {}]  }
   0x1   :  { %v4_v0 = vld [vmem:[%s22_s0] ss:$0 sm:$0xff] }
   0x2   :  { %5 = vst [vmem:[%s23_s1] sm:$0xf] %v4_v0 }

// kernel: tile.39
= control target key start
LH: loop header
LB: loop body
LE: loop exit
PB: predicated region body
PF: predicated region fallthrough
CT: control target
= control target key end

     0   :  { %vm7_vm0 = vcmask 23552   ;;  %s37_s8 = smov 3   ;;  %s38_s9 = smov 6   ;;  %vm13_vm1 = vcmask 97352   ;;  %vm19_vm2 = vcmask 72752   ;;  %vm25_vm3 = vcmask 48152   ;;  %s55_s0 = inlined_call_operand.vmem [shape: f32[4,3], index: 0, kind: input, shape index: {}]   ;;  %s56_s1 = inlined_call_operand.vmem [shape: f32[1,12], index: 1, kind: output, shape index: {}]  }
   0x1   :  { %v4_v0 = vld [vmem:[%s55_s0] sm:$0xf]  ;;  %s36_s0 = smov 9  }
   0x2   :  { %5 = vst [vmem:[#allocation1] sm:$0xf] %v4_v0 }
   0x9   :  { %v10_v1 = vld [vmem:[#allocation1 + $0x3] sm:$0x1]   ;;  %v22_v2 = vld [vmem:[#allocation1 + $0x1] sm:$0x1]   ;;  %v6_v3 = vld [vmem:[#allocation1] sm:$0x1]  }
   0xa   :  { %11 = vrot.lane.b32.xlu0 %v10_v1, %s36_s0  ;;  %23 = vrot.lane.b32.xlu1 %v22_v2, %s37_s8  ;;  %v16_v4 = vld [vmem:[#allocation1 + $0x2] sm:$0x1]   ;;  %8 = vst.msk [vmem:[#allocation0] sm:$0x1] %vm7_vm0, %v6_v3  }
   0xe   :  { %17 = vrot.lane.b32.xlu0 %v16_v4, %s38_s9 }
  0x7c   :  { %v12_v5 = vpop.permute.xlu0 %11   ;;  %v24_v6 = vpop.permute.xlu1 %23  }
  0x7d   :  { %14 = vst.msk [vmem:[#allocation0] sm:$0x1] %vm13_vm1, %v12_v5  }
  0x80   :  { %v18_v7 = vpop.permute.xlu0 %17  }
  0x81   :  { %20 = vst.msk [vmem:[#allocation0] sm:$0x1] %vm19_vm2, %v18_v7  }
  0x82   :  { %26 = vst.msk [vmem:[#allocation0] sm:$0x1] %vm25_vm3, %v24_v6  }
  0x89   :  { %v30_v8 = vld [vmem:[#allocation0] sm:$0x1] }
  0x8a   :  { %32 = vst [vmem:[%s56_s1] sm:$0x1] %v30_v8 }

// kernel: denoising_autoencoder.14
= control target key start
LH: loop header
LB: loop body
LE: loop exit
PB: predicated region body
PF: predicated region fallthrough
CT: control target
= control target key end

     0   :  { %vm68_vm0 = vcmask 523264   ;;  %s251_s1 = inlined_call_operand.vmem [shape: bf16[64,128], index: 1, kind: input, shape index: {}]   ;;  %s252_s0 = inlined_call_operand.vmem [shape: bf16[32,64], index: 0, kind: input, shape index: {}]   ;;  %s253_s2 = inlined_call_operand.vmem [shape: f32[1,128], index: 2, kind: input, shape index: {}]   ;;  %s254_s3 = inlined_call_operand.vmem [shape: bf16[32,128], index: 3, kind: output, shape index: {}]  }
   0x1   :  { %v198_v0 = vld [vmem:[%s251_s1] sm:$0xff]   ;;  %v199_v1 = vld [vmem:[%s251_s1 + $0x8] sm:$0xff]   ;;  %v200_v2 = vld [vmem:[%s251_s1 + $0x10] sm:$0xff]  }
   0x2   :  { %186 = vmatprep.subr.bf16.mxu0 %v198_v0  ;;  %v202_v3 = vld [vmem:[%s252_s0] sm:$0xff]   ;;  %v201_v4 = vld [vmem:[%s251_s1 + $0x18] sm:$0xff]   ;;  %v203_v5 = vld [vmem:[%s252_s0 + $0x8] sm:$0xff]  }
   0x3   :  { %187 = vmatpush3.bf16.msra.mxu0 %v198_v0  ;;  %194 = vmatprep.mubr.msk.bf16.mxu0 %vm68_vm0, %v202_v3  ;;  %v152_v6 = vld [vmem:[%s253_s2] ss:$0 sm:$0xff] }
   0x4   :  { %188 = vmatprep.subr.bf16.mxu0 %v199_v1 }
   0x7   :  { %189 = vmatpush3.bf16.msra.mxu0 %v199_v1 }
   0x8   :  { %190 = vmatprep.subr.bf16.mxu0 %v200_v2 }
   0xb   :  { %191 = vmatpush3.bf16.msra.mxu0 %v200_v2 }
   0xc   :  { %192 = vmatprep.subr.bf16.mxu0 %v201_v4 }
   0xf   :  { %193 = vmatpush3.bf16.msra.mxu0 %v201_v4 }
  0x12   :  { %195 = vmatmul.mubr.msk.bf16.vlgmr.msra.gmra.mrb[0].mxu0 %vm68_vm0, %v203_v5 }
  0xe5   :  { %v196_v7 = vpop.f32.mrb[0].mxu0 }
  0xe6   :  { %v118_v8 = vadd.f32 %v196_v7, %v152_v6  ;;  %v109_v9 = vpop.f32.mrb[1].mxu0 }
  0xe7   :  { %v110_v10 = vadd.f32 %v152_v6, %v109_v9  ;;  %v197_v11 = vpop.f32.mrb[2].mxu0 }
  0xe8   :  { %v121_v12 = vadd.f32 %v197_v11, %v152_v6  ;;  %v112_v13 = vpop.f32.mrb[3].mxu0  ;;  %v126_v15 = vmax.f32 %v118_v8, 0.0 }
  0xe9   :  { %v113_v14 = vadd.f32 %v152_v6, %v112_v13  ;;  %v124_v17 = vmax.f32 %v110_v10, 0.0 }
  0xea   :  { %v127_v16 = vmax.f32 %v121_v12, 0.0 }
  0xeb   :  { %v125_v18 = vmax.f32 %v113_v14, 0.0 }
  0xec   :  { %v177_v19 = vpack.c.bf16 %v127_v16, %v126_v15 }
  0xed   :  { %v172_v20 = vpack.c.bf16 %v125_v18, %v124_v17 }
  0xee   :  { %179 = vst [vmem:[%s254_s3 + $0x8] sm:$0xff] %v177_v19  }
  0xef   :  { %173 = vst [vmem:[%s254_s3] sm:$0xff] %v172_v20  }

// kernel: denoising_autoencoder.15
= control target key start
LH: loop header
LB: loop body
LE: loop exit
PB: predicated region body
PF: predicated region fallthrough
CT: control target
= control target key end

     0   :  { %vm94_vm0 = vcmask 261120   ;;  %vm312_vm1 = vcmask 97280   ;;  %s619_s1 = inlined_call_operand.vmem [shape: bf16[32,12], index: 1, kind: input, shape index: {}]   ;;  %s620_s0 = inlined_call_operand.vmem [shape: bf16[128,32], index: 0, kind: input, shape index: {}]   ;;  %s621_s2 = inlined_call_operand.vmem [shape: f32[1,12], index: 2, kind: input, shape index: {}]   ;;  %s622_s3 = inlined_call_operand.vmem [shape: f32[128,12], index: 3, kind: output, shape index: {}]  }
   0x1   :  { %v402_v0 = vld [vmem:[%s619_s1] sm:$0xff]   ;;  %v403_v1 = vld [vmem:[%s619_s1 + $0x8] sm:$0xff]   ;;  %v408_v6 = vld [vmem:[%s620_s0 + $0x10] sm:$0xff]  }
   0x2   :  { %378 = vmatprep.subr.bf16.mxu0 %v402_v0  ;;  %398 = vmatprep.subr.bf16.mxu1 %v402_v0  ;;  %v404_v2 = vld [vmem:[%s620_s0] sm:$0xff]   ;;  %v406_v4 = vld [vmem:[%s620_s0 + $0x8] sm:$0xff]   ;;  %v409_v7 = vld [vmem:[%s620_s0 + $0x30] sm:$0xff]  }
   0x3   :  { %379 = vmatpush3.bf16.msra.mxu0 %v402_v0  ;;  %400 = vmatpush3.bf16.msra.mxu1 %v402_v0  ;;  %v405_v3 = vld [vmem:[%s620_s0 + $0x20] sm:$0xff]   ;;  %v407_v5 = vld [vmem:[%s620_s0 + $0x28] sm:$0xff]   ;;  %v410_v8 = vld [vmem:[%s620_s0 + $0x18] sm:$0xff]  }
   0x4   :  { %380 = vmatprep.subr.bf16.mxu0 %v403_v1  ;;  %399 = vmatprep.subr.bf16.mxu1 %v403_v1  ;;  %v411_v9 = vld [vmem:[%s620_s0 + $0x38] sm:$0xff]   ;;  %v537_v10 = vld [vmem:[%s621_s2] ss:$0 sm:$0xff] }
   0x5   :  { %382 = vmatprep.mubr.msk.bf16.mxu0 %vm94_vm0, %v404_v2  ;;  %390 = vmatprep.mubr.msk.bf16.mxu1 %vm94_vm0, %v405_v3 }
   0x7   :  { %381 = vmatpush3.bf16.msra.mxu0 %v403_v1  ;;  %401 = vmatpush3.bf16.msra.mxu1 %v403_v1 }
   0xa   :  { %383 = vmatmul.mubr.msk.bf16.vlgmr.msra.gmra.mrb[0].mxu0 %vm94_vm0, %v406_v4  ;;  %391 = vmatmul.mubr.msk.bf16.vlgmr.msra.gmra.mrb[0].mxu1 %vm94_vm0, %v407_v5 }
   0xb   :  { %386 = vmatprep.mubr.msk.bf16.mxu0 %vm94_vm0, %v408_v6  ;;  %394 = vmatprep.mubr.msk.bf16.mxu1 %vm94_vm0, %v409_v7 }
  0x12   :  { %387 = vmatmul.mubr.msk.bf16.gmra.mrb[4].mxu0 %vm94_vm0, %v410_v8  ;;  %395 = vmatmul.mubr.msk.bf16.gmra.mrb[4].mxu1 %vm94_vm0, %v411_v9 }
  0xdd   :  { %v384_v11 = vpop.f32.mrb[0].mxu0  ;;  %v392_v12 = vpop.f32.mrb[0].mxu1 }
  0xde   :  { %v162_v13 = vadd.f32 %v384_v11, %v537_v10  ;;  %v194_v14 = vadd.f32 %v392_v12, %v537_v10  ;;  %v153_v15 = vpop.f32.mrb[1].mxu0  ;;  %v185_v16 = vpop.f32.mrb[1].mxu1 }
  0xdf   :  { %v154_v17 = vadd.f32 %v537_v10, %v153_v15  ;;  %v186_v18 = vadd.f32 %v537_v10, %v185_v16  ;;  %v385_v19 = vpop.f32.mrb[2].mxu0  ;;  %v393_v20 = vpop.f32.mrb[2].mxu1 }
  0xe0   :  { %v354_v21 = vmul.f32 -1.442695, %v162_v13  ;;  %v362_v22 = vmul.f32 -1.442695, %v194_v14  ;;  %v165_v23 = vadd.f32 %v385_v19, %v537_v10  ;;  %v197_v24 = vadd.f32 %v393_v20, %v537_v10  ;;  %v156_v25 = vpop.f32.mrb[3].mxu0  ;;  %v188_v26 = vpop.f32.mrb[3].mxu1 }
  0xe1   :  { %v352_v27 = vmul.f32 -1.442695, %v154_v17  ;;  %v360_v28 = vmul.f32 -1.442695, %v186_v18  ;;  %v157_v29 = vadd.f32 %v537_v10, %v156_v25  ;;  %v189_v30 = vadd.f32 %v537_v10, %v188_v26 }
  0xe2   :  { %412 = vpow2.f32 %v354_v21  ;;  %v355_v31 = vmul.f32 -1.442695, %v165_v23  ;;  %v363_v32 = vmul.f32 -1.442695, %v197_v24 }
  0xe3   :  { %414 = vpow2.f32 %v362_v22  ;;  %v353_v33 = vmul.f32 -1.442695, %v157_v29  ;;  %v361_v34 = vmul.f32 -1.442695, %v189_v30 }
  0xe4   :  { %416 = vpow2.f32 %v352_v27 }
  0xe5   :  { %418 = vpow2.f32 %v360_v28  ;;  %v388_v35 = vpop.f32.mrb[4].mxu0  ;;  %v396_v36 = vpop.f32.mrb[4].mxu1 }
  0xe6   :  { %420 = vpow2.f32 %v355_v31  ;;  %v178_v37 = vadd.f32 %v388_v35, %v537_v10  ;;  %v210_v38 = vadd.f32 %v396_v36, %v537_v10  ;;  %v169_v39 = vpop.f32.mrb[5].mxu0  ;;  %v201_v40 = vpop.f32.mrb[5].mxu1 }
  0xe7   :  { %422 = vpow2.f32 %v363_v32  ;;  %v170_v41 = vadd.f32 %v537_v10, %v169_v39  ;;  %v202_v42 = vadd.f32 %v537_v10, %v201_v40  ;;  %v389_v43 = vpop.f32.mrb[6].mxu0  ;;  %v397_v44 = vpop.f32.mrb[6].mxu1 }
  0xe8   :  { %424 = vpow2.f32 %v353_v33  ;;  %v358_v45 = vmul.f32 -1.442695, %v178_v37  ;;  %v366_v46 = vmul.f32 -1.442695, %v210_v38  ;;  %v181_v47 = vadd.f32 %v389_v43, %v537_v10  ;;  %v172_v48 = vpop.f32.mrb[7].mxu0  ;;  %v204_v49 = vpop.f32.mrb[7].mxu1 }
  0xe9   :  { %426 = vpow2.f32 %v361_v34  ;;  %v356_v50 = vmul.f32 -1.442695, %v170_v41  ;;  %v364_v51 = vmul.f32 -1.442695, %v202_v42  ;;  %v213_v6 = vadd.f32 %v397_v44, %v537_v10 }
  0xea   :  { %428 = vpow2.f32 %v358_v45  ;;  %v359_v52 = vmul.f32 -1.442695, %v181_v47  ;;  %v173_v9 = vadd.f32 %v537_v10, %v172_v48  ;;  %v205_v13 = vadd.f32 %v537_v10, %v204_v49 }
  0xeb   :  { %430 = vpow2.f32 %v366_v46  ;;  %v367_v18 = vmul.f32 -1.442695, %v213_v6 }
  0xec   :  { %v413_v53 = vpop.eup %412  ;;  %432 = vpow2.f32 %v356_v50  ;;  %v357_v21 = vmul.f32 -1.442695, %v173_v9  ;;  %v365_v10 = vmul.f32 -1.442695, %v205_v13 }
  0xed   :  { %v415_v54 = vpop.eup %414  ;;  %v266_v55 = vadd.f32 1.0, %v413_v53  ;;  %434 = vpow2.f32 %v364_v51 }
  0xee   :  { %v417_v56 = vpop.eup %416  ;;  %v274_v57 = vadd.f32 1.0, %v415_v54  ;;  %436 = vpow2.f32 %v359_v52 }
  0xef   :  { %v419_v58 = vpop.eup %418  ;;  %438 = vrcp.f32 %v266_v55  ;;  %v264_v59 = vadd.f32 1.0, %v417_v56 }
  0xf0   :  { %v421_v60 = vpop.eup %420  ;;  %440 = vrcp.f32 %v274_v57  ;;  %v272_v61 = vadd.f32 1.0, %v419_v58 }
  0xf1   :  { %v423_v62 = vpop.eup %422  ;;  %442 = vrcp.f32 %v264_v59  ;;  %v267_v63 = vadd.f32 1.0, %v421_v60 }
  0xf2   :  { %v425_v0 = vpop.eup %424  ;;  %444 = vrcp.f32 %v272_v61  ;;  %v275_v1 = vadd.f32 1.0, %v423_v62 }
  0xf3   :  { %v427_v2 = vpop.eup %426  ;;  %446 = vrcp.f32 %v267_v63  ;;  %v265_v3 = vadd.f32 1.0, %v425_v0 }
  0xf4   :  { %v429_v4 = vpop.eup %428  ;;  %448 = vrcp.f32 %v275_v1  ;;  %v273_v5 = vadd.f32 1.0, %v427_v2 }
  0xf5   :  { %v431_v7 = vpop.eup %430  ;;  %450 = vrcp.f32 %v265_v3  ;;  %v270_v8 = vadd.f32 1.0, %v429_v4 }
  0xf6   :  { %v433_v11 = vpop.eup %432  ;;  %452 = vrcp.f32 %v273_v5  ;;  %v278_v12 = vadd.f32 1.0, %v431_v7 }
  0xf7   :  { %v435_v14 = vpop.eup %434  ;;  %454 = vrcp.f32 %v270_v8  ;;  %v268_v15 = vadd.f32 1.0, %v433_v11 }
  0xf8   :  { %v437_v16 = vpop.eup %436  ;;  %456 = vrcp.f32 %v278_v12  ;;  %v276_v17 = vadd.f32 1.0, %v435_v14 }
  0xf9   :  { %v439_v19 = vpop.eup %438  ;;  %458 = vrcp.f32 %v268_v15  ;;  %v271_v20 = vadd.f32 1.0, %v437_v16 }
  0xfa   :  { %v441_v22 = vpop.eup %440  ;;  %315 = vst.msk [vmem:[%s622_s3 + $0x10] sm:$0xff] %vm312_vm1, %v439_v19  ;;  %460 = vrcp.f32 %v276_v17 }
  0xfb   :  { %v443_v23 = vpop.eup %442  ;;  %323 = vst.msk [vmem:[%s622_s3 + $0x50] sm:$0xff] %vm312_vm1, %v441_v22  ;;  %462 = vrcp.f32 %v271_v20 }
  0xfc   :  { %v445_v24 = vpop.eup %444  ;;  %313 = vst.msk [vmem:[%s622_s3] sm:$0xff] %vm312_vm1, %v443_v23  ;;  %464 = vpow2.f32 %v367_v18 }
  0xfd   :  { %v447_v25 = vpop.eup %446  ;;  %321 = vst.msk [vmem:[%s622_s3 + $0x40] sm:$0xff] %vm312_vm1, %v445_v24  ;;  %466 = vpow2.f32 %v357_v21 }
  0xfe   :  { %v449_v26 = vpop.eup %448  ;;  %316 = vst.msk [vmem:[%s622_s3 + $0x18] sm:$0xff] %vm312_vm1, %v447_v25  ;;  %468 = vpow2.f32 %v365_v10 }
  0xff   :  { %v451_v27 = vpop.eup %450  ;;  %324 = vst.msk [vmem:[%s622_s3 + $0x58] sm:$0xff] %vm312_vm1, %v449_v26 }
 0x100   :  { %v453_v28 = vpop.eup %452  ;;  %314 = vst.msk [vmem:[%s622_s3 + $0x8] sm:$0xff] %vm312_vm1, %v451_v27 }
 0x101   :  { %v455_v29 = vpop.eup %454  ;;  %322 = vst.msk [vmem:[%s622_s3 + $0x48] sm:$0xff] %vm312_vm1, %v453_v28 }
 0x102   :  { %v457_v30 = vpop.eup %456  ;;  %319 = vst.msk [vmem:[%s622_s3 + $0x30] sm:$0xff] %vm312_vm1, %v455_v29 }
 0x103   :  { %v459_v31 = vpop.eup %458  ;;  %327 = vst.msk [vmem:[%s622_s3 + $0x70] sm:$0xff] %vm312_vm1, %v457_v30 }
 0x104   :  { %v461_v32 = vpop.eup %460  ;;  %317 = vst.msk [vmem:[%s622_s3 + $0x20] sm:$0xff] %vm312_vm1, %v459_v31 }
 0x105   :  { %v463_v33 = vpop.eup %462  ;;  %325 = vst.msk [vmem:[%s622_s3 + $0x60] sm:$0xff] %vm312_vm1, %v461_v32 }
 0x106   :  { %v465_v34 = vpop.eup %464  ;;  %320 = vst.msk [vmem:[%s622_s3 + $0x38] sm:$0xff] %vm312_vm1, %v463_v33 }
 0x107   :  { %v467_v35 = vpop.eup %466  ;;  %v279_v36 = vadd.f32 1.0, %v465_v34 }
 0x108   :  { %v469_v37 = vpop.eup %468  ;;  %v269_v38 = vadd.f32 1.0, %v467_v35 }
 0x109   :  { %470 = vrcp.f32 %v279_v36  ;;  %v277_v39 = vadd.f32 1.0, %v469_v37 }
 0x10a   :  { %472 = vrcp.f32 %v269_v38 }
 0x10b   :  { %474 = vrcp.f32 %v277_v39 }
 0x113   :  { %v471_v40 = vpop.eup %470 }
 0x114   :  { %v473_v41 = vpop.eup %472  ;;  %328 = vst.msk [vmem:[%s622_s3 + $0x78] sm:$0xff] %vm312_vm1, %v471_v40 }
 0x115   :  { %v475_v42 = vpop.eup %474  ;;  %318 = vst.msk [vmem:[%s622_s3 + $0x28] sm:$0xff] %vm312_vm1, %v473_v41 }
 0x116   :  { %326 = vst.msk [vmem:[%s622_s3 + $0x68] sm:$0xff] %vm312_vm1, %v475_v42 }

</bundles_post_ra>
